<compile_context>
chip_gen: v6e
topology: v6e:2x2x1
jax: 0.10.0
libtpu: 0.0.40
codegen_flags: <defaults>
</compile_context>

<pallas_src>
import jax
import jax.numpy as jnp
from jax.experimental import pallas as pl
from jax.experimental.pallas import tpu as pltpu


def _softplus(v):
    # mimics torch.nn.Softplus (threshold=20)
    return jnp.where(v > 20.0, v, jnp.log1p(jnp.exp(jnp.minimum(v, 20.0))))


def pcm_kernel(x_ref, eps_ref,
               w_h_ref, w_xall_ref, w_z_ref,
               bp_ref, be_ref, bd_ref,
               w_pms_ref, b_pms_ref, w_ems_ref, b_ems_ref, w_dms_ref, b_dms_ref,
               kld_ref, nll_ref, packed_ref,
               h_scr, h1p_scr, xpp_scr, kld_acc, nll_acc):
    c = pl.program_id(0)
    n_chunks = pl.num_programs(0)

    t_chunk, B, x_dim = x_ref.shape
    z_dim = eps_ref.shape[2]
    h_dim = h_scr.shape[1]

    @pl.when(c == 0)
    def _init():
        h_scr[...] = jnp.zeros_like(h_scr)
        h1p_scr[...] = jnp.zeros_like(h1p_scr)     # h_1 @ wd_h1 projection (zero at t=0)
        xpp_scr[...] = jnp.zeros_like(xpp_scr)     # x[t-1] @ [wp_x|wd_x]  (zero at t=0)
        kld_acc[...] = jnp.zeros_like(kld_acc)
        nll_acc[...] = jnp.zeros_like(nll_acc)

    # ---- hoisted (once per chunk) weight / bias loads & broadcasts ----
    W_h = w_h_ref[...]          # (h, 5h): [prior | enc | dec_h | dec_h1 | rnn_hh]
    W_xall = w_xall_ref[...]    # (x, 4h): [enc | rnn_ih | prior(next step) | dec(next step)]
    W_z = w_z_ref[...]          # (z, 2h): [dec | rnn_ih]
    W_pms = w_pms_ref[...]      # (h, 2z): [prior_mean | prior_std]
    W_ems = w_ems_ref[...]      # (h, 2z): [enc_mean | enc_std]
    W_dms = w_dms_ref[...]      # (h, 2x): [dec_mean | dec_std]
    bp = jnp.broadcast_to(bp_ref[...], (B, h_dim))
    be = jnp.broadcast_to(be_ref[...], (B, h_dim))
    bd = jnp.broadcast_to(bd_ref[...], (B, h_dim))
    b_pms = jnp.broadcast_to(b_pms_ref[...], (B, 2 * z_dim))
    b_ems = jnp.broadcast_to(b_ems_ref[...], (B, 2 * z_dim))
    b_dms = jnp.broadcast_to(b_dms_ref[...], (B, 2 * x_dim))

    # ---- chunk-carried state (read once, written back once per chunk) ----
    h = h_scr[...]
    h1p = h1p_scr[...]          # (old h_1) @ wd_h1, produced by the previous step's h-matmul
    xpp = xpp_scr[...]          # x[t-1] @ [wp_x | wd_x], produced by the previous step's x-matmul
    kacc = kld_acc[...]
    nacc = nll_acc[...]

    def mm(a, w):
        return jnp.dot(a, w, preferred_element_type=jnp.float32)

    for i in range(t_chunk):
        x_t = x_ref[i]          # (B, x_dim)
        eps = eps_ref[i]        # (B, z_dim)

        # fused projections of shared LHS
        hp = mm(h, W_h)         # (B, 5h)  -- on the recurrence critical path
        xp = mm(x_t, W_xall)    # (B, 4h)  -- independent of h, schedules freely

        # prior network (x[t-1] projection comes from the carry)
        prior_t = jnp.maximum(xpp[:, :h_dim] + hp[:, :h_dim] + bp, 0.0)
        pms = mm(prior_t, W_pms) + b_pms
        prior_mean = pms[:, :z_dim]
        prior_std = _softplus(pms[:, z_dim:])

        # encoder
        enc_t = jnp.maximum(xp[:, :h_dim] + hp[:, h_dim:2 * h_dim] + be, 0.0)
        ems = mm(enc_t, W_ems) + b_ems
        enc_mean = ems[:, :z_dim]
        enc_std = _softplus(ems[:, z_dim:])

        # reparameterized sample + its fused projection
        z_t = eps * enc_std + enc_mean
        zp = mm(z_t, W_z)       # (B, 2h)

        # decoder
        dec_t = jnp.maximum(xpp[:, h_dim:] + zp[:, :h_dim]
                            + hp[:, 2 * h_dim:3 * h_dim] + h1p + bd, 0.0)
        dms = mm(dec_t, W_dms) + b_dms
        logits_m = dms[:, :x_dim]
        dec_mean = jax.nn.sigmoid(logits_m)
        logits_s = dms[:, x_dim:]
        logits_s = logits_s - jnp.max(logits_s, axis=1, keepdims=True)
        e = jnp.exp(logits_s)
        dec_std = e * pl.reciprocal(jnp.sum(e, axis=1, keepdims=True), approx=True)

        # RNNCell(tanh, no bias) state update + carries for the next step
        h_new = jnp.tanh(xp[:, h_dim:2 * h_dim] + zp[:, h_dim:] + hp[:, 4 * h_dim:])
        h1p = hp[:, 3 * h_dim:4 * h_dim]    # (old h) @ wd_h1 for next step's decoder
        xpp = xp[:, 2 * h_dim:]             # x_t @ [wp_x | wd_x] for next step's prior/dec
        h = h_new

        # KL( N(enc) || N(prior) ) element-wise accumulation (cross-lane reduce deferred)
        inv_ps = 1.0 / prior_std
        ratio = enc_std * inv_ps
        diff = (enc_mean - prior_mean) * inv_ps
        kacc = kacc + 0.5 * (ratio * ratio + diff * diff - 1.0 - 2.0 * jnp.log(ratio))

        # Bernoulli NLL (== BCE sum) in logit space: softplus(l) - x*l
        nacc = nacc + (_softplus(logits_m) - x_t * logits_m)

        # one lane-packed store per step: [enc_mean | enc_std | dec_mean | dec_std]
        packed_ref[i] = jnp.concatenate([enc_mean, enc_std, dec_mean, dec_std], axis=1)

    # write carried state back to scratch
    h_scr[...] = h
    h1p_scr[...] = h1p
    xpp_scr[...] = xpp
    kld_acc[...] = kacc
    nll_acc[...] = nacc

    @pl.when(c == n_chunks - 1)
    def _finalize():
        kld_ref[...] = jnp.sum(kacc, keepdims=True)
        nll_ref[...] = jnp.sum(nacc, keepdims=True)


def pcm_c3_forward(x, eps, params, t_chunk=4):
    T, B, x_dim = x.shape
    z_dim = eps.shape[-1]
    h_dim = params["wp_h"].shape[0]
    assert T % t_chunk == 0, "T must be a multiple of t_chunk"
    n_chunks = T // t_chunk

    # ---- host-side weight-column fusion (same math; columns are independent) ----
    W_h = jnp.concatenate([params["wp_h"], params["we_h"], params["wd_h"],
                           params["wd_h1"], params["whh"]], axis=1)            # (h, 5h)
    W_xall = jnp.concatenate([params["we_x"], params["wih_x"],
                              params["wp_x"], params["wd_x"]], axis=1)         # (x, 4h)
    W_z = jnp.concatenate([params["wd_z"], params["wih_z"]], axis=1)           # (z, 2h)
    W_pms = jnp.concatenate([params["wpm"], params["wps"]], axis=1)            # (h, 2z)
    b_pms = jnp.concatenate([params["bpm"], params["bps"]], axis=1)            # (1, 2z)
    W_ems = jnp.concatenate([params["wem"], params["wes"]], axis=1)
    b_ems = jnp.concatenate([params["bem"], params["bes"]], axis=1)
    W_dms = jnp.concatenate([params["wdm"], params["wds"]], axis=1)            # (h, 2x)
    b_dms = jnp.concatenate([params["bdm"], params["bds"]], axis=1)

    weights = [W_h, W_xall, W_z,
               params["bp"], params["be"], params["bd"],
               W_pms, b_pms, W_ems, b_ems, W_dms, b_dms]

    packed_dim = 2 * z_dim + 2 * x_dim

    def seq_spec(feat):
        return pl.BlockSpec((t_chunk, B, feat), lambda c: (c, 0, 0))

    def full_spec(arr):
        nd = arr.ndim
        return pl.BlockSpec(arr.shape, lambda c, _nd=nd: (0,) * _nd)

    in_specs = [seq_spec(x_dim), seq_spec(z_dim)] + [full_spec(w) for w in weights]
    out_specs = [
        pl.BlockSpec((1, 1), lambda c: (0, 0)),                 # kld (written at last chunk)
        pl.BlockSpec((1, 1), lambda c: (0, 0)),                 # nll (written at last chunk)
        pl.BlockSpec((t_chunk, B, packed_dim), lambda c: (c, 0, 0)),
    ]
    out_shape = [
        jax.ShapeDtypeStruct((1, 1), jnp.float32),
        jax.ShapeDtypeStruct((1, 1), jnp.float32),
        jax.ShapeDtypeStruct((T, B, packed_dim), jnp.float32),
    ]

    kld, nll, packed = pl.pallas_call(
        pcm_kernel,
        out_shape=out_shape,
        grid=(n_chunks,),
        in_specs=in_specs,
        out_specs=out_specs,
        scratch_shapes=[pltpu.VMEM((B, h_dim), jnp.float32),       # h
                        pltpu.VMEM((B, h_dim), jnp.float32),       # (old h_1) @ wd_h1
                        pltpu.VMEM((B, 2 * h_dim), jnp.float32),   # x[t-1] @ [wp_x|wd_x]
                        pltpu.VMEM((B, z_dim), jnp.float32),       # kld element accumulator
                        pltpu.VMEM((B, x_dim), jnp.float32)],      # nll element accumulator
        compiler_params=pltpu.CompilerParams(
            dimension_semantics=("arbitrary",)),                   # sequential recurrence
    )(x, eps, *weights)

    enc_mean = packed[:, :, :z_dim]
    enc_std = packed[:, :, z_dim:2 * z_dim]
    dec_mean = packed[:, :, 2 * z_dim:2 * z_dim + x_dim]
    dec_std = packed[:, :, 2 * z_dim + x_dim:]
    return kld[0, 0], nll[0, 0], dec_mean[-1], (enc_mean, enc_std), (dec_mean, dec_std)


def init_params(key, x_dim, h_dim, z_dim, stdv=0.1):
    """Deterministic N(0, stdv) init (mirrors reset_parameters); weights stored (in, out)."""
    keys = jax.random.split(key, 11)

    def lin(k, fan_in, fan_out):
        kw, kb = jax.random.split(k)
        w = stdv * jax.random.normal(kw, (fan_in, fan_out), jnp.float32)
        b = stdv * jax.random.normal(kb, (1, fan_out), jnp.float32)
        return w, b

    p = {}
    w, b = lin(keys[0], x_dim + h_dim, h_dim)
    p["wp_x"], p["wp_h"], p["bp"] = w[:x_dim], w[x_dim:], b
    p["wpm"], p["bpm"] = lin(keys[1], h_dim, z_dim)
    p["wps"], p["bps"] = lin(keys[2], h_dim, z_dim)
    w, b = lin(keys[3], x_dim + h_dim, h_dim)
    p["we_x"], p["we_h"], p["be"] = w[:x_dim], w[x_dim:], b
    p["wem"], p["bem"] = lin(keys[4], h_dim, z_dim)
    p["wes"], p["bes"] = lin(keys[5], h_dim, z_dim)
    w, b = lin(keys[6], x_dim + z_dim + 2 * h_dim, h_dim)
    p["wd_x"] = w[:x_dim]
    p["wd_z"] = w[x_dim:x_dim + z_dim]
    p["wd_h"] = w[x_dim + z_dim:x_dim + z_dim + h_dim]
    p["wd_h1"] = w[x_dim + z_dim + h_dim:]
    p["bd"] = b
    p["wdm"], p["bdm"] = lin(keys[7], h_dim, x_dim)
    p["wds"], p["bds"] = lin(keys[8], h_dim, x_dim)
    w, _ = lin(keys[9], x_dim + z_dim, h_dim)
    p["wih_x"], p["wih_z"] = w[:x_dim], w[x_dim:]
    p["whh"], _ = lin(keys[10], h_dim, h_dim)
    return p


def reference_forward(x, eps, p):
    """Pure-JAX reference (same math as the PyTorch forward) for verification."""
    T, B, _ = x.shape
    h_dim = p["wp_h"].shape[0]
    h = jnp.zeros((B, h_dim), jnp.float32)
    h1 = jnp.zeros((B, h_dim), jnp.float32)
    kld = 0.0
    nll = 0.0
    dec_mean_t = None
    for t in range(T):
        x_t = x[t]
        x_p = jnp.zeros_like(x_t) if t == 0 else x[t - 1]
        prior_t = jnp.maximum(x_p @ p["wp_x"] + h @ p["wp_h"] + p["bp"], 0.0)
        prior_mean = prior_t @ p["wpm"] + p["bpm"]
        prior_std = _softplus(prior_t @ p["wps"] + p["bps"])
        enc_t = jnp.maximum(x_t @ p["we_x"] + h @ p["we_h"] + p["be"], 0.0)
        enc_mean = enc_t @ p["wem"] + p["bem"]
        enc_std = _softplus(enc_t @ p["wes"] + p["bes"])
        z_t = eps[t] * enc_std + enc_mean
        dec_t = jnp.maximum(x_p @ p["wd_x"] + z_t @ p["wd_z"]
                            + h @ p["wd_h"] + h1 @ p["wd_h1"] + p["bd"], 0.0)
        dec_mean_t = jax.nn.sigmoid(dec_t @ p["wdm"] + p["bdm"])
        h1 = h
        h = jnp.tanh(x_t @ p["wih_x"] + z_t @ p["wih_z"] + h @ p["whh"])
        var_ratio = (enc_std / prior_std) ** 2
        t1 = ((enc_mean - prior_mean) / prior_std) ** 2
        kld = kld + 0.5 * jnp.sum(var_ratio + t1 - 1.0 - jnp.log(var_ratio))
        nll = nll - jnp.sum(x_t * jnp.log(dec_mean_t)
                            + (1.0 - x_t) * jnp.log(1.0 - dec_mean_t))
    return kld, nll, dec_mean_t


if __name__ == "__main__":
    x_dim, h_dim, z_dim = 16, 32, 8
    T, B = 8, 4

    key = jax.random.PRNGKey(0)
    k_param, k_x, k_eps = jax.random.split(key, 3)
    params = init_params(k_param, x_dim, h_dim, z_dim)
    x = jax.random.uniform(k_x, (T, B, x_dim), jnp.float32)      # targets in [0,1] for BCE
    eps = jax.random.normal(k_eps, (T, B, z_dim), jnp.float32)   # reparameterization noise

    kld, nll, dec_mean_last, (enc_m, enc_s), (dec_m, dec_s) = jax.block_until_ready(
        pcm_c3_forward(x, eps, params, t_chunk=4))

    kld_ref, nll_ref, dec_ref = reference_forward(x, eps, params)
    assert jnp.allclose(kld, kld_ref, rtol=5e-3, atol=5e-3), (kld, kld_ref)
    assert jnp.allclose(nll, nll_ref, rtol=5e-3, atol=5e-3), (nll, nll_ref)
    assert jnp.allclose(dec_mean_last, dec_ref, rtol=5e-3, atol=5e-3)

    print("KERNEL_OK")
</pallas_src>

<mosaic_0001>
module attributes {stable_mosaic.version = 11 : i64} {
  func.func @pcm_kernel(%arg0: i32, %arg1: memref<4x4x16xf32, #tpu.memory_space<vmem>>, %arg2: memref<4x4x8xf32, #tpu.memory_space<vmem>>, %arg3: memref<32x160xf32, #tpu.memory_space<vmem>>, %arg4: memref<16x128xf32, #tpu.memory_space<vmem>>, %arg5: memref<8x64xf32, #tpu.memory_space<vmem>>, %arg6: memref<1x32xf32, #tpu.memory_space<vmem>>, %arg7: memref<1x32xf32, #tpu.memory_space<vmem>>, %arg8: memref<1x32xf32, #tpu.memory_space<vmem>>, %arg9: memref<32x16xf32, #tpu.memory_space<vmem>>, %arg10: memref<1x16xf32, #tpu.memory_space<vmem>>, %arg11: memref<32x16xf32, #tpu.memory_space<vmem>>, %arg12: memref<1x16xf32, #tpu.memory_space<vmem>>, %arg13: memref<32x32xf32, #tpu.memory_space<vmem>>, %arg14: memref<1x32xf32, #tpu.memory_space<vmem>>, %arg15: memref<1x1xf32, #tpu.memory_space<vmem>>, %arg16: memref<1x1xf32, #tpu.memory_space<vmem>>, %arg17: memref<4x4x48xf32, #tpu.memory_space<vmem>>, %arg18: memref<4x32xf32, #tpu.memory_space<vmem>>, %arg19: memref<4x32xf32, #tpu.memory_space<vmem>>, %arg20: memref<4x64xf32, #tpu.memory_space<vmem>>, %arg21: memref<4x8xf32, #tpu.memory_space<vmem>>, %arg22: memref<4x16xf32, #tpu.memory_space<vmem>>) attributes {dimension_semantics = [#tpu.dimension_semantics<arbitrary>], iteration_bounds = array<i64: 2>, scalar_prefetch = 0 : i64, scratch_operands = 5 : i64, tpu.core_type = #tpu.core_type<tc>, window_params = [{transform_indices = @transform_0, window_bounds = array<i64: 4, 4, 16>}, {transform_indices = @transform_1, window_bounds = array<i64: 4, 4, 8>}, {pipeline_mode = #tpu.pipeline_mode<synchronous>, transform_indices = @transform_2, window_bounds = array<i64: 32, 160>}, {pipeline_mode = #tpu.pipeline_mode<synchronous>, transform_indices = @transform_3, window_bounds = array<i64: 16, 128>}, {pipeline_mode = #tpu.pipeline_mode<synchronous>, transform_indices = @transform_4, window_bounds = array<i64: 8, 64>}, {pipeline_mode = #tpu.pipeline_mode<synchronous>, transform_indices = @transform_5, window_bounds = array<i64: 1, 32>}, {pipeline_mode = #tpu.pipeline_mode<synchronous>, transform_indices = @transform_6, window_bounds = array<i64: 1, 32>}, {pipeline_mode = #tpu.pipeline_mode<synchronous>, transform_indices = @transform_7, window_bounds = array<i64: 1, 32>}, {pipeline_mode = #tpu.pipeline_mode<synchronous>, transform_indices = @transform_8, window_bounds = array<i64: 32, 16>}, {pipeline_mode = #tpu.pipeline_mode<synchronous>, transform_indices = @transform_9, window_bounds = array<i64: 1, 16>}, {pipeline_mode = #tpu.pipeline_mode<synchronous>, transform_indices = @transform_10, window_bounds = array<i64: 32, 16>}, {pipeline_mode = #tpu.pipeline_mode<synchronous>, transform_indices = @transform_11, window_bounds = array<i64: 1, 16>}, {pipeline_mode = #tpu.pipeline_mode<synchronous>, transform_indices = @transform_12, window_bounds = array<i64: 32, 32>}, {pipeline_mode = #tpu.pipeline_mode<synchronous>, transform_indices = @transform_13, window_bounds = array<i64: 1, 32>}, {pipeline_mode = #tpu.pipeline_mode<synchronous>, transform_indices = @transform_14, window_bounds = array<i64: 1, 1>}, {pipeline_mode = #tpu.pipeline_mode<synchronous>, transform_indices = @transform_15, window_bounds = array<i64: 1, 1>}, {transform_indices = @transform_16, window_bounds = array<i64: 4, 4, 48>}]} {
    %c0_i32 = arith.constant 0 : i32
    %0 = arith.cmpi eq, %arg0, %c0_i32 : i32
    %1 = arith.extui %0 : i1 to i32
    %c0_i32_0 = arith.constant 0 : i32
    %2 = arith.cmpi ne, %1, %c0_i32_0 : i32
    scf.if %2 {
      %cst_165 = arith.constant 0.000000e+00 : f32
      %480 = vector.broadcast %cst_165 : f32 to vector<4x32xf32>
      %c0_166 = arith.constant 0 : index
      %c0_167 = arith.constant 0 : index
      %481 = vector.load %arg18[%c0_166, %c0_167] : memref<4x32xf32, #tpu.memory_space<vmem>>, vector<4x32xf32>
      tpu.vector_store %arg18[%c0_166, %c0_167], %480 {strides = array<i32>} : memref<4x32xf32, #tpu.memory_space<vmem>>, vector<4x32xf32>,
      %cst_168 = arith.constant 0.000000e+00 : f32
      %482 = vector.broadcast %cst_168 : f32 to vector<4x32xf32>
      %c0_169 = arith.constant 0 : index
      %c0_170 = arith.constant 0 : index
      %483 = vector.load %arg19[%c0_169, %c0_170] : memref<4x32xf32, #tpu.memory_space<vmem>>, vector<4x32xf32>
      tpu.vector_store %arg19[%c0_169, %c0_170], %482 {strides = array<i32>} : memref<4x32xf32, #tpu.memory_space<vmem>>, vector<4x32xf32>,
      %cst_171 = arith.constant 0.000000e+00 : f32
      %484 = vector.broadcast %cst_171 : f32 to vector<4x64xf32>
      %c0_172 = arith.constant 0 : index
      %c0_173 = arith.constant 0 : index
      %485 = vector.load %arg20[%c0_172, %c0_173] : memref<4x64xf32, #tpu.memory_space<vmem>>, vector<4x64xf32>
      tpu.vector_store %arg20[%c0_172, %c0_173], %484 {strides = array<i32>} : memref<4x64xf32, #tpu.memory_space<vmem>>, vector<4x64xf32>,
      %cst_174 = arith.constant 0.000000e+00 : f32
      %486 = vector.broadcast %cst_174 : f32 to vector<4x8xf32>
      %c0_175 = arith.constant 0 : index
      %c0_176 = arith.constant 0 : index
      %487 = vector.load %arg21[%c0_175, %c0_176] : memref<4x8xf32, #tpu.memory_space<vmem>>, vector<4x8xf32>
      tpu.vector_store %arg21[%c0_175, %c0_176], %486 {strides = array<i32>} : memref<4x8xf32, #tpu.memory_space<vmem>>, vector<4x8xf32>,
      %cst_177 = arith.constant 0.000000e+00 : f32
      %488 = vector.broadcast %cst_177 : f32 to vector<4x16xf32>
      %c0_178 = arith.constant 0 : index
      %c0_179 = arith.constant 0 : index
      %489 = vector.load %arg22[%c0_178, %c0_179] : memref<4x16xf32, #tpu.memory_space<vmem>>, vector<4x16xf32>
      tpu.vector_store %arg22[%c0_178, %c0_179], %488 {strides = array<i32>} : memref<4x16xf32, #tpu.memory_space<vmem>>, vector<4x16xf32>,
    } else {
    }
    %c0 = arith.constant 0 : index
    %c0_1 = arith.constant 0 : index
    %3 = vector.load %arg3[%c0, %c0_1] : memref<32x160xf32, #tpu.memory_space<vmem>>, vector<32x160xf32>
    %c0_2 = arith.constant 0 : index
    %c0_3 = arith.constant 0 : index
    %4 = vector.load %arg4[%c0_2, %c0_3] : memref<16x128xf32, #tpu.memory_space<vmem>>, vector<16x128xf32>
    %c0_4 = arith.constant 0 : index
    %c0_5 = arith.constant 0 : index
    %5 = vector.load %arg5[%c0_4, %c0_5] : memref<8x64xf32, #tpu.memory_space<vmem>>, vector<8x64xf32>
    %c0_6 = arith.constant 0 : index
    %c0_7 = arith.constant 0 : index
    %6 = vector.load %arg9[%c0_6, %c0_7] : memref<32x16xf32, #tpu.memory_space<vmem>>, vector<32x16xf32>
    %c0_8 = arith.constant 0 : index
    %c0_9 = arith.constant 0 : index
    %7 = vector.load %arg11[%c0_8, %c0_9] : memref<32x16xf32, #tpu.memory_space<vmem>>, vector<32x16xf32>
    %c0_10 = arith.constant 0 : index
    %c0_11 = arith.constant 0 : index
    %8 = vector.load %arg13[%c0_10, %c0_11] : memref<32x32xf32, #tpu.memory_space<vmem>>, vector<32x32xf32>
    %c0_12 = arith.constant 0 : index
    %c0_13 = arith.constant 0 : index
    %9 = vector.load %arg6[%c0_12, %c0_13] : memref<1x32xf32, #tpu.memory_space<vmem>>, vector<1x32xf32>
    %10 = vector.shape_cast %9 : vector<1x32xf32> to vector<1x32xf32>
    %11 = vector.broadcast %10 : vector<1x32xf32> to vector<4x32xf32>
    %c0_14 = arith.constant 0 : index
    %c0_15 = arith.constant 0 : index
    %12 = vector.load %arg7[%c0_14, %c0_15] : memref<1x32xf32, #tpu.memory_space<vmem>>, vector<1x32xf32>
    %13 = vector.shape_cast %12 : vector<1x32xf32> to vector<1x32xf32>
    %14 = vector.broadcast %13 : vector<1x32xf32> to vector<4x32xf32>
    %c0_16 = arith.constant 0 : index
    %c0_17 = arith.constant 0 : index
    %15 = vector.load %arg8[%c0_16, %c0_17] : memref<1x32xf32, #tpu.memory_space<vmem>>, vector<1x32xf32>
    %16 = vector.shape_cast %15 : vector<1x32xf32> to vector<1x32xf32>
    %17 = vector.broadcast %16 : vector<1x32xf32> to vector<4x32xf32>
    %c0_18 = arith.constant 0 : index
    %c0_19 = arith.constant 0 : index
    %18 = vector.load %arg10[%c0_18, %c0_19] : memref<1x16xf32, #tpu.memory_space<vmem>>, vector<1x16xf32>
    %19 = vector.shape_cast %18 : vector<1x16xf32> to vector<1x16xf32>
    %20 = vector.broadcast %19 : vector<1x16xf32> to vector<4x16xf32>
    %c0_20 = arith.constant 0 : index
    %c0_21 = arith.constant 0 : index
    %21 = vector.load %arg12[%c0_20, %c0_21] : memref<1x16xf32, #tpu.memory_space<vmem>>, vector<1x16xf32>
    %22 = vector.shape_cast %21 : vector<1x16xf32> to vector<1x16xf32>
    %23 = vector.broadcast %22 : vector<1x16xf32> to vector<4x16xf32>
    %c0_22 = arith.constant 0 : index
    %c0_23 = arith.constant 0 : index
    %24 = vector.load %arg14[%c0_22, %c0_23] : memref<1x32xf32, #tpu.memory_space<vmem>>, vector<1x32xf32>
    %25 = vector.shape_cast %24 : vector<1x32xf32> to vector<1x32xf32>
    %26 = vector.broadcast %25 : vector<1x32xf32> to vector<4x32xf32>
    %c0_24 = arith.constant 0 : index
    %c0_25 = arith.constant 0 : index
    %27 = vector.load %arg18[%c0_24, %c0_25] : memref<4x32xf32, #tpu.memory_space<vmem>>, vector<4x32xf32>
    %c0_26 = arith.constant 0 : index
    %c0_27 = arith.constant 0 : index
    %28 = vector.load %arg19[%c0_26, %c0_27] : memref<4x32xf32, #tpu.memory_space<vmem>>, vector<4x32xf32>
    %c0_28 = arith.constant 0 : index
    %c0_29 = arith.constant 0 : index
    %29 = vector.load %arg20[%c0_28, %c0_29] : memref<4x64xf32, #tpu.memory_space<vmem>>, vector<4x64xf32>
    %c0_30 = arith.constant 0 : index
    %c0_31 = arith.constant 0 : index
    %30 = vector.load %arg21[%c0_30, %c0_31] : memref<4x8xf32, #tpu.memory_space<vmem>>, vector<4x8xf32>
    %c0_32 = arith.constant 0 : index
    %c0_33 = arith.constant 0 : index
    %31 = vector.load %arg22[%c0_32, %c0_33] : memref<4x16xf32, #tpu.memory_space<vmem>>, vector<4x16xf32>
    %c0_34 = arith.constant 0 : index
    %c0_35 = arith.constant 0 : index
    %c0_36 = arith.constant 0 : index
    %32 = vector.load %arg1[%c0_34, %c0_35, %c0_36] : memref<4x4x16xf32, #tpu.memory_space<vmem>>, vector<1x4x16xf32>
    %33 = vector.shape_cast %32 : vector<1x4x16xf32> to vector<4x16xf32>
    %c0_37 = arith.constant 0 : index
    %c0_38 = arith.constant 0 : index
    %c0_39 = arith.constant 0 : index
    %34 = vector.load %arg2[%c0_37, %c0_38, %c0_39] : memref<4x4x8xf32, #tpu.memory_space<vmem>>, vector<1x4x8xf32>
    %35 = vector.shape_cast %34 : vector<1x4x8xf32> to vector<4x8xf32>
    %cst = arith.constant dense<0.000000e+00> : vector<4x160xf32>
    %36 = tpu.matmul %27, %3, %cst {dimension_numbers = #tpu.dot_dimension_numbers<[1], [0], [0], [1], [0, 0, 1, 1], [], []>} : vector<4x32xf32>, vector<32x160xf32>, vector<4x160xf32> -> vector<4x160xf32>
    %cst_40 = arith.constant dense<0.000000e+00> : vector<4x128xf32>
    %37 = tpu.matmul %33, %4, %cst_40 {dimension_numbers = #tpu.dot_dimension_numbers<[1], [0], [0], [1], [0, 0, 1, 1], [], []>} : vector<4x16xf32>, vector<16x128xf32>, vector<4x128xf32> -> vector<4x128xf32>
    %38 = vector.extract_strided_slice %29 {offsets = [0, 0], sizes = [4, 32], strides = [1, 1]} : vector<4x64xf32> to vector<4x32xf32>
    %39 = vector.extract_strided_slice %36 {offsets = [0, 0], sizes = [4, 32], strides = [1, 1]} : vector<4x160xf32> to vector<4x32xf32>
    %40 = arith.addf %38, %39 : vector<4x32xf32>
    %41 = arith.addf %40, %11 : vector<4x32xf32>
    %cst_41 = arith.constant 0.000000e+00 : f32
    %42 = vector.broadcast %cst_41 : f32 to vector<4x32xf32>
    %43 = arith.maximumf %41, %42 : vector<4x32xf32>
    %cst_42 = arith.constant dense<0.000000e+00> : vector<4x16xf32>
    %44 = tpu.matmul %43, %6, %cst_42 {dimension_numbers = #tpu.dot_dimension_numbers<[1], [0], [0], [1], [0, 0, 1, 1], [], []>} : vector<4x32xf32>, vector<32x16xf32>, vector<4x16xf32> -> vector<4x16xf32>
    %45 = arith.addf %44, %20 : vector<4x16xf32>
    %46 = vector.extract_strided_slice %45 {offsets = [0, 0], sizes = [4, 8], strides = [1, 1]} : vector<4x16xf32> to vector<4x8xf32>
    %47 = vector.extract_strided_slice %45 {offsets = [0, 8], sizes = [4, 8], strides = [1, 1]} : vector<4x16xf32> to vector<4x8xf32>
    %cst_43 = arith.constant 2.000000e+01 : f32
    %48 = vector.broadcast %cst_43 : f32 to vector<4x8xf32>
    %49 = arith.cmpf ogt, %47, %48 : vector<4x8xf32>
    %cst_44 = arith.constant 2.000000e+01 : f32
    %50 = vector.broadcast %cst_44 : f32 to vector<4x8xf32>
    %51 = arith.minimumf %47, %50 : vector<4x8xf32>
    %52 = math.exp %51 : vector<4x8xf32>
    %53 = math.log1p %52 : vector<4x8xf32>
    %54 = arith.select %49, %47, %53 : vector<4x8xi1>, vector<4x8xf32>
    %55 = vector.extract_strided_slice %37 {offsets = [0, 0], sizes = [4, 32], strides = [1, 1]} : vector<4x128xf32> to vector<4x32xf32>
    %56 = vector.extract_strided_slice %36 {offsets = [0, 32], sizes = [4, 32], strides = [1, 1]} : vector<4x160xf32> to vector<4x32xf32>
    %57 = arith.addf %55, %56 : vector<4x32xf32>
    %58 = arith.addf %57, %14 : vector<4x32xf32>
    %cst_45 = arith.constant 0.000000e+00 : f32
    %59 = vector.broadcast %cst_45 : f32 to vector<4x32xf32>
    %60 = arith.maximumf %58, %59 : vector<4x32xf32>
    %cst_46 = arith.constant dense<0.000000e+00> : vector<4x16xf32>
    %61 = tpu.matmul %60, %7, %cst_46 {dimension_numbers = #tpu.dot_dimension_numbers<[1], [0], [0], [1], [0, 0, 1, 1], [], []>} : vector<4x32xf32>, vector<32x16xf32>, vector<4x16xf32> -> vector<4x16xf32>
    %62 = arith.addf %61, %23 : vector<4x16xf32>
    %63 = vector.extract_strided_slice %62 {offsets = [0, 0], sizes = [4, 8], strides = [1, 1]} : vector<4x16xf32> to vector<4x8xf32>
    %64 = vector.extract_strided_slice %62 {offsets = [0, 8], sizes = [4, 8], strides = [1, 1]} : vector<4x16xf32> to vector<4x8xf32>
    %cst_47 = arith.constant 2.000000e+01 : f32
    %65 = vector.broadcast %cst_47 : f32 to vector<4x8xf32>
    %66 = arith.cmpf ogt, %64, %65 : vector<4x8xf32>
    %cst_48 = arith.constant 2.000000e+01 : f32
    %67 = vector.broadcast %cst_48 : f32 to vector<4x8xf32>
    %68 = arith.minimumf %64, %67 : vector<4x8xf32>
    %69 = math.exp %68 : vector<4x8xf32>
    %70 = math.log1p %69 : vector<4x8xf32>
    %71 = arith.select %66, %64, %70 : vector<4x8xi1>, vector<4x8xf32>
    %72 = arith.mulf %35, %71 : vector<4x8xf32>
    %73 = arith.addf %72, %63 : vector<4x8xf32>
    %cst_49 = arith.constant dense<0.000000e+00> : vector<4x64xf32>
    %74 = tpu.matmul %73, %5, %cst_49 {dimension_numbers = #tpu.dot_dimension_numbers<[1], [0], [0], [1], [0, 0, 1, 1], [], []>} : vector<4x8xf32>, vector<8x64xf32>, vector<4x64xf32> -> vector<4x64xf32>
    %75 = vector.extract_strided_slice %29 {offsets = [0, 32], sizes = [4, 32], strides = [1, 1]} : vector<4x64xf32> to vector<4x32xf32>
    %76 = vector.extract_strided_slice %74 {offsets = [0, 0], sizes = [4, 32], strides = [1, 1]} : vector<4x64xf32> to vector<4x32xf32>
    %77 = arith.addf %75, %76 : vector<4x32xf32>
    %78 = vector.extract_strided_slice %36 {offsets = [0, 64], sizes = [4, 32], strides = [1, 1]} : vector<4x160xf32> to vector<4x32xf32>
    %79 = arith.addf %77, %78 : vector<4x32xf32>
    %80 = arith.addf %79, %28 : vector<4x32xf32>
    %81 = arith.addf %80, %17 : vector<4x32xf32>
    %cst_50 = arith.constant 0.000000e+00 : f32
    %82 = vector.broadcast %cst_50 : f32 to vector<4x32xf32>
    %83 = arith.maximumf %81, %82 : vector<4x32xf32>
    %cst_51 = arith.constant dense<0.000000e+00> : vector<4x32xf32>
    %84 = tpu.matmul %83, %8, %cst_51 {dimension_numbers = #tpu.dot_dimension_numbers<[1], [0], [0], [1], [0, 0, 1, 1], [], []>} : vector<4x32xf32>, vector<32x32xf32>, vector<4x32xf32> -> vector<4x32xf32>
    %85 = arith.addf %84, %26 : vector<4x32xf32>
    %86 = vector.extract_strided_slice %85 {offsets = [0, 0], sizes = [4, 16], strides = [1, 1]} : vector<4x32xf32> to vector<4x16xf32>
    %87 = arith.negf %86 : vector<4x16xf32>
    %88 = math.exp %87 : vector<4x16xf32>
    %cst_52 = arith.constant 1.000000e+00 : f32
    %89 = vector.broadcast %cst_52 : f32 to vector<4x16xf32>
    %90 = arith.addf %89, %88 : vector<4x16xf32>
    %91 = arith.divf %89, %90 : vector<4x16xf32>
    %92 = vector.extract_strided_slice %85 {offsets = [0, 16], sizes = [4, 16], strides = [1, 1]} : vector<4x32xf32> to vector<4x16xf32>
    %cst_53 = arith.constant dense<0xFF800000> : vector<4xf32>
    %93 = vector.multi_reduction <maximumf>, %92, %cst_53 [1] : vector<4x16xf32> to vector<4xf32>
    %94 = vector.shape_cast %93 : vector<4xf32> to vector<4x1xf32>
    %95 = vector.broadcast %94 : vector<4x1xf32> to vector<4x16xf32>
    %96 = arith.subf %92, %95 : vector<4x16xf32>
    %97 = math.exp %96 : vector<4x16xf32>
    %cst_54 = arith.constant dense<0.000000e+00> : vector<4xf32>
    %98 = vector.multi_reduction <add>, %97, %cst_54 [1] : vector<4x16xf32> to vector<4xf32>
    %99 = vector.shape_cast %98 : vector<4xf32> to vector<4x1xf32>
    %100 = tpu.reciprocal %99 {approx = true} : vector<4x1xf32> -> vector<4x1xf32>
    %101 = vector.broadcast %100 : vector<4x1xf32> to vector<4x16xf32>
    %102 = arith.mulf %97, %101 : vector<4x16xf32>
    %103 = vector.extract_strided_slice %37 {offsets = [0, 32], sizes = [4, 32], strides = [1, 1]} : vector<4x128xf32> to vector<4x32xf32>
    %104 = vector.extract_strided_slice %74 {offsets = [0, 32], sizes = [4, 32], strides = [1, 1]} : vector<4x64xf32> to vector<4x32xf32>
    %105 = arith.addf %103, %104 : vector<4x32xf32>
    %106 = vector.extract_strided_slice %36 {offsets = [0, 128], sizes = [4, 32], strides = [1, 1]} : vector<4x160xf32> to vector<4x32xf32>
    %107 = arith.addf %105, %106 : vector<4x32xf32>
    %108 = math.tanh %107 : vector<4x32xf32>
    %109 = vector.extract_strided_slice %36 {offsets = [0, 96], sizes = [4, 32], strides = [1, 1]} : vector<4x160xf32> to vector<4x32xf32>
    %110 = vector.extract_strided_slice %37 {offsets = [0, 64], sizes = [4, 64], strides = [1, 1]} : vector<4x128xf32> to vector<4x64xf32>
    %cst_55 = arith.constant 1.000000e+00 : f32
    %111 = vector.broadcast %cst_55 : f32 to vector<4x8xf32>
    %112 = arith.divf %111, %54 : vector<4x8xf32>
    %113 = arith.mulf %71, %112 : vector<4x8xf32>
    %114 = arith.subf %63, %46 : vector<4x8xf32>
    %115 = arith.mulf %114, %112 : vector<4x8xf32>
    %116 = arith.mulf %113, %113 : vector<4x8xf32>
    %117 = arith.mulf %115, %115 : vector<4x8xf32>
    %118 = arith.addf %116, %117 : vector<4x8xf32>
    %cst_56 = arith.constant 1.000000e+00 : f32
    %119 = vector.broadcast %cst_56 : f32 to vector<4x8xf32>
    %120 = arith.subf %118, %119 : vector<4x8xf32>
    %121 = math.log %113 : vector<4x8xf32>
    %cst_57 = arith.constant 2.000000e+00 : f32
    %122 = vector.broadcast %cst_57 : f32 to vector<4x8xf32>
    %123 = arith.mulf %122, %121 : vector<4x8xf32>
    %124 = arith.subf %120, %123 : vector<4x8xf32>
    %cst_58 = arith.constant 5.000000e-01 : f32
    %125 = vector.broadcast %cst_58 : f32 to vector<4x8xf32>
    %126 = arith.mulf %125, %124 : vector<4x8xf32>
    %127 = arith.addf %30, %126 : vector<4x8xf32>
    %cst_59 = arith.constant 2.000000e+01 : f32
    %128 = vector.broadcast %cst_59 : f32 to vector<4x16xf32>
    %129 = arith.cmpf ogt, %86, %128 : vector<4x16xf32>
    %cst_60 = arith.constant 2.000000e+01 : f32
    %130 = vector.broadcast %cst_60 : f32 to vector<4x16xf32>
    %131 = arith.minimumf %86, %130 : vector<4x16xf32>
    %132 = math.exp %131 : vector<4x16xf32>
    %133 = math.log1p %132 : vector<4x16xf32>
    %134 = arith.select %129, %86, %133 : vector<4x16xi1>, vector<4x16xf32>
    %135 = arith.mulf %33, %86 : vector<4x16xf32>
    %136 = arith.subf %134, %135 : vector<4x16xf32>
    %137 = arith.addf %31, %136 : vector<4x16xf32>
    %138 = tpu.concatenate %63, %71, %91, %102 in 1 : vector<4x8xf32>, vector<4x8xf32>, vector<4x16xf32>, vector<4x16xf32> -> vector<4x48xf32>
    %c0_61 = arith.constant 0 : index
    %c0_62 = arith.constant 0 : index
    %c0_63 = arith.constant 0 : index
    %139 = vector.load %arg17[%c0_61, %c0_62, %c0_63] : memref<4x4x48xf32, #tpu.memory_space<vmem>>, vector<1x4x48xf32>
    %140 = vector.shape_cast %139 : vector<1x4x48xf32> to vector<4x48xf32>
    %141 = vector.shape_cast %138 : vector<4x48xf32> to vector<1x4x48xf32>
    tpu.vector_store %arg17[%c0_61, %c0_62, %c0_63], %141 {strides = array<i32>} : memref<4x4x48xf32, #tpu.memory_space<vmem>>, vector<1x4x48xf32>,
    %c1 = arith.constant 1 : index
    %c0_64 = arith.constant 0 : index
    %c0_65 = arith.constant 0 : index
    %142 = vector.load %arg1[%c1, %c0_64, %c0_65] : memref<4x4x16xf32, #tpu.memory_space<vmem>>, vector<1x4x16xf32>
    %143 = vector.shape_cast %142 : vector<1x4x16xf32> to vector<4x16xf32>
    %c1_66 = arith.constant 1 : index
    %c0_67 = arith.constant 0 : index
    %c0_68 = arith.constant 0 : index
    %144 = vector.load %arg2[%c1_66, %c0_67, %c0_68] : memref<4x4x8xf32, #tpu.memory_space<vmem>>, vector<1x4x8xf32>
    %145 = vector.shape_cast %144 : vector<1x4x8xf32> to vector<4x8xf32>
    %cst_69 = arith.constant dense<0.000000e+00> : vector<4x160xf32>
    %146 = tpu.matmul %108, %3, %cst_69 {dimension_numbers = #tpu.dot_dimension_numbers<[1], [0], [0], [1], [0, 0, 1, 1], [], []>} : vector<4x32xf32>, vector<32x160xf32>, vector<4x160xf32> -> vector<4x160xf32>
    %cst_70 = arith.constant dense<0.000000e+00> : vector<4x128xf32>
    %147 = tpu.matmul %143, %4, %cst_70 {dimension_numbers = #tpu.dot_dimension_numbers<[1], [0], [0], [1], [0, 0, 1, 1], [], []>} : vector<4x16xf32>, vector<16x128xf32>, vector<4x128xf32> -> vector<4x128xf32>
    %148 = vector.extract_strided_slice %110 {offsets = [0, 0], sizes = [4, 32], strides = [1, 1]} : vector<4x64xf32> to vector<4x32xf32>
    %149 = vector.extract_strided_slice %146 {offsets = [0, 0], sizes = [4, 32], strides = [1, 1]} : vector<4x160xf32> to vector<4x32xf32>
    %150 = arith.addf %148, %149 : vector<4x32xf32>
    %151 = arith.addf %150, %11 : vector<4x32xf32>
    %cst_71 = arith.constant 0.000000e+00 : f32
    %152 = vector.broadcast %cst_71 : f32 to vector<4x32xf32>
    %153 = arith.maximumf %151, %152 : vector<4x32xf32>
    %cst_72 = arith.constant dense<0.000000e+00> : vector<4x16xf32>
    %154 = tpu.matmul %153, %6, %cst_72 {dimension_numbers = #tpu.dot_dimension_numbers<[1], [0], [0], [1], [0, 0, 1, 1], [], []>} : vector<4x32xf32>, vector<32x16xf32>, vector<4x16xf32> -> vector<4x16xf32>
    %155 = arith.addf %154, %20 : vector<4x16xf32>
    %156 = vector.extract_strided_slice %155 {offsets = [0, 0], sizes = [4, 8], strides = [1, 1]} : vector<4x16xf32> to vector<4x8xf32>
    %157 = vector.extract_strided_slice %155 {offsets = [0, 8], sizes = [4, 8], strides = [1, 1]} : vector<4x16xf32> to vector<4x8xf32>
    %cst_73 = arith.constant 2.000000e+01 : f32
    %158 = vector.broadcast %cst_73 : f32 to vector<4x8xf32>
    %159 = arith.cmpf ogt, %157, %158 : vector<4x8xf32>
    %cst_74 = arith.constant 2.000000e+01 : f32
    %160 = vector.broadcast %cst_74 : f32 to vector<4x8xf32>
    %161 = arith.minimumf %157, %160 : vector<4x8xf32>
    %162 = math.exp %161 : vector<4x8xf32>
    %163 = math.log1p %162 : vector<4x8xf32>
    %164 = arith.select %159, %157, %163 : vector<4x8xi1>, vector<4x8xf32>
    %165 = vector.extract_strided_slice %147 {offsets = [0, 0], sizes = [4, 32], strides = [1, 1]} : vector<4x128xf32> to vector<4x32xf32>
    %166 = vector.extract_strided_slice %146 {offsets = [0, 32], sizes = [4, 32], strides = [1, 1]} : vector<4x160xf32> to vector<4x32xf32>
    %167 = arith.addf %165, %166 : vector<4x32xf32>
    %168 = arith.addf %167, %14 : vector<4x32xf32>
    %cst_75 = arith.constant 0.000000e+00 : f32
    %169 = vector.broadcast %cst_75 : f32 to vector<4x32xf32>
    %170 = arith.maximumf %168, %169 : vector<4x32xf32>
    %cst_76 = arith.constant dense<0.000000e+00> : vector<4x16xf32>
    %171 = tpu.matmul %170, %7, %cst_76 {dimension_numbers = #tpu.dot_dimension_numbers<[1], [0], [0], [1], [0, 0, 1, 1], [], []>} : vector<4x32xf32>, vector<32x16xf32>, vector<4x16xf32> -> vector<4x16xf32>
    %172 = arith.addf %171, %23 : vector<4x16xf32>
    %173 = vector.extract_strided_slice %172 {offsets = [0, 0], sizes = [4, 8], strides = [1, 1]} : vector<4x16xf32> to vector<4x8xf32>
    %174 = vector.extract_strided_slice %172 {offsets = [0, 8], sizes = [4, 8], strides = [1, 1]} : vector<4x16xf32> to vector<4x8xf32>
    %cst_77 = arith.constant 2.000000e+01 : f32
    %175 = vector.broadcast %cst_77 : f32 to vector<4x8xf32>
    %176 = arith.cmpf ogt, %174, %175 : vector<4x8xf32>
    %cst_78 = arith.constant 2.000000e+01 : f32
    %177 = vector.broadcast %cst_78 : f32 to vector<4x8xf32>
    %178 = arith.minimumf %174, %177 : vector<4x8xf32>
    %179 = math.exp %178 : vector<4x8xf32>
    %180 = math.log1p %179 : vector<4x8xf32>
    %181 = arith.select %176, %174, %180 : vector<4x8xi1>, vector<4x8xf32>
    %182 = arith.mulf %145, %181 : vector<4x8xf32>
    %183 = arith.addf %182, %173 : vector<4x8xf32>
    %cst_79 = arith.constant dense<0.000000e+00> : vector<4x64xf32>
    %184 = tpu.matmul %183, %5, %cst_79 {dimension_numbers = #tpu.dot_dimension_numbers<[1], [0], [0], [1], [0, 0, 1, 1], [], []>} : vector<4x8xf32>, vector<8x64xf32>, vector<4x64xf32> -> vector<4x64xf32>
    %185 = vector.extract_strided_slice %110 {offsets = [0, 32], sizes = [4, 32], strides = [1, 1]} : vector<4x64xf32> to vector<4x32xf32>
    %186 = vector.extract_strided_slice %184 {offsets = [0, 0], sizes = [4, 32], strides = [1, 1]} : vector<4x64xf32> to vector<4x32xf32>
    %187 = arith.addf %185, %186 : vector<4x32xf32>
    %188 = vector.extract_strided_slice %146 {offsets = [0, 64], sizes = [4, 32], strides = [1, 1]} : vector<4x160xf32> to vector<4x32xf32>
    %189 = arith.addf %187, %188 : vector<4x32xf32>
    %190 = arith.addf %189, %109 : vector<4x32xf32>
    %191 = arith.addf %190, %17 : vector<4x32xf32>
    %cst_80 = arith.constant 0.000000e+00 : f32
    %192 = vector.broadcast %cst_80 : f32 to vector<4x32xf32>
    %193 = arith.maximumf %191, %192 : vector<4x32xf32>
    %cst_81 = arith.constant dense<0.000000e+00> : vector<4x32xf32>
    %194 = tpu.matmul %193, %8, %cst_81 {dimension_numbers = #tpu.dot_dimension_numbers<[1], [0], [0], [1], [0, 0, 1, 1], [], []>} : vector<4x32xf32>, vector<32x32xf32>, vector<4x32xf32> -> vector<4x32xf32>
    %195 = arith.addf %194, %26 : vector<4x32xf32>
    %196 = vector.extract_strided_slice %195 {offsets = [0, 0], sizes = [4, 16], strides = [1, 1]} : vector<4x32xf32> to vector<4x16xf32>
    %197 = arith.negf %196 : vector<4x16xf32>
    %198 = math.exp %197 : vector<4x16xf32>
    %cst_82 = arith.constant 1.000000e+00 : f32
    %199 = vector.broadcast %cst_82 : f32 to vector<4x16xf32>
    %200 = arith.addf %199, %198 : vector<4x16xf32>
    %201 = arith.divf %199, %200 : vector<4x16xf32>
    %202 = vector.extract_strided_slice %195 {offsets = [0, 16], sizes = [4, 16], strides = [1, 1]} : vector<4x32xf32> to vector<4x16xf32>
    %cst_83 = arith.constant dense<0xFF800000> : vector<4xf32>
    %203 = vector.multi_reduction <maximumf>, %202, %cst_83 [1] : vector<4x16xf32> to vector<4xf32>
    %204 = vector.shape_cast %203 : vector<4xf32> to vector<4x1xf32>
    %205 = vector.broadcast %204 : vector<4x1xf32> to vector<4x16xf32>
    %206 = arith.subf %202, %205 : vector<4x16xf32>
    %207 = math.exp %206 : vector<4x16xf32>
    %cst_84 = arith.constant dense<0.000000e+00> : vector<4xf32>
    %208 = vector.multi_reduction <add>, %207, %cst_84 [1] : vector<4x16xf32> to vector<4xf32>
    %209 = vector.shape_cast %208 : vector<4xf32> to vector<4x1xf32>
    %210 = tpu.reciprocal %209 {approx = true} : vector<4x1xf32> -> vector<4x1xf32>
    %211 = vector.broadcast %210 : vector<4x1xf32> to vector<4x16xf32>
    %212 = arith.mulf %207, %211 : vector<4x16xf32>
    %213 = vector.extract_strided_slice %147 {offsets = [0, 32], sizes = [4, 32], strides = [1, 1]} : vector<4x128xf32> to vector<4x32xf32>
    %214 = vector.extract_strided_slice %184 {offsets = [0, 32], sizes = [4, 32], strides = [1, 1]} : vector<4x64xf32> to vector<4x32xf32>
    %215 = arith.addf %213, %214 : vector<4x32xf32>
    %216 = vector.extract_strided_slice %146 {offsets = [0, 128], sizes = [4, 32], strides = [1, 1]} : vector<4x160xf32> to vector<4x32xf32>
    %217 = arith.addf %215, %216 : vector<4x32xf32>
    %218 = math.tanh %217 : vector<4x32xf32>
    %219 = vector.extract_strided_slice %146 {offsets = [0, 96], sizes = [4, 32], strides = [1, 1]} : vector<4x160xf32> to vector<4x32xf32>
    %220 = vector.extract_strided_slice %147 {offsets = [0, 64], sizes = [4, 64], strides = [1, 1]} : vector<4x128xf32> to vector<4x64xf32>
    %cst_85 = arith.constant 1.000000e+00 : f32
    %221 = vector.broadcast %cst_85 : f32 to vector<4x8xf32>
    %222 = arith.divf %221, %164 : vector<4x8xf32>
    %223 = arith.mulf %181, %222 : vector<4x8xf32>
    %224 = arith.subf %173, %156 : vector<4x8xf32>
    %225 = arith.mulf %224, %222 : vector<4x8xf32>
    %226 = arith.mulf %223, %223 : vector<4x8xf32>
    %227 = arith.mulf %225, %225 : vector<4x8xf32>
    %228 = arith.addf %226, %227 : vector<4x8xf32>
    %cst_86 = arith.constant 1.000000e+00 : f32
    %229 = vector.broadcast %cst_86 : f32 to vector<4x8xf32>
    %230 = arith.subf %228, %229 : vector<4x8xf32>
    %231 = math.log %223 : vector<4x8xf32>
    %cst_87 = arith.constant 2.000000e+00 : f32
    %232 = vector.broadcast %cst_87 : f32 to vector<4x8xf32>
    %233 = arith.mulf %232, %231 : vector<4x8xf32>
    %234 = arith.subf %230, %233 : vector<4x8xf32>
    %cst_88 = arith.constant 5.000000e-01 : f32
    %235 = vector.broadcast %cst_88 : f32 to vector<4x8xf32>
    %236 = arith.mulf %235, %234 : vector<4x8xf32>
    %237 = arith.addf %127, %236 : vector<4x8xf32>
    %cst_89 = arith.constant 2.000000e+01 : f32
    %238 = vector.broadcast %cst_89 : f32 to vector<4x16xf32>
    %239 = arith.cmpf ogt, %196, %238 : vector<4x16xf32>
    %cst_90 = arith.constant 2.000000e+01 : f32
    %240 = vector.broadcast %cst_90 : f32 to vector<4x16xf32>
    %241 = arith.minimumf %196, %240 : vector<4x16xf32>
    %242 = math.exp %241 : vector<4x16xf32>
    %243 = math.log1p %242 : vector<4x16xf32>
    %244 = arith.select %239, %196, %243 : vector<4x16xi1>, vector<4x16xf32>
    %245 = arith.mulf %143, %196 : vector<4x16xf32>
    %246 = arith.subf %244, %245 : vector<4x16xf32>
    %247 = arith.addf %137, %246 : vector<4x16xf32>
    %248 = tpu.concatenate %173, %181, %201, %212 in 1 : vector<4x8xf32>, vector<4x8xf32>, vector<4x16xf32>, vector<4x16xf32> -> vector<4x48xf32>
    %c1_91 = arith.constant 1 : index
    %c0_92 = arith.constant 0 : index
    %c0_93 = arith.constant 0 : index
    %249 = vector.load %arg17[%c1_91, %c0_92, %c0_93] : memref<4x4x48xf32, #tpu.memory_space<vmem>>, vector<1x4x48xf32>
    %250 = vector.shape_cast %249 : vector<1x4x48xf32> to vector<4x48xf32>
    %251 = vector.shape_cast %248 : vector<4x48xf32> to vector<1x4x48xf32>
    tpu.vector_store %arg17[%c1_91, %c0_92, %c0_93], %251 {strides = array<i32>} : memref<4x4x48xf32, #tpu.memory_space<vmem>>, vector<1x4x48xf32>,
    %c2 = arith.constant 2 : index
    %c0_94 = arith.constant 0 : index
    %c0_95 = arith.constant 0 : index
    %252 = vector.load %arg1[%c2, %c0_94, %c0_95] : memref<4x4x16xf32, #tpu.memory_space<vmem>>, vector<1x4x16xf32>
    %253 = vector.shape_cast %252 : vector<1x4x16xf32> to vector<4x16xf32>
    %c2_96 = arith.constant 2 : index
    %c0_97 = arith.constant 0 : index
    %c0_98 = arith.constant 0 : index
    %254 = vector.load %arg2[%c2_96, %c0_97, %c0_98] : memref<4x4x8xf32, #tpu.memory_space<vmem>>, vector<1x4x8xf32>
    %255 = vector.shape_cast %254 : vector<1x4x8xf32> to vector<4x8xf32>
    %cst_99 = arith.constant dense<0.000000e+00> : vector<4x160xf32>
    %256 = tpu.matmul %218, %3, %cst_99 {dimension_numbers = #tpu.dot_dimension_numbers<[1], [0], [0], [1], [0, 0, 1, 1], [], []>} : vector<4x32xf32>, vector<32x160xf32>, vector<4x160xf32> -> vector<4x160xf32>
    %cst_100 = arith.constant dense<0.000000e+00> : vector<4x128xf32>
    %257 = tpu.matmul %253, %4, %cst_100 {dimension_numbers = #tpu.dot_dimension_numbers<[1], [0], [0], [1], [0, 0, 1, 1], [], []>} : vector<4x16xf32>, vector<16x128xf32>, vector<4x128xf32> -> vector<4x128xf32>
    %258 = vector.extract_strided_slice %220 {offsets = [0, 0], sizes = [4, 32], strides = [1, 1]} : vector<4x64xf32> to vector<4x32xf32>
    %259 = vector.extract_strided_slice %256 {offsets = [0, 0], sizes = [4, 32], strides = [1, 1]} : vector<4x160xf32> to vector<4x32xf32>
    %260 = arith.addf %258, %259 : vector<4x32xf32>
    %261 = arith.addf %260, %11 : vector<4x32xf32>
    %cst_101 = arith.constant 0.000000e+00 : f32
    %262 = vector.broadcast %cst_101 : f32 to vector<4x32xf32>
    %263 = arith.maximumf %261, %262 : vector<4x32xf32>
    %cst_102 = arith.constant dense<0.000000e+00> : vector<4x16xf32>
    %264 = tpu.matmul %263, %6, %cst_102 {dimension_numbers = #tpu.dot_dimension_numbers<[1], [0], [0], [1], [0, 0, 1, 1], [], []>} : vector<4x32xf32>, vector<32x16xf32>, vector<4x16xf32> -> vector<4x16xf32>
    %265 = arith.addf %264, %20 : vector<4x16xf32>
    %266 = vector.extract_strided_slice %265 {offsets = [0, 0], sizes = [4, 8], strides = [1, 1]} : vector<4x16xf32> to vector<4x8xf32>
    %267 = vector.extract_strided_slice %265 {offsets = [0, 8], sizes = [4, 8], strides = [1, 1]} : vector<4x16xf32> to vector<4x8xf32>
    %cst_103 = arith.constant 2.000000e+01 : f32
    %268 = vector.broadcast %cst_103 : f32 to vector<4x8xf32>
    %269 = arith.cmpf ogt, %267, %268 : vector<4x8xf32>
    %cst_104 = arith.constant 2.000000e+01 : f32
    %270 = vector.broadcast %cst_104 : f32 to vector<4x8xf32>
    %271 = arith.minimumf %267, %270 : vector<4x8xf32>
    %272 = math.exp %271 : vector<4x8xf32>
    %273 = math.log1p %272 : vector<4x8xf32>
    %274 = arith.select %269, %267, %273 : vector<4x8xi1>, vector<4x8xf32>
    %275 = vector.extract_strided_slice %257 {offsets = [0, 0], sizes = [4, 32], strides = [1, 1]} : vector<4x128xf32> to vector<4x32xf32>
    %276 = vector.extract_strided_slice %256 {offsets = [0, 32], sizes = [4, 32], strides = [1, 1]} : vector<4x160xf32> to vector<4x32xf32>
    %277 = arith.addf %275, %276 : vector<4x32xf32>
    %278 = arith.addf %277, %14 : vector<4x32xf32>
    %cst_105 = arith.constant 0.000000e+00 : f32
    %279 = vector.broadcast %cst_105 : f32 to vector<4x32xf32>
    %280 = arith.maximumf %278, %279 : vector<4x32xf32>
    %cst_106 = arith.constant dense<0.000000e+00> : vector<4x16xf32>
    %281 = tpu.matmul %280, %7, %cst_106 {dimension_numbers = #tpu.dot_dimension_numbers<[1], [0], [0], [1], [0, 0, 1, 1], [], []>} : vector<4x32xf32>, vector<32x16xf32>, vector<4x16xf32> -> vector<4x16xf32>
    %282 = arith.addf %281, %23 : vector<4x16xf32>
    %283 = vector.extract_strided_slice %282 {offsets = [0, 0], sizes = [4, 8], strides = [1, 1]} : vector<4x16xf32> to vector<4x8xf32>
    %284 = vector.extract_strided_slice %282 {offsets = [0, 8], sizes = [4, 8], strides = [1, 1]} : vector<4x16xf32> to vector<4x8xf32>
    %cst_107 = arith.constant 2.000000e+01 : f32
    %285 = vector.broadcast %cst_107 : f32 to vector<4x8xf32>
    %286 = arith.cmpf ogt, %284, %285 : vector<4x8xf32>
    %cst_108 = arith.constant 2.000000e+01 : f32
    %287 = vector.broadcast %cst_108 : f32 to vector<4x8xf32>
    %288 = arith.minimumf %284, %287 : vector<4x8xf32>
    %289 = math.exp %288 : vector<4x8xf32>
    %290 = math.log1p %289 : vector<4x8xf32>
    %291 = arith.select %286, %284, %290 : vector<4x8xi1>, vector<4x8xf32>
    %292 = arith.mulf %255, %291 : vector<4x8xf32>
    %293 = arith.addf %292, %283 : vector<4x8xf32>
    %cst_109 = arith.constant dense<0.000000e+00> : vector<4x64xf32>
    %294 = tpu.matmul %293, %5, %cst_109 {dimension_numbers = #tpu.dot_dimension_numbers<[1], [0], [0], [1], [0, 0, 1, 1], [], []>} : vector<4x8xf32>, vector<8x64xf32>, vector<4x64xf32> -> vector<4x64xf32>
    %295 = vector.extract_strided_slice %220 {offsets = [0, 32], sizes = [4, 32], strides = [1, 1]} : vector<4x64xf32> to vector<4x32xf32>
    %296 = vector.extract_strided_slice %294 {offsets = [0, 0], sizes = [4, 32], strides = [1, 1]} : vector<4x64xf32> to vector<4x32xf32>
    %297 = arith.addf %295, %296 : vector<4x32xf32>
    %298 = vector.extract_strided_slice %256 {offsets = [0, 64], sizes = [4, 32], strides = [1, 1]} : vector<4x160xf32> to vector<4x32xf32>
    %299 = arith.addf %297, %298 : vector<4x32xf32>
    %300 = arith.addf %299, %219 : vector<4x32xf32>
    %301 = arith.addf %300, %17 : vector<4x32xf32>
    %cst_110 = arith.constant 0.000000e+00 : f32
    %302 = vector.broadcast %cst_110 : f32 to vector<4x32xf32>
    %303 = arith.maximumf %301, %302 : vector<4x32xf32>
    %cst_111 = arith.constant dense<0.000000e+00> : vector<4x32xf32>
    %304 = tpu.matmul %303, %8, %cst_111 {dimension_numbers = #tpu.dot_dimension_numbers<[1], [0], [0], [1], [0, 0, 1, 1], [], []>} : vector<4x32xf32>, vector<32x32xf32>, vector<4x32xf32> -> vector<4x32xf32>
    %305 = arith.addf %304, %26 : vector<4x32xf32>
    %306 = vector.extract_strided_slice %305 {offsets = [0, 0], sizes = [4, 16], strides = [1, 1]} : vector<4x32xf32> to vector<4x16xf32>
    %307 = arith.negf %306 : vector<4x16xf32>
    %308 = math.exp %307 : vector<4x16xf32>
    %cst_112 = arith.constant 1.000000e+00 : f32
    %309 = vector.broadcast %cst_112 : f32 to vector<4x16xf32>
    %310 = arith.addf %309, %308 : vector<4x16xf32>
    %311 = arith.divf %309, %310 : vector<4x16xf32>
    %312 = vector.extract_strided_slice %305 {offsets = [0, 16], sizes = [4, 16], strides = [1, 1]} : vector<4x32xf32> to vector<4x16xf32>
    %cst_113 = arith.constant dense<0xFF800000> : vector<4xf32>
    %313 = vector.multi_reduction <maximumf>, %312, %cst_113 [1] : vector<4x16xf32> to vector<4xf32>
    %314 = vector.shape_cast %313 : vector<4xf32> to vector<4x1xf32>
    %315 = vector.broadcast %314 : vector<4x1xf32> to vector<4x16xf32>
    %316 = arith.subf %312, %315 : vector<4x16xf32>
    %317 = math.exp %316 : vector<4x16xf32>
    %cst_114 = arith.constant dense<0.000000e+00> : vector<4xf32>
    %318 = vector.multi_reduction <add>, %317, %cst_114 [1] : vector<4x16xf32> to vector<4xf32>
    %319 = vector.shape_cast %318 : vector<4xf32> to vector<4x1xf32>
    %320 = tpu.reciprocal %319 {approx = true} : vector<4x1xf32> -> vector<4x1xf32>
    %321 = vector.broadcast %320 : vector<4x1xf32> to vector<4x16xf32>
    %322 = arith.mulf %317, %321 : vector<4x16xf32>
    %323 = vector.extract_strided_slice %257 {offsets = [0, 32], sizes = [4, 32], strides = [1, 1]} : vector<4x128xf32> to vector<4x32xf32>
    %324 = vector.extract_strided_slice %294 {offsets = [0, 32], sizes = [4, 32], strides = [1, 1]} : vector<4x64xf32> to vector<4x32xf32>
    %325 = arith.addf %323, %324 : vector<4x32xf32>
    %326 = vector.extract_strided_slice %256 {offsets = [0, 128], sizes = [4, 32], strides = [1, 1]} : vector<4x160xf32> to vector<4x32xf32>
    %327 = arith.addf %325, %326 : vector<4x32xf32>
    %328 = math.tanh %327 : vector<4x32xf32>
    %329 = vector.extract_strided_slice %256 {offsets = [0, 96], sizes = [4, 32], strides = [1, 1]} : vector<4x160xf32> to vector<4x32xf32>
    %330 = vector.extract_strided_slice %257 {offsets = [0, 64], sizes = [4, 64], strides = [1, 1]} : vector<4x128xf32> to vector<4x64xf32>
    %cst_115 = arith.constant 1.000000e+00 : f32
    %331 = vector.broadcast %cst_115 : f32 to vector<4x8xf32>
    %332 = arith.divf %331, %274 : vector<4x8xf32>
    %333 = arith.mulf %291, %332 : vector<4x8xf32>
    %334 = arith.subf %283, %266 : vector<4x8xf32>
    %335 = arith.mulf %334, %332 : vector<4x8xf32>
    %336 = arith.mulf %333, %333 : vector<4x8xf32>
    %337 = arith.mulf %335, %335 : vector<4x8xf32>
    %338 = arith.addf %336, %337 : vector<4x8xf32>
    %cst_116 = arith.constant 1.000000e+00 : f32
    %339 = vector.broadcast %cst_116 : f32 to vector<4x8xf32>
    %340 = arith.subf %338, %339 : vector<4x8xf32>
    %341 = math.log %333 : vector<4x8xf32>
    %cst_117 = arith.constant 2.000000e+00 : f32
    %342 = vector.broadcast %cst_117 : f32 to vector<4x8xf32>
    %343 = arith.mulf %342, %341 : vector<4x8xf32>
    %344 = arith.subf %340, %343 : vector<4x8xf32>
    %cst_118 = arith.constant 5.000000e-01 : f32
    %345 = vector.broadcast %cst_118 : f32 to vector<4x8xf32>
    %346 = arith.mulf %345, %344 : vector<4x8xf32>
    %347 = arith.addf %237, %346 : vector<4x8xf32>
    %cst_119 = arith.constant 2.000000e+01 : f32
    %348 = vector.broadcast %cst_119 : f32 to vector<4x16xf32>
    %349 = arith.cmpf ogt, %306, %348 : vector<4x16xf32>
    %cst_120 = arith.constant 2.000000e+01 : f32
    %350 = vector.broadcast %cst_120 : f32 to vector<4x16xf32>
    %351 = arith.minimumf %306, %350 : vector<4x16xf32>
    %352 = math.exp %351 : vector<4x16xf32>
    %353 = math.log1p %352 : vector<4x16xf32>
    %354 = arith.select %349, %306, %353 : vector<4x16xi1>, vector<4x16xf32>
    %355 = arith.mulf %253, %306 : vector<4x16xf32>
    %356 = arith.subf %354, %355 : vector<4x16xf32>
    %357 = arith.addf %247, %356 : vector<4x16xf32>
    %358 = tpu.concatenate %283, %291, %311, %322 in 1 : vector<4x8xf32>, vector<4x8xf32>, vector<4x16xf32>, vector<4x16xf32> -> vector<4x48xf32>
    %c2_121 = arith.constant 2 : index
    %c0_122 = arith.constant 0 : index
    %c0_123 = arith.constant 0 : index
    %359 = vector.load %arg17[%c2_121, %c0_122, %c0_123] : memref<4x4x48xf32, #tpu.memory_space<vmem>>, vector<1x4x48xf32>
    %360 = vector.shape_cast %359 : vector<1x4x48xf32> to vector<4x48xf32>
    %361 = vector.shape_cast %358 : vector<4x48xf32> to vector<1x4x48xf32>
    tpu.vector_store %arg17[%c2_121, %c0_122, %c0_123], %361 {strides = array<i32>} : memref<4x4x48xf32, #tpu.memory_space<vmem>>, vector<1x4x48xf32>,
    %c3 = arith.constant 3 : index
    %c0_124 = arith.constant 0 : index
    %c0_125 = arith.constant 0 : index
    %362 = vector.load %arg1[%c3, %c0_124, %c0_125] : memref<4x4x16xf32, #tpu.memory_space<vmem>>, vector<1x4x16xf32>
    %363 = vector.shape_cast %362 : vector<1x4x16xf32> to vector<4x16xf32>
    %c3_126 = arith.constant 3 : index
    %c0_127 = arith.constant 0 : index
    %c0_128 = arith.constant 0 : index
    %364 = vector.load %arg2[%c3_126, %c0_127, %c0_128] : memref<4x4x8xf32, #tpu.memory_space<vmem>>, vector<1x4x8xf32>
    %365 = vector.shape_cast %364 : vector<1x4x8xf32> to vector<4x8xf32>
    %cst_129 = arith.constant dense<0.000000e+00> : vector<4x160xf32>
    %366 = tpu.matmul %328, %3, %cst_129 {dimension_numbers = #tpu.dot_dimension_numbers<[1], [0], [0], [1], [0, 0, 1, 1], [], []>} : vector<4x32xf32>, vector<32x160xf32>, vector<4x160xf32> -> vector<4x160xf32>
    %cst_130 = arith.constant dense<0.000000e+00> : vector<4x128xf32>
    %367 = tpu.matmul %363, %4, %cst_130 {dimension_numbers = #tpu.dot_dimension_numbers<[1], [0], [0], [1], [0, 0, 1, 1], [], []>} : vector<4x16xf32>, vector<16x128xf32>, vector<4x128xf32> -> vector<4x128xf32>
    %368 = vector.extract_strided_slice %330 {offsets = [0, 0], sizes = [4, 32], strides = [1, 1]} : vector<4x64xf32> to vector<4x32xf32>
    %369 = vector.extract_strided_slice %366 {offsets = [0, 0], sizes = [4, 32], strides = [1, 1]} : vector<4x160xf32> to vector<4x32xf32>
    %370 = arith.addf %368, %369 : vector<4x32xf32>
    %371 = arith.addf %370, %11 : vector<4x32xf32>
    %cst_131 = arith.constant 0.000000e+00 : f32
    %372 = vector.broadcast %cst_131 : f32 to vector<4x32xf32>
    %373 = arith.maximumf %371, %372 : vector<4x32xf32>
    %cst_132 = arith.constant dense<0.000000e+00> : vector<4x16xf32>
    %374 = tpu.matmul %373, %6, %cst_132 {dimension_numbers = #tpu.dot_dimension_numbers<[1], [0], [0], [1], [0, 0, 1, 1], [], []>} : vector<4x32xf32>, vector<32x16xf32>, vector<4x16xf32> -> vector<4x16xf32>
    %375 = arith.addf %374, %20 : vector<4x16xf32>
    %376 = vector.extract_strided_slice %375 {offsets = [0, 0], sizes = [4, 8], strides = [1, 1]} : vector<4x16xf32> to vector<4x8xf32>
    %377 = vector.extract_strided_slice %375 {offsets = [0, 8], sizes = [4, 8], strides = [1, 1]} : vector<4x16xf32> to vector<4x8xf32>
    %cst_133 = arith.constant 2.000000e+01 : f32
    %378 = vector.broadcast %cst_133 : f32 to vector<4x8xf32>
    %379 = arith.cmpf ogt, %377, %378 : vector<4x8xf32>
    %cst_134 = arith.constant 2.000000e+01 : f32
    %380 = vector.broadcast %cst_134 : f32 to vector<4x8xf32>
    %381 = arith.minimumf %377, %380 : vector<4x8xf32>
    %382 = math.exp %381 : vector<4x8xf32>
    %383 = math.log1p %382 : vector<4x8xf32>
    %384 = arith.select %379, %377, %383 : vector<4x8xi1>, vector<4x8xf32>
    %385 = vector.extract_strided_slice %367 {offsets = [0, 0], sizes = [4, 32], strides = [1, 1]} : vector<4x128xf32> to vector<4x32xf32>
    %386 = vector.extract_strided_slice %366 {offsets = [0, 32], sizes = [4, 32], strides = [1, 1]} : vector<4x160xf32> to vector<4x32xf32>
    %387 = arith.addf %385, %386 : vector<4x32xf32>
    %388 = arith.addf %387, %14 : vector<4x32xf32>
    %cst_135 = arith.constant 0.000000e+00 : f32
    %389 = vector.broadcast %cst_135 : f32 to vector<4x32xf32>
    %390 = arith.maximumf %388, %389 : vector<4x32xf32>
    %cst_136 = arith.constant dense<0.000000e+00> : vector<4x16xf32>
    %391 = tpu.matmul %390, %7, %cst_136 {dimension_numbers = #tpu.dot_dimension_numbers<[1], [0], [0], [1], [0, 0, 1, 1], [], []>} : vector<4x32xf32>, vector<32x16xf32>, vector<4x16xf32> -> vector<4x16xf32>
    %392 = arith.addf %391, %23 : vector<4x16xf32>
    %393 = vector.extract_strided_slice %392 {offsets = [0, 0], sizes = [4, 8], strides = [1, 1]} : vector<4x16xf32> to vector<4x8xf32>
    %394 = vector.extract_strided_slice %392 {offsets = [0, 8], sizes = [4, 8], strides = [1, 1]} : vector<4x16xf32> to vector<4x8xf32>
    %cst_137 = arith.constant 2.000000e+01 : f32
    %395 = vector.broadcast %cst_137 : f32 to vector<4x8xf32>
    %396 = arith.cmpf ogt, %394, %395 : vector<4x8xf32>
    %cst_138 = arith.constant 2.000000e+01 : f32
    %397 = vector.broadcast %cst_138 : f32 to vector<4x8xf32>
    %398 = arith.minimumf %394, %397 : vector<4x8xf32>
    %399 = math.exp %398 : vector<4x8xf32>
    %400 = math.log1p %399 : vector<4x8xf32>
    %401 = arith.select %396, %394, %400 : vector<4x8xi1>, vector<4x8xf32>
    %402 = arith.mulf %365, %401 : vector<4x8xf32>
    %403 = arith.addf %402, %393 : vector<4x8xf32>
    %cst_139 = arith.constant dense<0.000000e+00> : vector<4x64xf32>
    %404 = tpu.matmul %403, %5, %cst_139 {dimension_numbers = #tpu.dot_dimension_numbers<[1], [0], [0], [1], [0, 0, 1, 1], [], []>} : vector<4x8xf32>, vector<8x64xf32>, vector<4x64xf32> -> vector<4x64xf32>
    %405 = vector.extract_strided_slice %330 {offsets = [0, 32], sizes = [4, 32], strides = [1, 1]} : vector<4x64xf32> to vector<4x32xf32>
    %406 = vector.extract_strided_slice %404 {offsets = [0, 0], sizes = [4, 32], strides = [1, 1]} : vector<4x64xf32> to vector<4x32xf32>
    %407 = arith.addf %405, %406 : vector<4x32xf32>
    %408 = vector.extract_strided_slice %366 {offsets = [0, 64], sizes = [4, 32], strides = [1, 1]} : vector<4x160xf32> to vector<4x32xf32>
    %409 = arith.addf %407, %408 : vector<4x32xf32>
    %410 = arith.addf %409, %329 : vector<4x32xf32>
    %411 = arith.addf %410, %17 : vector<4x32xf32>
    %cst_140 = arith.constant 0.000000e+00 : f32
    %412 = vector.broadcast %cst_140 : f32 to vector<4x32xf32>
    %413 = arith.maximumf %411, %412 : vector<4x32xf32>
    %cst_141 = arith.constant dense<0.000000e+00> : vector<4x32xf32>
    %414 = tpu.matmul %413, %8, %cst_141 {dimension_numbers = #tpu.dot_dimension_numbers<[1], [0], [0], [1], [0, 0, 1, 1], [], []>} : vector<4x32xf32>, vector<32x32xf32>, vector<4x32xf32> -> vector<4x32xf32>
    %415 = arith.addf %414, %26 : vector<4x32xf32>
    %416 = vector.extract_strided_slice %415 {offsets = [0, 0], sizes = [4, 16], strides = [1, 1]} : vector<4x32xf32> to vector<4x16xf32>
    %417 = arith.negf %416 : vector<4x16xf32>
    %418 = math.exp %417 : vector<4x16xf32>
    %cst_142 = arith.constant 1.000000e+00 : f32
    %419 = vector.broadcast %cst_142 : f32 to vector<4x16xf32>
    %420 = arith.addf %419, %418 : vector<4x16xf32>
    %421 = arith.divf %419, %420 : vector<4x16xf32>
    %422 = vector.extract_strided_slice %415 {offsets = [0, 16], sizes = [4, 16], strides = [1, 1]} : vector<4x32xf32> to vector<4x16xf32>
    %cst_143 = arith.constant dense<0xFF800000> : vector<4xf32>
    %423 = vector.multi_reduction <maximumf>, %422, %cst_143 [1] : vector<4x16xf32> to vector<4xf32>
    %424 = vector.shape_cast %423 : vector<4xf32> to vector<4x1xf32>
    %425 = vector.broadcast %424 : vector<4x1xf32> to vector<4x16xf32>
    %426 = arith.subf %422, %425 : vector<4x16xf32>
    %427 = math.exp %426 : vector<4x16xf32>
    %cst_144 = arith.constant dense<0.000000e+00> : vector<4xf32>
    %428 = vector.multi_reduction <add>, %427, %cst_144 [1] : vector<4x16xf32> to vector<4xf32>
    %429 = vector.shape_cast %428 : vector<4xf32> to vector<4x1xf32>
    %430 = tpu.reciprocal %429 {approx = true} : vector<4x1xf32> -> vector<4x1xf32>
    %431 = vector.broadcast %430 : vector<4x1xf32> to vector<4x16xf32>
    %432 = arith.mulf %427, %431 : vector<4x16xf32>
    %433 = vector.extract_strided_slice %367 {offsets = [0, 32], sizes = [4, 32], strides = [1, 1]} : vector<4x128xf32> to vector<4x32xf32>
    %434 = vector.extract_strided_slice %404 {offsets = [0, 32], sizes = [4, 32], strides = [1, 1]} : vector<4x64xf32> to vector<4x32xf32>
    %435 = arith.addf %433, %434 : vector<4x32xf32>
    %436 = vector.extract_strided_slice %366 {offsets = [0, 128], sizes = [4, 32], strides = [1, 1]} : vector<4x160xf32> to vector<4x32xf32>
    %437 = arith.addf %435, %436 : vector<4x32xf32>
    %438 = math.tanh %437 : vector<4x32xf32>
    %439 = vector.extract_strided_slice %366 {offsets = [0, 96], sizes = [4, 32], strides = [1, 1]} : vector<4x160xf32> to vector<4x32xf32>
    %440 = vector.extract_strided_slice %367 {offsets = [0, 64], sizes = [4, 64], strides = [1, 1]} : vector<4x128xf32> to vector<4x64xf32>
    %cst_145 = arith.constant 1.000000e+00 : f32
    %441 = vector.broadcast %cst_145 : f32 to vector<4x8xf32>
    %442 = arith.divf %441, %384 : vector<4x8xf32>
    %443 = arith.mulf %401, %442 : vector<4x8xf32>
    %444 = arith.subf %393, %376 : vector<4x8xf32>
    %445 = arith.mulf %444, %442 : vector<4x8xf32>
    %446 = arith.mulf %443, %443 : vector<4x8xf32>
    %447 = arith.mulf %445, %445 : vector<4x8xf32>
    %448 = arith.addf %446, %447 : vector<4x8xf32>
    %cst_146 = arith.constant 1.000000e+00 : f32
    %449 = vector.broadcast %cst_146 : f32 to vector<4x8xf32>
    %450 = arith.subf %448, %449 : vector<4x8xf32>
    %451 = math.log %443 : vector<4x8xf32>
    %cst_147 = arith.constant 2.000000e+00 : f32
    %452 = vector.broadcast %cst_147 : f32 to vector<4x8xf32>
    %453 = arith.mulf %452, %451 : vector<4x8xf32>
    %454 = arith.subf %450, %453 : vector<4x8xf32>
    %cst_148 = arith.constant 5.000000e-01 : f32
    %455 = vector.broadcast %cst_148 : f32 to vector<4x8xf32>
    %456 = arith.mulf %455, %454 : vector<4x8xf32>
    %457 = arith.addf %347, %456 : vector<4x8xf32>
    %cst_149 = arith.constant 2.000000e+01 : f32
    %458 = vector.broadcast %cst_149 : f32 to vector<4x16xf32>
    %459 = arith.cmpf ogt, %416, %458 : vector<4x16xf32>
    %cst_150 = arith.constant 2.000000e+01 : f32
    %460 = vector.broadcast %cst_150 : f32 to vector<4x16xf32>
    %461 = arith.minimumf %416, %460 : vector<4x16xf32>
    %462 = math.exp %461 : vector<4x16xf32>
    %463 = math.log1p %462 : vector<4x16xf32>
    %464 = arith.select %459, %416, %463 : vector<4x16xi1>, vector<4x16xf32>
    %465 = arith.mulf %363, %416 : vector<4x16xf32>
    %466 = arith.subf %464, %465 : vector<4x16xf32>
    %467 = arith.addf %357, %466 : vector<4x16xf32>
    %468 = tpu.concatenate %393, %401, %421, %432 in 1 : vector<4x8xf32>, vector<4x8xf32>, vector<4x16xf32>, vector<4x16xf32> -> vector<4x48xf32>
    %c3_151 = arith.constant 3 : index
    %c0_152 = arith.constant 0 : index
    %c0_153 = arith.constant 0 : index
    %469 = vector.load %arg17[%c3_151, %c0_152, %c0_153] : memref<4x4x48xf32, #tpu.memory_space<vmem>>, vector<1x4x48xf32>
    %470 = vector.shape_cast %469 : vector<1x4x48xf32> to vector<4x48xf32>
    %471 = vector.shape_cast %468 : vector<4x48xf32> to vector<1x4x48xf32>
    tpu.vector_store %arg17[%c3_151, %c0_152, %c0_153], %471 {strides = array<i32>} : memref<4x4x48xf32, #tpu.memory_space<vmem>>, vector<1x4x48xf32>,
    %c0_154 = arith.constant 0 : index
    %c0_155 = arith.constant 0 : index
    %472 = vector.load %arg18[%c0_154, %c0_155] : memref<4x32xf32, #tpu.memory_space<vmem>>, vector<4x32xf32>
    tpu.vector_store %arg18[%c0_154, %c0_155], %438 {strides = array<i32>} : memref<4x32xf32, #tpu.memory_space<vmem>>, vector<4x32xf32>,
    %c0_156 = arith.constant 0 : index
    %c0_157 = arith.constant 0 : index
    %473 = vector.load %arg19[%c0_156, %c0_157] : memref<4x32xf32, #tpu.memory_space<vmem>>, vector<4x32xf32>
    tpu.vector_store %arg19[%c0_156, %c0_157], %439 {strides = array<i32>} : memref<4x32xf32, #tpu.memory_space<vmem>>, vector<4x32xf32>,
    %c0_158 = arith.constant 0 : index
    %c0_159 = arith.constant 0 : index
    %474 = vector.load %arg20[%c0_158, %c0_159] : memref<4x64xf32, #tpu.memory_space<vmem>>, vector<4x64xf32>
    tpu.vector_store %arg20[%c0_158, %c0_159], %440 {strides = array<i32>} : memref<4x64xf32, #tpu.memory_space<vmem>>, vector<4x64xf32>,
    %c0_160 = arith.constant 0 : index
    %c0_161 = arith.constant 0 : index
    %475 = vector.load %arg21[%c0_160, %c0_161] : memref<4x8xf32, #tpu.memory_space<vmem>>, vector<4x8xf32>
    tpu.vector_store %arg21[%c0_160, %c0_161], %457 {strides = array<i32>} : memref<4x8xf32, #tpu.memory_space<vmem>>, vector<4x8xf32>,
    %c0_162 = arith.constant 0 : index
    %c0_163 = arith.constant 0 : index
    %476 = vector.load %arg22[%c0_162, %c0_163] : memref<4x16xf32, #tpu.memory_space<vmem>>, vector<4x16xf32>
    tpu.vector_store %arg22[%c0_162, %c0_163], %467 {strides = array<i32>} : memref<4x16xf32, #tpu.memory_space<vmem>>, vector<4x16xf32>,
    %c1_i32 = arith.constant 1 : i32
    %477 = arith.cmpi eq, %arg0, %c1_i32 : i32
    %478 = arith.extui %477 : i1 to i32
    %c0_i32_164 = arith.constant 0 : i32
    %479 = arith.cmpi ne, %478, %c0_i32_164 : i32
    scf.if %479 {
      %480 = vector.shape_cast %457 : vector<4x8xf32> to vector<1x4x8xf32>
      %cst_165 = arith.constant dense<0.000000e+00> : vector<1xf32>
      %481 = vector.multi_reduction <add>, %480, %cst_165 [1, 2] : vector<1x4x8xf32> to vector<1xf32>
      %482 = vector.shape_cast %481 : vector<1xf32> to vector<1x1x1xf32>
      %483 = vector.extract %482[0, 0, 0] : f32 from vector<1x1x1xf32>
      %484 = vector.broadcast %483 : f32 to vector<1x1xf32>
      %c0_166 = arith.constant 0 : index
      %c0_167 = arith.constant 0 : index
      %485 = vector.load %arg15[%c0_166, %c0_167] : memref<1x1xf32, #tpu.memory_space<vmem>>, vector<1x1xf32>
      tpu.vector_store %arg15[%c0_166, %c0_167], %484 {strides = array<i32>} : memref<1x1xf32, #tpu.memory_space<vmem>>, vector<1x1xf32>,
      %486 = vector.shape_cast %467 : vector<4x16xf32> to vector<1x4x16xf32>
      %cst_168 = arith.constant dense<0.000000e+00> : vector<1xf32>
      %487 = vector.multi_reduction <add>, %486, %cst_168 [1, 2] : vector<1x4x16xf32> to vector<1xf32>
      %488 = vector.shape_cast %487 : vector<1xf32> to vector<1x1x1xf32>
      %489 = vector.extract %488[0, 0, 0] : f32 from vector<1x1x1xf32>
      %490 = vector.broadcast %489 : f32 to vector<1x1xf32>
      %c0_169 = arith.constant 0 : index
      %c0_170 = arith.constant 0 : index
      %491 = vector.load %arg16[%c0_169, %c0_170] : memref<1x1xf32, #tpu.memory_space<vmem>>, vector<1x1xf32>
      tpu.vector_store %arg16[%c0_169, %c0_170], %490 {strides = array<i32>} : memref<1x1xf32, #tpu.memory_space<vmem>>, vector<1x1xf32>,
    } else {
    }
    return
  }
  func.func @transform_0(%arg0: i32) -> (i32, i32, i32) {
    %c0_i32 = arith.constant 0 : i32
    %c0_i32_0 = arith.constant 0 : i32
    %c0_i32_1 = arith.constant 0 : i32
    return %arg0, %c0_i32, %c0_i32_0 : i32, i32, i32
  }
  func.func @transform_1(%arg0: i32) -> (i32, i32, i32) {
    %c0_i32 = arith.constant 0 : i32
    %c0_i32_0 = arith.constant 0 : i32
    %c0_i32_1 = arith.constant 0 : i32
    return %arg0, %c0_i32, %c0_i32_0 : i32, i32, i32
  }
  func.func @transform_2(%arg0: i32) -> (i32, i32) {
    %c0_i32 = arith.constant 0 : i32
    %c0_i32_0 = arith.constant 0 : i32
    %c0_i32_1 = arith.constant 0 : i32
    return %c0_i32, %c0_i32_0 : i32, i32
  }
  func.func @transform_3(%arg0: i32) -> (i32, i32) {
    %c0_i32 = arith.constant 0 : i32
    %c0_i32_0 = arith.constant 0 : i32
    %c0_i32_1 = arith.constant 0 : i32
    return %c0_i32, %c0_i32_0 : i32, i32
  }
  func.func @transform_4(%arg0: i32) -> (i32, i32) {
    %c0_i32 = arith.constant 0 : i32
    %c0_i32_0 = arith.constant 0 : i32
    %c0_i32_1 = arith.constant 0 : i32
    return %c0_i32, %c0_i32_0 : i32, i32
  }
  func.func @transform_5(%arg0: i32) -> (i32, i32) {
    %c0_i32 = arith.constant 0 : i32
    %c0_i32_0 = arith.constant 0 : i32
    %c0_i32_1 = arith.constant 0 : i32
    return %c0_i32, %c0_i32_0 : i32, i32
  }
  func.func @transform_6(%arg0: i32) -> (i32, i32) {
    %c0_i32 = arith.constant 0 : i32
    %c0_i32_0 = arith.constant 0 : i32
    %c0_i32_1 = arith.constant 0 : i32
    return %c0_i32, %c0_i32_0 : i32, i32
  }
  func.func @transform_7(%arg0: i32) -> (i32, i32) {
    %c0_i32 = arith.constant 0 : i32
    %c0_i32_0 = arith.constant 0 : i32
    %c0_i32_1 = arith.constant 0 : i32
    return %c0_i32, %c0_i32_0 : i32, i32
  }
  func.func @transform_8(%arg0: i32) -> (i32, i32) {
    %c0_i32 = arith.constant 0 : i32
    %c0_i32_0 = arith.constant 0 : i32
    %c0_i32_1 = arith.constant 0 : i32
    return %c0_i32, %c0_i32_0 : i32, i32
  }
  func.func @transform_9(%arg0: i32) -> (i32, i32) {
    %c0_i32 = arith.constant 0 : i32
    %c0_i32_0 = arith.constant 0 : i32
    %c0_i32_1 = arith.constant 0 : i32
    return %c0_i32, %c0_i32_0 : i32, i32
  }
  func.func @transform_10(%arg0: i32) -> (i32, i32) {
    %c0_i32 = arith.constant 0 : i32
    %c0_i32_0 = arith.constant 0 : i32
    %c0_i32_1 = arith.constant 0 : i32
    return %c0_i32, %c0_i32_0 : i32, i32
  }
  func.func @transform_11(%arg0: i32) -> (i32, i32) {
    %c0_i32 = arith.constant 0 : i32
    %c0_i32_0 = arith.constant 0 : i32
    %c0_i32_1 = arith.constant 0 : i32
    return %c0_i32, %c0_i32_0 : i32, i32
  }
  func.func @transform_12(%arg0: i32) -> (i32, i32) {
    %c0_i32 = arith.constant 0 : i32
    %c0_i32_0 = arith.constant 0 : i32
    %c0_i32_1 = arith.constant 0 : i32
    return %c0_i32, %c0_i32_0 : i32, i32
  }
  func.func @transform_13(%arg0: i32) -> (i32, i32) {
    %c0_i32 = arith.constant 0 : i32
    %c0_i32_0 = arith.constant 0 : i32
    %c0_i32_1 = arith.constant 0 : i32
    return %c0_i32, %c0_i32_0 : i32, i32
  }
  func.func @transform_14(%arg0: i32) -> (i32, i32) {
    %c0_i32 = arith.constant 0 : i32
    %c0_i32_0 = arith.constant 0 : i32
    %c0_i32_1 = arith.constant 0 : i32
    return %c0_i32, %c0_i32_0 : i32, i32
  }
  func.func @transform_15(%arg0: i32) -> (i32, i32) {
    %c0_i32 = arith.constant 0 : i32
    %c0_i32_0 = arith.constant 0 : i32
    %c0_i32_1 = arith.constant 0 : i32
    return %c0_i32, %c0_i32_0 : i32, i32
  }
  func.func @transform_16(%arg0: i32) -> (i32, i32, i32) {
    %c0_i32 = arith.constant 0 : i32
    %c0_i32_0 = arith.constant 0 : i32
    %c0_i32_1 = arith.constant 0 : i32
    return %arg0, %c0_i32, %c0_i32_0 : i32, i32, i32
  }
}

</mosaic_0001>

<bundles_post_ra>
// kernel: tpu_custom_call.1
= control target key start
LH: loop header
LB: loop body
LE: loop exit
PB: predicated region body
PF: predicated region fallthrough
CT: control target
= control target key end

     0   :  { %s5435_s0 = inlined_call_operand.vmem [shape: f32[8,4,16], index: 0, kind: input, shape index: {}]   ;;  %s5436_s1 = inlined_call_operand.hbm [shape: f32[8,4,8], index: 1, kind: input, shape index: {}]   ;;  %s5437_s2 = inlined_call_operand.vmem [shape: f32[32,160], index: 2, kind: input, shape index: {}]   ;;  %s5438_s3 = inlined_call_operand.hbm [shape: f32[16,128], index: 3, kind: input, shape index: {}]   ;;  %s5439_s4 = inlined_call_operand.hbm [shape: f32[8,64], index: 4, kind: input, shape index: {}]   ;;  %s5440_s5 = inlined_call_operand.hbm [shape: f32[1,32], index: 5, kind: input, shape index: {}]   ;;  %s5441_s6 = inlined_call_operand.hbm [shape: f32[1,32], index: 6, kind: input, shape index: {}]   ;;  %s5442_s7 = inlined_call_operand.hbm [shape: f32[1,32], index: 7, kind: input, shape index: {}]   ;;  %s5443_s8 = inlined_call_operand.vmem [shape: f32[32,16], index: 8, kind: input, shape index: {}]   ;;  %s5444_s9 = inlined_call_operand.hbm [shape: f32[1,16], index: 9, kind: input, shape index: {}]   ;;  %s5445_s10 = inlined_call_operand.vmem [shape: f32[32,16], index: 10, kind: input, shape index: {}]   ;;  %s5446_s11 = inlined_call_operand.vmem [shape: f32[1,16], index: 11, kind: input, shape index: {}]   ;;  %s5447_s12 = inlined_call_operand.hbm [shape: f32[32,32], index: 12, kind: input, shape index: {}]   ;;  %s5448_s13 = inlined_call_operand.vmem [shape: f32[1,32], index: 13, kind: input, shape index: {}]   ;;  %s5449_s14 = inlined_call_operand.hbm [shape: f32[1,1], index: 14, kind: output, shape index: {0}]   ;;  %s5450_s15 = inlined_call_operand.hbm [shape: f32[1,1], index: 15, kind: output, shape index: {1}]   ;;  %s5451_s16 = inlined_call_operand.hbm [shape: f32[8,4,48], index: 16, kind: output, shape index: {2}]  }
   0x1   :  { %5460 = sst [smem:[#allocation33_spill]] %s5435_s0 }
   0x2   :  { %5461 = sst [smem:[#allocation34_spill]] %s5438_s3 }
   0x3   :  { %5462 = sst [smem:[#allocation35_spill]] %s5439_s4 }
   0x4   :  { %5463 = sst [smem:[#allocation36_spill]] %s5440_s5 }
   0x5   :  { %5464 = sst [smem:[#allocation37_spill]] %s5441_s6 }
   0x6   :  { %5465 = sst [smem:[#allocation38_spill]] %s5448_s13 }
   0x7   :  { %5466 = sst [smem:[#allocation39_spill]] %s5449_s14 }
   0x8   :  { %5467 = sst [smem:[#allocation40_spill]] %s5450_s15 }
   0x9   :  { %5468 = sst [smem:[#allocation41_spill]] %s5451_s16 }
   0xa   :  { %22 = vsyncpa [#allocation8], 0 }
   0xb   :  { %24 = vsyncpa [#allocation8 + $0x1], 0 }
   0xc   :  { %25 = vsyncpa [#allocation11], 0 }
   0xd   :  { %26 = vsyncpa [#allocation14], 0 }
   0xe   :  { %27 = vsyncpa [#allocation17], 0 }
   0xf   :  { %28 = vsyncpa [#allocation20], 0 }
  0x10   :  { %29 = vsyncpa [#allocation9], 0 }
  0x11   :  { %30 = vsyncpa [#allocation23], 0  ;;  %s4424_s21 = smov 0   ;;  %s4426_s22 = smov 0  }
  0x12   :  { %s4428_s23 = smov 0   ;;  %s4430_s24 = smov 0  }
  0x13 LB: > { %s4313_s25 = smov [#allocation10]   ;;  %s4445_s27 = sadd.s32 4294967295, %s4311_s24   ;;  %s4311_s24 = sphi %s4430_s24, %s5515_s24   ;;  %s4307_s23 = sphi %s4428_s23, %s5514_s23   ;;  %s4303_s22 = sphi %s4426_s22, %s5513_s22   ;;  %s4299_s21 = sphi %s4424_s21, %s5512_s21  }
  0x14   : > { %s428_s26 = sshll.u32 %s4313_s25, 4  ;;  %p3365_p0 = scmp.ge.s32.totalorder %s4311_s24, 1  ;;  %s429_s26 = int_to_ptr.vmem [resolvable:$true] %s428_s26 }
  0x15   : > { %p5454_p1 = scmp.eq.s32.totalorder %s4445_s27, 0  ;;  %p413_p2 = scmp.lt.s32.totalorder %s4311_s24, 3 }
  0x16   : > { %s4314_s29 = smov [#allocation13]   ;;  %s4315_s17 = smov [#allocation16]  }
  0x17   : > { %p4451_p4 = pnand %p3365_p0, %p413_p2  ;;  %s453_s30 = sshll.u32 %s4314_s29, 4  ;;  %s454_s30 = int_to_ptr.vmem [resolvable:$true] %s453_s30 }
  0x18   : > { %s475_s18 = sshll.u32 %s4315_s17, 4  ;;  %s3976_s20 = scalar_lea.vmem %s429_s26, 256  ;;  %s4464_s18 = int_to_ptr.vmem [resolvable:$true] %s475_s18 }
  0x19   : > { %s5469_s28 = scalar_select %p4451_p4, 1, 0 }
  0x1a   : > { %p3753_p6 = pneg %p4451_p4  ;;  %p3977_p9 = scmp.ne.s32.totalorder %s429_s26, %s3976_s20 }
  0x1b   : > { %p3984_p12 = scmp.lt.s32.totalorder %s429_s26, %s429_s26  ;;  %p3985_p13 = scmp.lt.s32.totalorder %s3976_s20, %s3976_s20 }
  0x1c   : > { %p4460_p7 = pnand %p3753_p6, %p5454_p1 }
  0x1d   : > { %p3986_p0 = por %p3985_p13, %p3984_p12 }
  0x1e   : > { %p4468_p8 = pneg %p4460_p7 }
  0x20   : > { %p3979_p10 = pnand %p3977_p9, %p4468_p8 }
  0x22   : > { %p3980_p11 = pneg %p3979_p10 }
  0x24   : > { %p3987_p2 = pnand %p3986_p0, %p3980_p11 }
  0x26   : > { %3990 = shalt.err (!%p3987_p2)
}
  0x27   : > { %s5453_s25 = smov 128   ;;  %s4317_s29 = smov 8  }
  0x28   : > { %s5472_s3 = sld [smem:[#allocation34_spill]]  ;;  %s4002_s15 = scalar_lea.vmem %s454_s30, 16 }
  0x29   : > { %p4003_p6 = scmp.ne.s32.totalorder %s454_s30, %s4002_s15  ;;  %s4009_s20 = scalar_lea.vmem %s454_s30, 32 }
  0x2a   : > { %p4010_p11 = scmp.lt.s32.totalorder %s454_s30, %s454_s30  ;;  %p4011_p12 = scmp.lt.s32.totalorder %s4009_s20, %s4002_s15 }
  0x2b   : > { %p4005_p9 = pnand %p4003_p6, %p4468_p8 }
  0x2c   : > { %p4012_p13 = por %p4011_p12, %p4010_p11 }
  0x2d   : > { %p4006_p10 = pneg %p4005_p9 }
  0x2e   : > { %3756 = dma.hbm_to_vmem [thread:$0]  (!%p4460_p7), %s5472_s3, 256, %s429_s26, [#allocation11], %s5453_s25, %s5453_s25, %s4317_s29  }
  0x2f   : > { %p4013_p0 = pnand %p4012_p13, %p4006_p10 }
  0x31   : > { %4016 = shalt.err (!%p4013_p0)
}
  0x32   : > { %s5473_s5 = sld [smem:[#allocation36_spill]]  ;;  %s4028_s16 = scalar_lea.vmem %s4464_s18, 16 }
  0x33   : > { %p4029_p2 = scmp.ne.s32.totalorder %s4464_s18, %s4028_s16  ;;  %s4035_s15 = scalar_lea.vmem %s4464_s18, 32 }
  0x34   : > { %p4036_p10 = scmp.lt.s32.totalorder %s4464_s18, %s4464_s18  ;;  %p4037_p11 = scmp.lt.s32.totalorder %s4035_s15, %s4028_s16 }
  0x35   : > { %p4031_p6 = pnand %p4029_p2, %p4468_p8 }
  0x36   : > { %p4038_p12 = por %p4037_p11, %p4036_p10 }
  0x37   : > { %p4032_p9 = pneg %p4031_p6 }
  0x38   : > { %3762 = dma.hbm_to_vmem [thread:$0]  (!%p4460_p7), %s5473_s5, 16, %s454_s30, [#allocation14]  }
  0x39   : > { %p4039_p13 = pnand %p4038_p12, %p4032_p9 }
  0x3b   : > { %4042 = shalt.err (!%p4039_p13)
}
  0x3c   : > { %3768 = dma.hbm_to_vmem [thread:$0]  (!%p4460_p7), %s5442_s7, 16, %s4464_s18, [#allocation17]  }
  0x3d   : > { %s4318_s26 = smov [#allocation12]   ;;  %s4319_s17 = smov [#allocation15]  }
  0x3e   : > { %s442_s30 = sshll.u32 %s4318_s26, 4  ;;  %s464_s20 = sshll.u32 %s4319_s17, 4  ;;  %s443_s30 = int_to_ptr.vmem [resolvable:$true] %s442_s30  ;;  %s465_s20 = int_to_ptr.vmem [resolvable:$true] %s464_s20 }
  0x3f   : > { %s4054_s25 = scalar_lea.vmem %s443_s30, 128  ;;  %p4062_p9 = scmp.lt.s32.totalorder %s443_s30, %s443_s30 }
  0x40   : > { %p4055_p0 = scmp.ne.s32.totalorder %s443_s30, %s4054_s25  ;;  %p4063_p10 = scmp.lt.s32.totalorder %s4054_s25, %s4054_s25 }
  0x42   : > { %p4057_p2 = pnand %p4055_p0, %p4468_p8  ;;  %p4064_p11 = por %p4063_p10, %p4062_p9 }
  0x44   : > { %p4058_p6 = pneg %p4057_p2 }
  0x46   : > { %p4065_p12 = pnand %p4064_p11, %p4058_p6 }
  0x48   : > { %4068 = shalt.err (!%p4065_p12)
}
  0x49   : > { %s5474_s4 = sld [smem:[#allocation35_spill]]  ;;  %s4080_s18 = scalar_lea.vmem %s465_s20, 16 }
  0x4a   : > { %p4081_p13 = scmp.ne.s32.totalorder %s465_s20, %s4080_s18  ;;  %s4087_s13 = scalar_lea.vmem %s465_s20, 32 }
  0x4b   : > { %p4088_p0 = scmp.lt.s32.totalorder %s465_s20, %s465_s20  ;;  %p4089_p2 = scmp.lt.s32.totalorder %s4087_s13, %s4080_s18 }
  0x4c   : > { %p4083_p5 = pnand %p4081_p13, %p4468_p8 }
  0x4d   : > { %p4090_p1 = por %p4089_p2, %p4088_p0 }
  0x4e   : > { %p4084_p3 = pneg %p4083_p5 }
  0x4f   : > { %3759 = dma.hbm_to_vmem [thread:$0]  (!%p4460_p7), %s5474_s4, 128, %s443_s30, [#allocation11]  }
  0x50   : > { %p4091_p9 = pnand %p4090_p1, %p4084_p3 }
  0x52   : > { %4094 = shalt.err (!%p4091_p9)
}
  0x53   : > { %s5475_s6 = sld [smem:[#allocation37_spill]]  ;;  %s4320_s26 = smov [#allocation18]  }
  0x54   : > { %s489_s30 = sshll.u32 %s4320_s26, 4  ;;  %s4321_s17 = smov [#allocation19]   ;;  %s490_s30 = int_to_ptr.vmem [resolvable:$true] %s489_s30 }
  0x55   : > { %s505_s16 = sshll.u32 %s4321_s17, 4  ;;  %s4106_s15 = scalar_lea.vmem %s490_s30, 16  ;;  %s506_s16 = int_to_ptr.vmem [resolvable:$true] %s505_s16 }
  0x56   : > { %p4107_p5 = scmp.ne.s32.totalorder %s490_s30, %s4106_s15  ;;  %s4113_s18 = scalar_lea.vmem %s490_s30, 32 }
  0x57   : > { %p4114_p1 = scmp.lt.s32.totalorder %s490_s30, %s490_s30  ;;  %p4115_p3 = scmp.lt.s32.totalorder %s4113_s18, %s4106_s15 }
  0x58   : > { %p4109_p6 = pnand %p4107_p5, %p4468_p8 }
  0x59   : > { %3765 = dma.hbm_to_vmem [thread:$0]  (!%p4460_p7), %s5475_s6, 16, %s465_s20, [#allocation14]  }
  0x5a   : > { %p4110_p10 = pneg %p4109_p6  ;;  %p4116_p11 = por %p4115_p3, %p4114_p1 }
  0x5c   : > { %p4117_p12 = pnand %p4116_p11, %p4110_p10 }
  0x5e   : > { %4120 = shalt.err (!%p4117_p12)
}
  0x5f   : > { %3771 = dma.hbm_to_vmem [thread:$0]  (!%p4460_p7), %s5444_s9, 16, %s490_s30, [#allocation17]  }
  0x60   : > { %s4132_s25 = scalar_lea.vmem %s506_s16, 512  ;;  %p4140_p9 = scmp.lt.s32.totalorder %s506_s16, %s506_s16 }
  0x61   : > { %p4133_p13 = scmp.ne.s32.totalorder %s506_s16, %s4132_s25  ;;  %p4141_p5 = scmp.lt.s32.totalorder %s4132_s25, %s4132_s25 }
  0x63   : > { %p4135_p0 = pnand %p4133_p13, %p4468_p8  ;;  %p4142_p6 = por %p4141_p5, %p4140_p9 }
  0x65   : > { %p4136_p2 = pneg %p4135_p0 }
  0x67   : > { %p4143_p4 = pnand %p4142_p6, %p4136_p2 }
  0x69   : > { %4146 = shalt.err (!%p4143_p4)
}
  0x6a   : > { %s5476_s14 = smov 128   ;;  %s5456_s0 = sadd.s32 4294967294, %s4311_s24  }
  0x6b   : > { %3774 = dma.hbm_to_vmem [thread:$0]  (!%p4460_p7), %s5447_s12, 512, %s506_s16, [#allocation20], %s5476_s14, %s5476_s14, %s4317_s29  }
  0x6c   : > { %s4535_s19 = sadd.s32 1, %s4311_s24   ;;  %s69_s30 = sadd.s32 1, %s4307_s23 }
  0x6d   : > { %s66_s15 = ssub.s32 %s4311_s24, %s4535_s19  ;;  %p76_p4 = scmp.ne.s32.totalorder %s4307_s23, %s4303_s22 }
  0x6e   : > { %p67_p8 = scmp.eq.s32.totalorder %s66_s15, 0  ;;  %p77_p10 = scmp.eq.s32.totalorder %s4311_s24, 0 }
  0x6f   : > { %p82_p1 = scmp.ne.s32.totalorder %s4303_s22, %s4299_s21  ;;  %p5457_p3 = scmp.eq.s32.totalorder %s4445_s27, 1 }
  0x70   : > { %s4547_s18 = scalar_select %p67_p8, %s4307_s23, %s69_s30  }
  0x71   : > { %p78_p11 = por %p77_p10, %p76_p4  ;;  %p5477_p12 = scmp.eq.s32.totalorder %s4445_s27, 0 }
  0x72   : > { %p4557_p7 = por %p5457_p3, %p76_p4  ;;  %p406_p0 = scmp.eq.s32.totalorder %s5456_s0, 1 }
  0x73   : > { %p4551_p13 = por %p5477_p12, %p82_p1  ;;  %p3790_p2 = scmp.lt.s32.totalorder %s4311_s24, 2 }
  0x74   : > { %s5479_s29 = scalar_select %p4557_p7, 1, 0 }
  0x75   : > { %s5478_s13 = scalar_select %p4551_p13, 1, 0 }
  0x76   : > { %s531_s16 = sand.u32 1, %s4307_s23   ;;  %p4565_p9 = por %p406_p0, %p82_p1 }
  0x77   : > { %s3374_s20 = sshll.u32 %s531_s16, 4  ;;  %s3447_s25 = sshll.u32 %s4311_s24, 8 }
  0x78   : > { %s5480_s21 = scalar_select %p4565_p9, 1, 0 }
  0x79   : > { %s4573_s17 = scalar_lea.hbm %s5436_s1, %s3447_s25  ;;  %s535_s30 = scalar_lea.vmem [#allocation7], %s3374_s20 }
  0x7a   : > { %s542_s15 = sshll.u32 %s535_s30, 4  ;;  %p4575_p5 = pnand %p3790_p2, %p78_p11  ;;  %s4579_s15 = int_to_ptr.vmem [resolvable:$true] %s542_s15 }
  0x7b   : > { %s4581_s3 = scalar_lea.sflag [#allocation8], %s531_s16  ;;  %s4147_s4 = scalar_lea.hbm %s4573_s17, 256 }
  0x7c   : > { %p4148_p6 = scmp.ne.s32.totalorder %s4573_s17, %s4147_s4  ;;  %p4149_p4 = pneg %p4575_p5 }
  0x7d   : > { %s4152_s20 = scalar_lea.hbm %s5436_s1, 512  ;;  %p4153_p1 = scmp.lt.s32.totalorder %s4573_s17, %s5436_s1 }
  0x7e   : > { %p4150_p8 = pnand %p4149_p4, %p4148_p6  ;;  %p4154_p11 = scmp.lt.s32.totalorder %s4152_s20, %s4147_s4 }
  0x80   : > { %p4151_p10 = pneg %p4150_p8  ;;  %p4155_p12 = por %p4154_p11, %p4153_p1 }
  0x82   : > { %p4156_p0 = pnand %p4155_p12, %p4151_p10 }
  0x84   : > { %4159 = shalt.err (!%p4156_p0)
}
  0x85   : > { %s4160_s16 = scalar_lea.vmem %s4579_s15, 256  ;;  %s4322_s5 = smov [#allocation7]  }
  0x86   : > { %p4161_p2 = scmp.ne.s32.totalorder %s4579_s15, %s4160_s16  ;;  %s4165_s6 = sshll.u32 %s4322_s5, 4  ;;  %s4166_s6 = int_to_ptr.vmem [resolvable:$false] %s4165_s6 }
  0x87   : > { %s4167_s25 = scalar_lea.vmem %s4166_s6, 512  ;;  %p4168_p8 = scmp.lt.s32.totalorder %s4579_s15, %s4166_s6 }
  0x88   : > { %p4163_p3 = pnand %p4161_p2, %p4149_p4  ;;  %p4169_p9 = scmp.lt.s32.totalorder %s4167_s25, %s4160_s16 }
  0x8a   : > { %p4164_p6 = pneg %p4163_p3  ;;  %p4170_p7 = por %p4169_p9, %p4168_p8 }
  0x8c   : > { %p4171_p13 = pnand %p4170_p7, %p4164_p6 }
  0x8e   : > { %4174 = shalt.err (!%p4171_p13)
}
  0x8f   : > { %s4323_s4 = smov 64   ;;  %s4324_s14 = smov 4  }
  0x90   : > { %3778 = dma.hbm_to_vmem [thread:$0]  (!%p4575_p5), %s4573_s17, 256, %s4579_s15, %s4581_s3, %s4323_s4, %s4323_s4, %s4324_s14  }
  0x91   : > { %p5482_p4 = scmp.ne.s32.totalorder %s5469_s28, 0 }
  0x92   : > { %s556_s5 = sand.u32 (!%p5482_p4), 1, %s4303_s22   ;;  %p5483_p3 = scmp.ne.s32.totalorder (!%p5482_p4), %s5478_s13, 0 }
  0x93   : > { %554 = sbr.rel (%p5482_p4) target bundleno = 5444 (0x1544), region = 76  ;;  %s3378_s20 = sshll.u32 (!%p5482_p4), %s556_s5, 4 }
  0x94   : > { %s557_s6 = scalar_lea.sflag (!%p5482_p4), [#allocation8], %s556_s5  ;;  %s4605_s26 = scalar_lea.vmem (!%p5482_p4), [#allocation7], %s3378_s20 }
  0x98   : > { %4266 = dma.done.wait (%p5483_p3), %s557_s6, 256  }
  0x99   : > { %4268 = vsyncadd (%p5483_p3), %s557_s6, 4294967040  ;;  %p5484_p13 = scmp.eq.s32.totalorder %s4445_s27, 0 }
  0x9b   : > { %4270 = dma.done.wait (%p5484_p13), [#allocation11], 384   ;;  %p5485_p7 = pmov %p5484_p13 }
  0x9d   : > { %4272 = vsyncadd (%p5485_p7), [#allocation11], 4294966912  ;;  %p5486_p9 = pmov %p5485_p7 }
  0x9e   : > { %p5487_p5 = pmov %p5485_p7 }
  0x9f   : > { %4274 = dma.done.wait (%p5486_p9), [#allocation14], 32  }
  0xa0   : > { %4276 = vsyncadd (%p5487_p5), [#allocation14], 4294967264  ;;  %p5488_p10 = pmov %p5487_p5 }
  0xa1   : > { %p5489_p1 = pmov %p5487_p5 }
  0xa2   : > { %4278 = dma.done.wait (%p5488_p10), [#allocation17], 32  }
  0xa3   : > { %4280 = vsyncadd (%p5489_p1), [#allocation17], 4294967264  ;;  %p5490_p11 = pmov %p5489_p1 }
  0xa4   : > { %p5491_p12 = pmov %p5489_p1 }
  0xa5   : > { %4282 = dma.done.wait (%p5490_p11), [#allocation20], 512  }
  0xa6   : > { %4284 = vsyncadd (%p5491_p12), [#allocation20], 4294966784  ;;  %s3387_s3 = sshll.u32 %s4445_s27, 2  ;;  %s5492_s17 = sld [smem:[#allocation33_spill]] }
  0xa7   : > { %p643_p0 = scmp.lt.s32.totalorder %s3387_s3, 7  ;;  %s4633_s30 = scalar_lea.vmem [#allocation24], %s3378_s20 }
  0xa8   : > { %p5493_p2 = scmp.ne.s32.totalorder %s4445_s27, 0 }
  0xa9   : > { %s5517_s3 = smov (!%p643_p0, %s3387_s3), 7 }
  0xaa   : > { %s3388_s28 = sshll.u32 %s5517_s3, 2  ;;  %653 = sbr.rel (%p5493_p2) target bundleno = 180 (0xb4), region = 112 }
  0xac   : > { %s4631_s15 = scalar_lea.vmem %s5492_s17, %s3388_s28 }
  0xaf   : > { %vm654_vm0 = vcmask 257024   ;;  %vm657_vm1 = vcmask 519168   ;;  %vm659_vm2 = vcmask 60416   ;;  %v4325_v0 = vmov 0.0  }
  0xb0   : > { %655 = vst.msk [vmem:[#allocation2] sm:$0xf] %vm654_vm0, %v4325_v0  ;;  %656 = vst.msk [vmem:[#allocation3] sm:$0xf] %vm654_vm0, %v4325_v0  ;;  %vm661_vm3 = vcmask 125952  }
  0xb1   : > { %658 = vst.msk [vmem:[#allocation4] sm:$0xf] %vm657_vm1, %v4325_v0 }
  0xb2   : > { %660 = vst.msk [vmem:[#allocation5] sm:$0xf] %vm659_vm2, %v4325_v0 }
  0xb3   : > { %662 = vst.msk [vmem:[#allocation6] sm:$0xf] %vm661_vm3, %v4325_v0 }
  0xb4 PF: > { %v4640_v1 = vld [vmem:[%s5437_s2 + $0x38] sm:$0xff]  ;;  %v4645_v2 = vld [vmem:[%s5437_s2 + $0x30] sm:$0xff]  ;;  %v4650_v3 = vld [vmem:[%s5437_s2 + $0x28] sm:$0xff]  ;;  %v4326_v5 = vmov 0.0   ;;  %vm4327_vm4 = vmmov 0   ;;  %vm809_vm5 = vcmask 130048  }
  0xb5   : > { %762 = vmatprep.subr.mxu0 %v4640_v1  ;;  %v4656_v4 = vld [vmem:[%s5437_s2 + $0x20] sm:$0xff]  ;;  %802 = vmatprep.mubr.f32.mxu0 %v4326_v5  ;;  %v4663_v6 = vld [vmem:[%s5437_s2 + $0x18] sm:$0xff]  ;;  %v4670_v7 = vld [vmem:[%s5437_s2 + $0x10] sm:$0xff]  ;;  %vm734_vm6 = vcmask 261120   ;;  %s4328_s28 = smov 96   ;;  %s4329_s0 = smov 32  }
  0xb6   : > { %763 = vmatpush1.msra.mxu0 %v4645_v2  ;;  %3529 = vmatprep.subr.mxu1 %v4326_v5  ;;  %v4672_v8 = vld [vmem:[#allocation10 + $0x8] sm:$0xff]  ;;  %v4674_v9 = vld [vmem:[#allocation10] sm:$0xff]  ;;  %v4682_v10 = vld [vmem:[%s5437_s2 + $0x8] sm:$0xff]  ;;  %s4330_s16 = smov 120   ;;  %vm1073_vm9 = vcmask 64512   ;;  %s4331_s25 = smov 64  }
  0xb7   : > { %764 = vmatprep.subr.mxu0 %v4650_v3  ;;  %3533 = vmatprep.mubr.msk.f32.mxu1 %vm4327_vm4, %v4326_v5  ;;  %v732_v11 = vld [vmem:[%s4631_s15] sm:$0xf]  ;;  %v4708_v14 = vld [vmem:[%s5443_s8 + $0x18] sm:$0xff]  ;;  %v4715_v15 = vld [vmem:[%s5443_s8 + $0x10] sm:$0xff]  ;;  %s5494_s5 = sld [smem:[#allocation38_spill]]  ;;  %vm1244_vm0 = vcmask 257152  }
  0xb8   : > { %765 = vmatpush1.msra.mxu0 %v4656_v4  ;;  %3530 = vmatpush3.msra.mxu1 %v4672_v8  ;;  %v4690_v12 = vld [vmem:[%s5437_s2] sm:$0xff]  ;;  %v4722_v16 = vld [vmem:[%s5443_s8 + $0x8] sm:$0xff]  ;;  %v4735_v18 = vld [vmem:[%s5445_s10 + $0x18] sm:$0xff]  ;;  %vm3114_vm1 = vcmask 257024   ;;  %s4334_s20 = smov 16   ;;  %p3437_p6 = scmp.ne.s32.totalorder %s4445_s27, 1 }
  0xb9   : > { %766 = vmatprep.subr.mxu0 %v4663_v6  ;;  %3531 = vmatprep.subr.mxu1 %v4326_v5  ;;  %v727_v13 = vld [vmem:[#allocation2] sm:$0xf]  ;;  %v4743_v19 = vld [vmem:[%s5445_s10 + $0x10] sm:$0xff]  ;;  %v4750_v20 = vld [vmem:[%s5445_s10 + $0x8] sm:$0xff] }
  0xba   : > { %767 = vmatpush1.msra.mxu0 %v4670_v7  ;;  %3532 = vmatpush3.msra.mxu1 %v4674_v9  ;;  %v4729_v17 = vld [vmem:[%s5443_s8] sm:$0xff]  ;;  %v4761_v22 = vld [vmem:[#allocation4] sm:$0xf]  ;;  %v4765_v24 = vld [vmem:[#allocation13] ss:$0 sm:$0xff] }
  0xbb   : > { %768 = vmatprep.subr.mxu0 %v4682_v10  ;;  %3534 = vmatmul.mubr.msk.f32.vlgmr.msra.gmra.mxu1 %vm809_vm5, %v732_v11  ;;  %v4757_v21 = vld [vmem:[%s5445_s10] sm:$0xff]  ;;  %v4778_v31 = vld [vmem:[#allocation15] ss:$0 sm:$0xff]  ;;  %v4823_v63 = vld [vmem:[#allocation16] ss:$0 sm:$0xff] }
  0xbc   : > { %769 = vmatpush1.msra.mxu0 %v4690_v12  ;;  %3536 = vmatprep.subr.mxu1 %v4326_v5  ;;  %v4793_v38 = vld [vmem:[%s5446_s11] ss:$0 sm:$0xff]  ;;  %v4799_v47 = vld [vmem:[#allocation12] sm:$0xff]  ;;  %v4827_v11 = vld [vmem:[#allocation19 + $0x18] sm:$0xff] }
  0xbd   : > { %3396 = vmatmul.mubr.msk.f32.vlgmr.msra.gmra.mxu0 %vm734_vm6, %v727_v13  ;;  %3544 = vmatprep.mubr.msk.f32.mxu1 %vm4327_vm4, %v4326_v5  ;;  %v733_v55 = vld [vmem:[%s4605_s26] sm:$0xf] }
  0xbe   : > { %3547 = vmatprep.subr.mxu0 %v4326_v5  ;;  %3555 = vmatprep.mubr.msk.f32.mxu0 %vm4327_vm4, %v4326_v5  ;;  %v4829_v13 = vld [vmem:[#allocation19 + $0x10] sm:$0xff] }
  0xbf   : > { %3537 = vmatpush3.msra.mxu1 %v4708_v14  ;;  %3548 = vmatpush3.msra.mxu0 %v4735_v18 }
  0xc0   : > { %3538 = vmatprep.subr.mxu1 %v4326_v5  ;;  %3549 = vmatprep.subr.mxu0 %v4326_v5 }
  0xc1   : > { %3539 = vmatpush3.msra.mxu1 %v4715_v15  ;;  %3550 = vmatpush3.msra.mxu0 %v4743_v19 }
  0xc2   : > { %3540 = vmatprep.subr.mxu1 %v4326_v5  ;;  %3551 = vmatprep.subr.mxu0 %v4326_v5 }
  0xc3   : > { %3541 = vmatpush3.msra.mxu1 %v4722_v16  ;;  %3552 = vmatpush3.msra.mxu0 %v4750_v20 }
  0xc4   : > { %3542 = vmatprep.subr.mxu1 %v4326_v5  ;;  %3553 = vmatprep.subr.mxu0 %v4326_v5 }
  0xc5   : > { %3543 = vmatpush3.msra.mxu1 %v4729_v17  ;;  %3554 = vmatpush3.msra.mxu0 %v4757_v21 }
  0xc6   : > { %3558 = vmatprep.subr.mxu1 %v4326_v5  ;;  %3563 = vmatprep.subr.mxu0 %v4326_v5 }
 0x17b   : > { %v4763_v23 = vpop.f32.mrf.mxu1 }
 0x17d   : > { %v4767_v25 = vpop.f32.mrf.mxu0  ;;  %v3535_v26 = vpop.f32.mrf.mxu1 }
 0x17e   : > { %v883_v27 = vadd.f32 %v4767_v25, %v4761_v22  ;;  %974 = vrot.lane.b32.xlu0 %v4767_v25, %s4328_s28 }
 0x17f   : > { %v806_v28 = vpop.f32.mrf.mxu0 }
 0x180   : > { %v884_v29 = vadd.f32 %v4765_v24, %v883_v27  ;;  %1263 = vrot.lane.b32.xlu1 %v806_v28, %s4329_s0  ;;  %v4833_v27 = vld [vmem:[#allocation19 + $0x8] sm:$0xff]  ;;  %v728_v28 = vld [vmem:[#allocation3] sm:$0xf] }
 0x182   : > { %v885_v30 = vmax.f32 %v884_v29, 0.0  ;;  %v4838_v29 = vld [vmem:[#allocation19] sm:$0xff] }
 0x184   : > { %3545 = vmatmul.mubr.msk.f32.vlgmr.msra.gmra.mxu1 %vm734_vm6, %v885_v30 }
 0x185   : > { %3560 = vmatprep.mubr.msk.f32.mxu1 %vm4327_vm4, %v4326_v5  ;;  %3559 = vmatpush3.msra.mxu1 %v4799_v47 }
 0x186   : > { %1358 = vmatprep.subr.mxu1 %v4640_v1 }
 0x1f0   : > { %v4780_v32 = vpop.permute.xlu0 %974 }
 0x1f1   : > { %v977_v33 = vadd.f32 %v4780_v32, %v4763_v23 }
 0x1f2   : > { %v1264_v61 = vpop.permute.xlu1 %1263 }
 0x1f3   : > { %v978_v34 = vadd.f32 %v4778_v31, %v977_v33 }
 0x1f5   : > { %v979_v35 = vmax.f32 %v978_v34, 0.0 }
 0x1f7   : > { %3556 = vmatmul.mubr.msk.f32.vlgmr.msra.gmra.mxu0 %vm734_vm6, %v979_v35  ;;  %v3404_v35 = vld [vmem:[%s4631_s15 + $0x4] sm:$0xf] }
 0x1f8   : > { %3571 = vmatprep.mubr.msk.f32.mxu0 %vm4327_vm4, %v4326_v5  ;;  %3564 = vmatpush3.msra.mxu0 %v4827_v11 }
 0x1f9   : > { %3565 = vmatprep.subr.mxu0 %v4326_v5 }
 0x1fa   : > { %3566 = vmatpush3.msra.mxu0 %v4829_v13 }
 0x1fb   : > { %3567 = vmatprep.subr.mxu0 %v4326_v5 }
 0x1fc   : > { %3568 = vmatpush3.msra.mxu0 %v4833_v27 }
 0x1fd   : > { %3569 = vmatprep.subr.mxu0 %v4326_v5 }
 0x1fe   : > { %3570 = vmatpush3.msra.mxu0 %v4838_v29 }
 0x1ff   : > { %3592 = vmatprep.subr.mxu0 %v4326_v5 }
 0x244   : > { %v4788_v36 = vpop.f32.mrf.mxu1 }
 0x246   : > { %v3546_v37 = vpop.f32.mrf.mxu1 }
 0x2b7   : > { %v1049_v39 = vpop.f32.mrf.mxu0 }
 0x2b8   : > { %v4796_v40 = vadd.f32 %v4793_v38, %v1049_v39 }
 0x2b9   : > { %v3557_v41 = vpop.f32.mrf.mxu0 }
 0x2ba   : > { %v1054_v42 = vmin.f32 %v4796_v40, 20.0  ;;  %vm1053_vm8 = vcmp.gt.f32.partialorder %v4796_v40, 20.0 }
 0x2bc   : > { %v1055_v43 = vmul.f32 1.442695, %v1054_v42 }
 0x2be   : > { %3859 = vpow2.f32 %v1055_v43 }
 0x2cb   : > { %v3860_v44 = vpop.eup %3859 }
 0x2cc   : > { %v1057_v45 = vadd.f32 1.0, %v3860_v44  ;;  %v1060_v46 = vmul.f32 -0.5, %v3860_v44  ;;  %v1063_v49 = vand.u32 2147483647, %v3860_v44 }
 0x2ce   : > { %3861 = vlog2.f32 %v1057_v45  ;;  %v1061_v48 = vadd.f32 1.0, %v1060_v46  ;;  %vm1064_vm7 = vcmp.lt.f32.partialorder %v1063_v49, 0.0004427343 }
 0x2d0   : > { %v1062_v52 = vmul.f32 %v3860_v44, %v1061_v48 }
 0x2db   : > { %v3862_v50 = vpop.eup %3861 }
 0x2dc   : > { %v1059_v51 = vmul.f32 0.6931472, %v3862_v50 }
 0x2de   : > { %v1065_v53 = vsel %vm1064_vm7, %v1062_v52, %v1059_v51  ;;  %vm1255_vm7 = vcmask 125952  }
 0x2df   : > { %v4805_v54 = vsel %vm1053_vm8, %v4796_v40, %v1065_v53 }
 0x2e0   : > { %1068 = vrot.lane.b32.xlu0 %v4805_v54, %s4330_s16 }
 0x352   : > { %v1069_v56 = vpop.permute.xlu0 %1068 }
 0x353   : > { %v1071_v57 = vmul.f32 %v1069_v56, %v733_v55 }
 0x355   : > { %v1072_v58 = vadd.f32 %v1071_v57, %v4796_v40 }
 0x357   : > { %3561 = vmatmul.mubr.msk.f32.vlgmr.msra.gmra.mxu1 %vm1073_vm9, %v1072_v58 }
 0x358   : > { %1359 = vmatpush1.msra.mxu1 %v4645_v2  ;;  %1398 = vmatprep.mubr.f32.mxu1 %v4326_v5 }
 0x359   : > { %1360 = vmatprep.subr.mxu1 %v4650_v3 }
 0x35a   : > { %1361 = vmatpush1.msra.mxu1 %v4656_v4 }
 0x35b   : > { %1362 = vmatprep.subr.mxu1 %v4663_v6 }
 0x35c   : > { %1363 = vmatpush1.msra.mxu1 %v4670_v7 }
 0x35d   : > { %1364 = vmatprep.subr.mxu1 %v4682_v10 }
 0x35e   : > { %1365 = vmatpush1.msra.mxu1 %v4690_v12 }
 0x35f   : > { %3574 = vmatprep.subr.mxu1 %v4326_v5 }
 0x417   : > { %v1143_v59 = vpop.f32.mrf.mxu1 }
 0x418   : > { %v1261_v60 = vadd.f32 %v1143_v59, %v4763_v23  ;;  %1148 = vrot.lane.b32.xlu0 %v1143_v59, %s4329_s0 }
 0x419   : > { %v3562_v62 = vpop.f32.mrf.mxu1 }
 0x41a   : > { %v1266_v0 = vadd.f32 %v1264_v61, %v1261_v60 }
 0x41c   : > { %3863 = vtanh.f32 %v1266_v0  ;;  %1158 = vrot.lane.b32.xlu0 %v4823_v63, %s4329_s0 }
 0x429   : > { %v3864_v26 = vpop.eup %3863 }
 0x42a   : > { %1330 = vrot.lane.b32.xlu1 %v3864_v26, %s4328_s28 }
 0x42e   : > { %1154 = vrot.lane.b32.xlu1 %v728_v28, %s4329_s0 }
 0x48a   : > { %v1149_v30 = vpop.permute.xlu0 %1148 }
 0x48b   : > { %v1151_v33 = vadd.f32 %v1149_v30, %v4761_v22 }
 0x48d   : > { %v1152_v37 = vadd.f32 %v1151_v33, %v4780_v32 }
 0x48e   : > { %v1159_v41 = vpop.permute.xlu0 %1158 }
 0x49c   : > { %v1331_v34 = vpop.permute.xlu1 %1330 }
 0x49d   : > { %3406 = vmatmul.mubr.msk.f32.vlgmr.msra.gmra.mxu1 %vm734_vm6, %v1331_v34 }
 0x49e   : > { %3575 = vmatpush3.msra.mxu1 %v4672_v8  ;;  %3578 = vmatprep.mubr.msk.f32.mxu1 %vm4327_vm4, %v4326_v5 }
 0x49f   : > { %3576 = vmatprep.subr.mxu1 %v4326_v5 }
 0x4a0   : > { %v1155_v39 = vpop.permute.xlu1 %1154  ;;  %3577 = vmatpush3.msra.mxu1 %v4674_v9 }
 0x4a1   : > { %v1157_v42 = vadd.f32 %v1155_v39, %v1152_v37  ;;  %3579 = vmatmul.mubr.msk.f32.vlgmr.msra.gmra.mxu1 %vm809_vm5, %v3404_v35  ;;  %3581 = vmatprep.subr.mxu1 %v4326_v5 }
 0x4a2   : > { %3582 = vmatpush3.msra.mxu1 %v4708_v14  ;;  %3589 = vmatprep.mubr.msk.f32.mxu1 %vm4327_vm4, %v4326_v5 }
 0x4a3   : > { %v1161_v22 = vadd.f32 %v1159_v41, %v1157_v42  ;;  %3583 = vmatprep.subr.mxu1 %v4326_v5 }
 0x4a4   : > { %3584 = vmatpush3.msra.mxu1 %v4715_v15 }
 0x4a5   : > { %v1162_v32 = vmax.f32 %v1161_v22, 0.0  ;;  %3585 = vmatprep.subr.mxu1 %v4326_v5 }
 0x4a6   : > { %3586 = vmatpush3.msra.mxu1 %v4722_v16 }
 0x4a7   : > { %1164 = vrot.lane.b32.xlu1 %v1162_v32, %s4328_s28  ;;  %3587 = vmatprep.subr.mxu1 %v4326_v5 }
 0x4a8   : > { %3588 = vmatpush3.msra.mxu1 %v4729_v17 }
 0x4a9   : > { %3603 = vmatprep.subr.mxu1 %v4326_v5 }
 0x519   : > { %v1165_v43 = vpop.permute.xlu1 %1164 }
 0x51a   : > { %3572 = vmatmul.mubr.msk.f32.vlgmr.msra.gmra.mxu0 %vm734_vm6, %v1165_v43 }
 0x51b   : > { %3593 = vmatpush3.msra.mxu0 %v4735_v18  ;;  %3600 = vmatprep.mubr.msk.f32.mxu0 %vm4327_vm4, %v4326_v5 }
 0x51c   : > { %3594 = vmatprep.subr.mxu0 %v4326_v5 }
 0x51d   : > { %3595 = vmatpush3.msra.mxu0 %v4743_v19 }
 0x51e   : > { %3596 = vmatprep.subr.mxu0 %v4326_v5 }
 0x51f   : > { %3597 = vmatpush3.msra.mxu0 %v4750_v20 }
 0x520   : > { %3598 = vmatprep.subr.mxu0 %v4326_v5 }
 0x521   : > { %3599 = vmatpush3.msra.mxu0 %v4757_v21 }
 0x522   : > { %3608 = vmatprep.subr.mxu0 %v4326_v5 }
 0x55d   : > { %v4878_v44 = vpop.f32.mrf.mxu1 }
 0x55e   : > { %1479 = vrot.lane.b32.xlu1 %v4878_v44, %s4331_s25  ;;  %1577 = vrot.lane.b32.xlu0 %v4878_v44, %s4328_s28 }
 0x55f   : > { %v1402_v45 = vpop.f32.mrf.mxu1 }
 0x561   : > { %v4884_v46 = vpop.f32.mrf.mxu1 }
 0x562   : > { %1483 = vrot.lane.b32.xlu0 %v4765_v24, %s4331_s25 }
 0x563   : > { %v3580_v48 = vpop.f32.mrf.mxu1 }
 0x564   : > { %v3405_v48 = vld [vmem:[%s4605_s26 + $0x4] sm:$0xf] }
 0x5d0   : > { %v1480_v49 = vpop.permute.xlu1 %1479  ;;  %v1578_v50 = vpop.permute.xlu0 %1577 }
 0x5d1   : > { %v1580_v51 = vadd.f32 %v1578_v50, %v4884_v46  ;;  %v1482_v52 = vadd.f32 %v1480_v49, %v4763_v23 }
 0x5d3   : > { %v1581_v53 = vadd.f32 %v4778_v31, %v1580_v51 }
 0x5d4   : > { %v4891_v55 = vpop.permute.xlu0 %1483 }
 0x5d5   : > { %v1582_v56 = vmax.f32 %v1581_v53, 0.0  ;;  %v1486_v57 = vadd.f32 %v4891_v55, %v1482_v52 }
 0x5d7   : > { %3601 = vmatmul.mubr.msk.f32.vlgmr.msra.gmra.mxu0 %vm734_vm6, %v1582_v56  ;;  %v1487_v58 = vmax.f32 %v1486_v57, 0.0 }
 0x5d8   : > { %3609 = vmatpush3.msra.mxu0 %v4827_v11  ;;  %3616 = vmatprep.mubr.msk.f32.mxu0 %vm4327_vm4, %v4326_v5 }
 0x5d9   : > { %1489 = vrot.lane.b32.xlu1 %v1487_v58, %s4331_s25  ;;  %3610 = vmatprep.subr.mxu0 %v4326_v5 }
 0x5da   : > { %v4900_v24 = vpop.f32.mrf.mxu0  ;;  %3611 = vmatpush3.msra.mxu0 %v4829_v13 }
 0x5db   : > { %3612 = vmatprep.subr.mxu0 %v4326_v5 }
 0x5dc   : > { %v3573_v59 = vpop.f32.mrf.mxu0  ;;  %3613 = vmatpush3.msra.mxu0 %v4833_v27 }
 0x5dd   : > { %1862 = vrot.lane.b32.xlu1 %v1402_v45, %s4329_s0  ;;  %3614 = vmatprep.subr.mxu0 %v4326_v5 }
 0x5de   : > { %3615 = vmatpush3.msra.mxu0 %v4838_v29 }
 0x5df   : > { %3619 = vmatprep.subr.mxu0 %v4326_v5 }
 0x5e1   : > { %1754 = vrot.lane.b32.xlu1 %v4878_v44, %s4329_s0 }
 0x64b   : > { %v1490_v60 = vpop.permute.xlu1 %1489 }
 0x64c   : > { %3590 = vmatmul.mubr.msk.f32.vlgmr.msra.gmra.mxu1 %vm734_vm6, %v1490_v60 }
 0x64d   : > { %3604 = vmatpush3.msra.mxu1 %v4799_v47  ;;  %3605 = vmatprep.mubr.msk.f32.mxu1 %vm4327_vm4, %v4326_v5 }
 0x64e   : > { %1957 = vmatprep.subr.mxu1 %v4640_v1 }
 0x64f   : > { %v1863_v56 = vpop.permute.xlu1 %1862 }
 0x697   : > { %v1652_v61 = vpop.f32.mrf.mxu0 }
 0x698   : > { %v4917_v62 = vadd.f32 %v4793_v38, %v1652_v61 }
 0x699   : > { %v3602_v0 = vpop.f32.mrf.mxu0 }
 0x69a   : > { %v1657_v26 = vmin.f32 %v4917_v62, 20.0  ;;  %vm1656_vm11 = vcmp.gt.f32.partialorder %v4917_v62, 20.0  ;;  %v1755_v0 = vpop.permute.xlu1 %1754 }
 0x69c   : > { %v1658_v28 = vmul.f32 1.442695, %v1657_v26 }
 0x69e   : > { %3865 = vpow2.f32 %v1658_v28 }
 0x6ab   : > { %v3866_v30 = vpop.eup %3865 }
 0x6ac   : > { %v1660_v33 = vadd.f32 1.0, %v3866_v30  ;;  %v1663_v34 = vmul.f32 -0.5, %v3866_v30  ;;  %v1666_v37 = vand.u32 2147483647, %v3866_v30 }
 0x6ae   : > { %3867 = vlog2.f32 %v1660_v33  ;;  %v1664_v35 = vadd.f32 1.0, %v1663_v34  ;;  %vm1667_vm10 = vcmp.lt.f32.partialorder %v1666_v37, 0.0004427343 }
 0x6b0   : > { %v1665_v42 = vmul.f32 %v3866_v30, %v1664_v35 }
 0x6bb   : > { %v3868_v39 = vpop.eup %3867 }
 0x6bc   : > { %v1662_v41 = vmul.f32 0.6931472, %v3868_v39 }
 0x6be   : > { %v1668_v22 = vsel %vm1667_vm10, %v1665_v42, %v1662_v41 }
 0x6bf   : > { %v4922_v32 = vsel %vm1656_vm11, %v4917_v62, %v1668_v22 }
 0x6c0   : > { %1671 = vrot.lane.b32.xlu0 %v4922_v32, %s4330_s16 }
 0x70c   : > { %v4926_v43 = vpop.f32.mrf.mxu1 }
 0x70e   : > { %v3591_v45 = vpop.f32.mrf.mxu1 }
 0x732   : > { %v1672_v49 = vpop.permute.xlu0 %1671 }
 0x733   : > { %v1674_v50 = vmul.f32 %v3405_v48, %v1672_v49 }
 0x735   : > { %v1675_v51 = vadd.f32 %v1674_v50, %v4917_v62 }
 0x737   : > { %3606 = vmatmul.mubr.msk.f32.vlgmr.msra.gmra.mxu1 %vm1073_vm9, %v1675_v51 }
 0x738   : > { %1958 = vmatpush1.msra.mxu1 %v4645_v2  ;;  %1997 = vmatprep.mubr.f32.mxu1 %v4326_v5 }
 0x739   : > { %1959 = vmatprep.subr.mxu1 %v4650_v3 }
 0x73a   : > { %1960 = vmatpush1.msra.mxu1 %v4656_v4 }
 0x73b   : > { %1961 = vmatprep.subr.mxu1 %v4663_v6 }
 0x73c   : > { %1962 = vmatpush1.msra.mxu1 %v4670_v7 }
 0x73d   : > { %1963 = vmatprep.subr.mxu1 %v4682_v10 }
 0x73e   : > { %1964 = vmatpush1.msra.mxu1 %v4690_v12 }
 0x73f   : > { %3626 = vmatprep.subr.mxu1 %v4326_v5 }
 0x7f7   : > { %v1745_v52 = vpop.f32.mrf.mxu1 }
 0x7f8   : > { %v1860_v53 = vadd.f32 %v1745_v52, %v4884_v46  ;;  %1750 = vrot.lane.b32.xlu0 %v1745_v52, %s4328_s28 }
 0x7f9   : > { %v3607_v57 = vpop.f32.mrf.mxu1 }
 0x7fa   : > { %v1865_v58 = vadd.f32 %v1863_v56, %v1860_v53 }
 0x7fc   : > { %3869 = vtanh.f32 %v1865_v58  ;;  %1759 = vrot.lane.b32.xlu0 %v4823_v63, %s4328_s28 }
 0x809   : > { %v3870_v59 = vpop.eup %3869 }
 0x80a   : > { %1929 = vrot.lane.b32.xlu1 %v3870_v59, %s4328_s28 }
 0x86a   : > { %v1751_v60 = vpop.permute.xlu0 %1750 }
 0x86b   : > { %v1753_v61 = vadd.f32 %v1751_v60, %v4763_v23 }
 0x86d   : > { %v1757_v26 = vadd.f32 %v1755_v0, %v1753_v61 }
 0x86e   : > { %v4946_v28 = vpop.permute.xlu0 %1759 }
 0x86f   : > { %v1758_v30 = vadd.f32 %v1757_v26, %v4767_v25  ;;  %v4967_v25 = vld [vmem:[%s4631_s15 + $0x8] sm:$0xf] }
 0x871   : > { %v1762_v33 = vadd.f32 %v4946_v28, %v1758_v30 }
 0x873   : > { %v1763_v34 = vmax.f32 %v1762_v33, 0.0 }
 0x875   : > { %1765 = vrot.lane.b32.xlu0 %v1763_v34, %s4329_s0 }
 0x87c   : > { %v1930_v35 = vpop.permute.xlu1 %1929 }
 0x87d   : > { %3417 = vmatmul.mubr.msk.f32.vlgmr.msra.gmra.mxu1 %vm734_vm6, %v1930_v35 }
 0x87e   : > { %3627 = vmatpush3.msra.mxu1 %v4708_v14  ;;  %3634 = vmatprep.mubr.msk.f32.mxu1 %vm4327_vm4, %v4326_v5 }
 0x87f   : > { %3628 = vmatprep.subr.mxu1 %v4326_v5 }
 0x880   : > { %3629 = vmatpush3.msra.mxu1 %v4715_v15 }
 0x881   : > { %3630 = vmatprep.subr.mxu1 %v4326_v5 }
 0x882   : > { %3631 = vmatpush3.msra.mxu1 %v4722_v16 }
 0x883   : > { %3632 = vmatprep.subr.mxu1 %v4326_v5 }
 0x884   : > { %3633 = vmatpush3.msra.mxu1 %v4729_v17 }
 0x885   : > { %3648 = vmatprep.subr.mxu1 %v4326_v5 }
 0x8e7   : > { %v1766_v23 = vpop.permute.xlu0 %1765 }
 0x8e8   : > { %3617 = vmatmul.mubr.msk.f32.vlgmr.msra.gmra.mxu0 %vm734_vm6, %v1766_v23 }
 0x8e9   : > { %3620 = vmatpush3.msra.mxu0 %v4672_v8  ;;  %3623 = vmatprep.mubr.msk.f32.mxu0 %vm4327_vm4, %v4326_v5 }
 0x8ea   : > { %3621 = vmatprep.subr.mxu0 %v4326_v5 }
 0x8eb   : > { %3622 = vmatpush3.msra.mxu0 %v4674_v9 }
 0x8ec   : > { %3624 = vmatmul.mubr.msk.f32.vlgmr.msra.gmra.mxu0 %vm809_vm5, %v4967_v25  ;;  %3637 = vmatprep.subr.mxu0 %v4326_v5 }
 0x8ed   : > { %3638 = vmatpush3.msra.mxu0 %v4735_v18  ;;  %3645 = vmatprep.mubr.msk.f32.mxu0 %vm4327_vm4, %v4326_v5 }
 0x8ee   : > { %3639 = vmatprep.subr.mxu0 %v4326_v5 }
 0x8ef   : > { %3640 = vmatpush3.msra.mxu0 %v4743_v19 }
 0x8f0   : > { %3641 = vmatprep.subr.mxu0 %v4326_v5 }
 0x8f1   : > { %3642 = vmatpush3.msra.mxu0 %v4750_v20 }
 0x8f2   : > { %3643 = vmatprep.subr.mxu0 %v4326_v5 }
 0x8f3   : > { %3644 = vmatpush3.msra.mxu0 %v4757_v21 }
 0x8f4   : > { %3653 = vmatprep.subr.mxu0 %v4326_v5 }
 0x93d   : > { %v4984_v63 = vpop.f32.mrf.mxu1 }
 0x93e   : > { %2078 = vrot.lane.b32.xlu0 %v4984_v63, %s4331_s25  ;;  %2173 = vrot.lane.b32.xlu1 %v4984_v63, %s4328_s28 }
 0x93f   : > { %v2001_v56 = vpop.f32.mrf.mxu1 }
 0x9a8   : > { %v4990_v37 = vpop.f32.mrf.mxu0 }
 0x9aa   : > { %v3618_v39 = vpop.f32.mrf.mxu0 }
 0x9ac   : > { %v4992_v41 = vpop.f32.mrf.mxu0 }
 0x9ae   : > { %v3625_v42 = vpop.f32.mrf.mxu0 }
 0x9b0   : > { %v2079_v22 = vpop.permute.xlu0 %2078  ;;  %v2174_v45 = vpop.permute.xlu1 %2173 }
 0x9b1   : > { %v2081_v48 = vadd.f32 %v2079_v22, %v4884_v46  ;;  %v2176_v49 = vadd.f32 %v2174_v45, %v4992_v41 }
 0x9b3   : > { %v2082_v50 = vadd.f32 %v2081_v48, %v4891_v55  ;;  %v2177_v51 = vadd.f32 %v4778_v31, %v2176_v49  ;;  %v3416_v49 = vld [vmem:[%s4605_s26 + $0x8] sm:$0xf] }
 0x9b5   : > { %v2083_v52 = vmax.f32 %v2082_v50, 0.0  ;;  %v2178_v53 = vmax.f32 %v2177_v51, 0.0 }
 0x9b7   : > { %2085 = vrot.lane.b32.xlu1 %v2083_v52, %s4331_s25  ;;  %3646 = vmatmul.mubr.msk.f32.vlgmr.msra.gmra.mxu0 %vm734_vm6, %v2178_v53 }
 0x9b8   : > { %3654 = vmatpush3.msra.mxu0 %v4827_v11  ;;  %3661 = vmatprep.mubr.msk.f32.mxu0 %vm4327_vm4, %v4326_v5 }
 0x9b9   : > { %3655 = vmatprep.subr.mxu0 %v4326_v5 }
 0x9ba   : > { %3656 = vmatpush3.msra.mxu0 %v4829_v13 }
 0x9bb   : > { %2455 = vrot.lane.b32.xlu1 %v2001_v56, %s4329_s0  ;;  %3657 = vmatprep.subr.mxu0 %v4326_v5 }
 0x9bc   : > { %3658 = vmatpush3.msra.mxu0 %v4833_v27 }
 0x9bd   : > { %3659 = vmatprep.subr.mxu0 %v4326_v5 }
 0x9be   : > { %3660 = vmatpush3.msra.mxu0 %v4838_v29 }
 0x9bf   : > { %2350 = vrot.lane.b32.xlu1 %v4984_v63, %s4329_s0  ;;  %3664 = vmatprep.subr.mxu0 %v4326_v5 }
 0xa29   : > { %v2086_v57 = vpop.permute.xlu1 %2085 }
 0xa2a   : > { %3635 = vmatmul.mubr.msk.f32.vlgmr.msra.gmra.mxu1 %vm734_vm6, %v2086_v57 }
 0xa2b   : > { %3649 = vmatpush3.msra.mxu1 %v4799_v47  ;;  %3650 = vmatprep.mubr.msk.f32.mxu1 %vm4327_vm4, %v4326_v5 }
 0xa2c   : > { %2550 = vmatprep.subr.mxu1 %v4640_v1 }
 0xa77   : > { %v2248_v58 = vpop.f32.mrf.mxu0 }
 0xa78   : > { %v5019_v59 = vadd.f32 %v4793_v38, %v2248_v58 }
 0xa79   : > { %v3647_v60 = vpop.f32.mrf.mxu0 }
 0xa7a   : > { %v2253_v61 = vmin.f32 %v5019_v59, 20.0  ;;  %vm2252_vm13 = vcmp.gt.f32.partialorder %v5019_v59, 20.0 }
 0xa7c   : > { %v2254_v0 = vmul.f32 1.442695, %v2253_v61 }
 0xa7e   : > { %3871 = vpow2.f32 %v2254_v0 }
 0xa8b   : > { %v3872_v26 = vpop.eup %3871 }
 0xa8c   : > { %v2256_v30 = vadd.f32 1.0, %v3872_v26  ;;  %v2259_v33 = vmul.f32 -0.5, %v3872_v26  ;;  %v2262_v35 = vand.u32 2147483647, %v3872_v26 }
 0xa8e   : > { %3873 = vlog2.f32 %v2256_v30  ;;  %v2260_v34 = vadd.f32 1.0, %v2259_v33  ;;  %vm2263_vm12 = vcmp.lt.f32.partialorder %v2262_v35, 0.0004427343 }
 0xa90   : > { %v2261_v42 = vmul.f32 %v3872_v26, %v2260_v34 }
 0xa9b   : > { %v3874_v23 = vpop.eup %3873 }
 0xa9c   : > { %v2258_v39 = vmul.f32 0.6931472, %v3874_v23 }
 0xa9e   : > { %v2264_v1 = vsel %vm2263_vm12, %v2261_v42, %v2258_v39 }
 0xa9f   : > { %v5024_v22 = vsel %vm2252_vm13, %v5019_v59, %v2264_v1 }
 0xaa0   : > { %2267 = vrot.lane.b32.xlu0 %v5024_v22, %s4330_s16 }
 0xaea   : > { %v5028_v45 = vpop.f32.mrf.mxu1 }
 0xaec   : > { %v3636_v48 = vpop.f32.mrf.mxu1 }
 0xb12   : > { %v2268_v50 = vpop.permute.xlu0 %2267 }
 0xb13   : > { %v2270_v51 = vmul.f32 %v3416_v49, %v2268_v50  ;;  %v5121_v49 = vld [vmem:[%s5494_s5] ss:$0 sm:$0xff] }
 0xb14   : > { %v5125_v50 = vadd.f32 %v5121_v49, %v4900_v24 }
 0xb15   : > { %v2271_v52 = vadd.f32 %v2270_v51, %v5019_v59 }
 0xb16   : > { %v1245_v51 = vsel %vm1244_vm0, %v5125_v50, -inf }
 0xb17   : > { %3651 = vmatmul.mubr.msk.f32.vlgmr.msra.gmra.mxu1 %vm1073_vm9, %v2271_v52 }
 0xb18   : > { %2551 = vmatpush1.msra.mxu1 %v4645_v2  ;;  %2590 = vmatprep.mubr.f32.mxu1 %v4326_v5  ;;  %v2456_v2 = vpop.permute.xlu1 %2455 }
 0xb19   : > { %2552 = vmatprep.subr.mxu1 %v4650_v3 }
 0xb1a   : > { %2553 = vmatpush1.msra.mxu1 %v4656_v4 }
 0xb1b   : > { %2554 = vmatprep.subr.mxu1 %v4663_v6 }
 0xb1c   : > { %2555 = vmatpush1.msra.mxu1 %v4670_v7 }
 0xb1d   : > { %2556 = vmatprep.subr.mxu1 %v4682_v10  ;;  %v2351_v10 = vpop.permute.xlu1 %2350 }
 0xb1e   : > { %2557 = vmatpush1.msra.mxu1 %v4690_v12 }
 0xb1f   : > { %3671 = vmatprep.subr.mxu1 %v4326_v5 }
 0xbd7   : > { %v2341_v53 = vpop.f32.mrf.mxu1 }
 0xbd8   : > { %v2453_v56 = vadd.f32 %v2341_v53, %v4992_v41  ;;  %2346 = vrot.lane.b32.xlu0 %v2341_v53, %s4328_s28 }
 0xbd9   : > { %v3652_v57 = vpop.f32.mrf.mxu1 }
 0xbda   : > { %v2458_v3 = vadd.f32 %v2456_v2, %v2453_v56  ;;  %v3427_v2 = vld [vmem:[%s4605_s26 + $0xc] sm:$0xf]  ;;  %s4332_s26 = smov 112  }
 0xbdc   : > { %3875 = vtanh.f32 %v2458_v3 }
 0xbe9   : > { %v3876_v4 = vpop.eup %3875 }
 0xbea   : > { %2522 = vrot.lane.b32.xlu0 %v3876_v4, %s4328_s28 }
 0xc4a   : > { %v2347_v6 = vpop.permute.xlu0 %2346 }
 0xc4b   : > { %v2349_v7 = vadd.f32 %v2347_v6, %v4884_v46 }
 0xc4d   : > { %v2353_v58 = vadd.f32 %v2351_v10, %v2349_v7 }
 0xc4f   : > { %v2354_v12 = vadd.f32 %v2353_v58, %v4878_v44 }
 0xc51   : > { %v2355_v60 = vadd.f32 %v2354_v12, %v4946_v28 }
 0xc53   : > { %v2356_v61 = vmax.f32 %v2355_v60, 0.0 }
 0xc55   : > { %2358 = vrot.lane.b32.xlu1 %v2356_v61, %s4329_s0 }
 0xc5c   : > { %v2523_v0 = vpop.permute.xlu0 %2522 }
 0xc5d   : > { %3428 = vmatmul.mubr.msk.f32.vlgmr.msra.gmra.mxu1 %vm734_vm6, %v2523_v0 }
 0xc5e   : > { %3672 = vmatpush3.msra.mxu1 %v4708_v14  ;;  %3679 = vmatprep.mubr.msk.f32.mxu1 %vm4327_vm4, %v4326_v5  ;;  %v5065_v14 = vld [vmem:[%s4631_s15 + $0xc] sm:$0xf] }
 0xc5f   : > { %3673 = vmatprep.subr.mxu1 %v4326_v5 }
 0xc60   : > { %3674 = vmatpush3.msra.mxu1 %v4715_v15 }
 0xc61   : > { %3675 = vmatprep.subr.mxu1 %v4326_v5 }
 0xc62   : > { %3676 = vmatpush3.msra.mxu1 %v4722_v16 }
 0xc63   : > { %3677 = vmatprep.subr.mxu1 %v4326_v5 }
 0xc64   : > { %3678 = vmatpush3.msra.mxu1 %v4729_v17 }
 0xc65   : > { %3693 = vmatprep.subr.mxu1 %v4326_v5 }
 0xcc7   : > { %v2359_v44 = vpop.permute.xlu1 %2358 }
 0xcc8   : > { %3662 = vmatmul.mubr.msk.f32.vlgmr.msra.gmra.mxu0 %vm734_vm6, %v2359_v44  ;;  %v5147_v44 = vadd.f32 %v5121_v49, %v4990_v37 }
 0xcc9   : > { %3665 = vmatpush3.msra.mxu0 %v4672_v8  ;;  %3668 = vmatprep.mubr.msk.f32.mxu0 %vm4327_vm4, %v4326_v5 }
 0xcca   : > { %3666 = vmatprep.subr.mxu0 %v4326_v5 }
 0xccb   : > { %3667 = vmatpush3.msra.mxu0 %v4674_v9 }
 0xccc   : > { %3669 = vmatmul.mubr.msk.f32.vlgmr.msra.gmra.mxu0 %vm809_vm5, %v5065_v14  ;;  %3682 = vmatprep.subr.mxu0 %v4326_v5 }
 0xccd   : > { %3683 = vmatpush3.msra.mxu0 %v4735_v18  ;;  %3690 = vmatprep.mubr.msk.f32.mxu0 %vm4327_vm4, %v4326_v5 }
 0xcce   : > { %3684 = vmatprep.subr.mxu0 %v4326_v5 }
 0xccf   : > { %3685 = vmatpush3.msra.mxu0 %v4743_v19 }
 0xcd0   : > { %3686 = vmatprep.subr.mxu0 %v4326_v5 }
 0xcd1   : > { %3687 = vmatpush3.msra.mxu0 %v4750_v20 }
 0xcd2   : > { %3688 = vmatprep.subr.mxu0 %v4326_v5 }
 0xcd3   : > { %3689 = vmatpush3.msra.mxu0 %v4757_v21 }
 0xcd4   : > { %3698 = vmatprep.subr.mxu0 %v4326_v5 }
 0xd1d   : > { %v2592_v8 = vpop.f32.mrf.mxu1 }
 0xd1e   : > { %2671 = vrot.lane.b32.xlu1 %v2592_v8, %s4331_s25  ;;  %2766 = vrot.lane.b32.xlu0 %v2592_v8, %s4328_s28 }
 0xd1f   : > { %v5129_v52 = vpop.f32.mrf.mxu1 }
 0xd88   : > { %v5084_v9 = vpop.f32.mrf.mxu0 }
 0xd8a   : > { %v3663_v15 = vpop.f32.mrf.mxu0 }
 0xd8b   : > { %v1845_v15 = vsel %vm1244_vm0, %v5147_v44, -inf }
 0xd8c   : > { %v5086_v16 = vpop.f32.mrf.mxu0 }
 0xd8e   : > { %v3670_v17 = vpop.f32.mrf.mxu0 }
 0xd90   : > { %v2672_v18 = vpop.permute.xlu1 %2671  ;;  %v2767_v19 = vpop.permute.xlu0 %2766 }
 0xd91   : > { %v2674_v20 = vadd.f32 %v2672_v18, %v4992_v41  ;;  %v2769_v46 = vadd.f32 %v2767_v19, %v5086_v16 }
 0xd93   : > { %v2675_v21 = vadd.f32 %v2674_v20, %v4891_v55  ;;  %v2770_v26 = vadd.f32 %v4778_v31, %v2769_v46 }
 0xd95   : > { %v2676_v30 = vmax.f32 %v2675_v21, 0.0  ;;  %v2771_v33 = vmax.f32 %v2770_v26, 0.0 }
 0xd97   : > { %2678 = vrot.lane.b32.xlu0 %v2676_v30, %s4331_s25  ;;  %3691 = vmatmul.mubr.msk.f32.vlgmr.msra.gmra.mxu0 %vm734_vm6, %v2771_v33 }
 0xd98   : > { %3699 = vmatpush3.msra.mxu0 %v4827_v11  ;;  %3706 = vmatprep.mubr.msk.f32.mxu0 %vm4327_vm4, %v4326_v5 }
 0xd99   : > { %3700 = vmatprep.subr.mxu0 %v4326_v5 }
 0xd9a   : > { %3701 = vmatpush3.msra.mxu0 %v4829_v13 }
 0xd9b   : > { %3702 = vmatprep.subr.mxu0 %v4326_v5 }
 0xd9c   : > { %3703 = vmatpush3.msra.mxu0 %v4833_v27 }
 0xd9d   : > { %3704 = vmatprep.subr.mxu0 %v4326_v5 }
 0xd9e   : > { %3705 = vmatpush3.msra.mxu0 %v4838_v29 }
 0xe09   : > { %v2679_v31 = vpop.permute.xlu0 %2678 }
 0xe0a   : > { %3680 = vmatmul.mubr.msk.f32.vlgmr.msra.gmra.mxu1 %vm734_vm6, %v2679_v31 }
 0xe0b   : > { %3694 = vmatpush3.msra.mxu1 %v4799_v47  ;;  %3695 = vmatprep.mubr.msk.f32.mxu1 %vm4327_vm4, %v4326_v5 }
 0xe57   : > { %v2841_v11 = vpop.f32.mrf.mxu0 }
 0xe58   : > { %v5108_v55 = vadd.f32 %v4793_v38, %v2841_v11 }
 0xe59   : > { %v3692_v13 = vpop.f32.mrf.mxu0 }
 0xe5a   : > { %v2846_v34 = vmin.f32 %v5108_v55, 20.0  ;;  %vm2845_vm15 = vcmp.gt.f32.partialorder %v5108_v55, 20.0 }
 0xe5c   : > { %v2847_v27 = vmul.f32 1.442695, %v2846_v34 }
 0xe5e   : > { %3877 = vpow2.f32 %v2847_v27 }
 0xe6b   : > { %v3878_v35 = vpop.eup %3877 }
 0xe6c   : > { %v2849_v23 = vadd.f32 1.0, %v3878_v35  ;;  %v2852_v29 = vmul.f32 -0.5, %v3878_v35  ;;  %v2855_v42 = vand.u32 2147483647, %v3878_v35 }
 0xe6e   : > { %3879 = vlog2.f32 %v2849_v23  ;;  %v2853_v39 = vadd.f32 1.0, %v2852_v29  ;;  %vm2856_vm14 = vcmp.lt.f32.partialorder %v2855_v42, 0.0004427343 }
 0xe70   : > { %v2854_v48 = vmul.f32 %v3878_v35, %v2853_v39 }
 0xe7b   : > { %v3880_v1 = vpop.eup %3879 }
 0xe7c   : > { %v2851_v47 = vmul.f32 0.6931472, %v3880_v1 }
 0xe7e   : > { %v2857_v5 = vsel %vm2856_vm14, %v2854_v48, %v2851_v47 }
 0xe7f   : > { %v5113_v38 = vsel %vm2845_vm15, %v5108_v55, %v2857_v5 }
 0xe80   : > { %2860 = vrot.lane.b32.xlu1 %v5113_v38, %s4330_s16 }
 0xe84   : > { %2943 = vrot.lane.b32.xlu1 %v2592_v8, %s4329_s0  ;;  %v5151_v8 = vadd.f32 %v5121_v49, %v5084_v9  ;;  %v3393_v9 = vld [vmem:[#allocation18] ss:$0 sm:$0xff] }
 0xe85   : > { %v5164_v19 = vadd.f32 %v3393_v9, %v5028_v45  ;;  %v5179_v1 = vadd.f32 %v3393_v9, %v4788_v36  ;;  %v5183_v5 = vadd.f32 %v3393_v9, %v4926_v43  ;;  %v1296_v36 = vmin.f32 %v5125_v50, 20.0 }
 0xe87   : > { %v2160_v20 = vmin.f32 %v5164_v19, 20.0  ;;  %vm2159_vm3 = vcmp.gt.f32.partialorder %v5164_v19, 20.0  ;;  %v960_v47 = vmin.f32 %v5179_v1, 20.0  ;;  %v1297_v43 = vmul.f32 1.442695, %v1296_v36 }
 0xe88   : > { %vm959_vm8 = vcmp.gt.f32.partialorder %v5179_v1, 20.0  ;;  %vm1563_vm11 = vcmp.gt.f32.partialorder %v5183_v5, 20.0 }
 0xe89   : > { %v2161_v46 = vmul.f32 1.442695, %v2160_v20  ;;  %v961_v48 = vmul.f32 1.442695, %v960_v47 }
 0xea8   : > { %1246 = vmax.xlane.f32.xlu1 %v1245_v51 }
 0xeca   : > { %v5131_v53 = vpop.f32.mrf.mxu1 }
 0xecb   : > { %v5186_v51 = vadd.f32 %v3393_v9, %v5131_v53 }
 0xecc   : > { %v3681_v56 = vpop.f32.mrf.mxu1 }
 0xecd   : > { %v1564_v56 = vmin.f32 %v5183_v5, 20.0  ;;  %vm2752_vm13 = vcmp.gt.f32.partialorder %v5186_v51, 20.0 }
 0xef2   : > { %v2861_v57 = vpop.permute.xlu1 %2860 }
 0xef3   : > { %v2863_v3 = vmul.f32 %v3427_v2, %v2861_v57  ;;  %v2753_v2 = vmin.f32 %v5186_v51, 20.0  ;;  %v1565_v57 = vmul.f32 1.442695, %v1564_v56 }
 0xef5   : > { %v2864_v4 = vadd.f32 %v2863_v3, %v5108_v55  ;;  %v2754_v3 = vmul.f32 1.442695, %v2753_v2 }
 0xef6   : > { %v2944_v6 = vpop.permute.xlu1 %2943 }
 0xef7   : > { %3116 = vst.msk [vmem:[#allocation3] sm:$0xf] %vm3114_vm1, %v2944_v6  ;;  %3696 = vmatmul.mubr.msk.f32.vlgmr.msra.gmra.mxu1 %vm1073_vm9, %v2864_v4 }
 0xfb7   : > { %v5137_v24 = vpop.f32.mrf.mxu1 }
 0xfb8   : > { %2939 = vrot.lane.b32.xlu0 %v5137_v24, %s4328_s28 }
 0xfb9   : > { %v3697_v7 = vpop.f32.mrf.mxu1 }
 0xfba   : > { %v1895_v7 = vmin.f32 %v5147_v44, 20.0 }
 0xfbc   : > { %v1896_v53 = vmul.f32 1.442695, %v1895_v7 }
0x102a   : > { %v2940_v10 = vpop.permute.xlu0 %2939 }
0x102b   : > { %v2942_v58 = vadd.f32 %v2940_v10, %v4992_v41  ;;  %v1247_v41 = vpop.xlane.xlu1 %1246  ;;  %v2488_v10 = vmin.f32 %v5151_v8, 20.0 }
0x102d   : > { %v2946_v12 = vadd.f32 %v2944_v6, %v2942_v58 }
0x102f   : > { %v2947_v60 = vadd.f32 %v2946_v12, %v4984_v63  ;;  %v2438_v63 = vsel %vm1244_vm0, %v5151_v8, -inf  ;;  %v2489_v12 = vmul.f32 1.442695, %v2488_v10 }
0x1031   : > { %v2948_v61 = vadd.f32 %v2947_v60, %v4946_v28  ;;  %v1248_v28 = vsub.f32 %v5125_v50, %v1247_v41 }
0x1033   : > { %v2949_v0 = vmax.f32 %v2948_v61, 0.0  ;;  %v1249_v17 = vmul.f32 1.442695, %v1248_v28 }
0x1035   : > { %2951 = vrot.lane.b32.xlu0 %v2949_v0, %s4329_s0  ;;  %3881 = vpow2.f32 %v1249_v17 }
0x1036   : > { %3883 = vpow2.f32 %v2161_v46 }
0x1042   : > { %v5158_v18 = vpop.eup %3881 }
0x1043   : > { %v3884_v21 = vpop.eup %3883 }
0x1044   : > { %v2163_v26 = vadd.f32 1.0, %v3884_v21  ;;  %v2166_v30 = vmul.f32 -0.5, %v3884_v21  ;;  %v2169_v11 = vand.u32 2147483647, %v3884_v21 }
0x1046   : > { %3885 = vlog2.f32 %v2163_v26  ;;  %v2167_v31 = vadd.f32 1.0, %v2166_v30  ;;  %vm2170_vm2 = vcmp.lt.f32.partialorder %v2169_v11, 0.0004427343 }
0x1048   : > { %v2168_v27 = vmul.f32 %v3884_v21, %v2167_v31 }
0x1053   : > { %v3886_v33 = vpop.eup %3885 }
0x1054   : > { %1846 = vmax.xlane.f32.xlu0 %v1845_v15  ;;  %v2165_v13 = vmul.f32 0.6931472, %v3886_v33 }
0x1056   : > { %v2171_v23 = vsel %vm2170_vm2, %v2168_v27, %v2165_v13 }
0x1057   : > { %v2172_v29 = vsel %vm2159_vm3, %v5164_v19, %v2171_v23  ;;  %vm1894_vm3 = vcmp.gt.f32.partialorder %v5147_v44, 20.0 }
0x1058   : > { %2439 = vmax.xlane.f32.xlu0 %v2438_v63 }
0x106e   : > { %1252 = vrot.lane.b32.xlu0 %v5158_v18, %s4332_s26 }
0x10a7   : > { %v2952_v37 = vpop.permute.xlu0 %2951 }
0x10a8   : > { %3707 = vmatmul.mubr.msk.f32.vlgmr.msra.gmra.mxu0 %vm734_vm6, %v2952_v37 }
0x10dd   : > { %v1847_v34 = vpop.xlane.xlu0 %1846 }
0x10de   : > { %v1848_v35 = vsub.f32 %v5147_v44, %v1847_v34 }
0x10e0   : > { %v1849_v45 = vmul.f32 1.442695, %v1848_v35 }
0x10e1   : > { %v2440_v17 = vpop.xlane.xlu0 %2439 }
0x10e2   : > { %3887 = vpow2.f32 %v1849_v45  ;;  %v2441_v2 = vsub.f32 %v5151_v8, %v2440_v17 }
0x10e3   : > { %3889 = vrcp.f32 %v2172_v29 }
0x10e4   : > { %3891 = vpow2.f32 %v961_v48 }
0x10e5   : > { %3893 = vpow2.f32 %v1565_v57  ;;  %v1253_v35 = vpop.permute.xlu0 %1252 }
0x10e6   : > { %3895 = vpow2.f32 %v2754_v3  ;;  %v1256_v57 = vsel %vm1255_vm7, %v1253_v35, 0.0 }
0x10ef   : > { %v5170_v39 = vpop.eup %3887 }
0x10f0   : > { %1852 = vrot.lane.b32.xlu0 %v5170_v39, %s4332_s26  ;;  %v5174_v42 = vpop.eup %3889 }
0x10f1   : > { %v3892_v4 = vpop.eup %3891 }
0x10f2   : > { %v963_v6 = vadd.f32 1.0, %v3892_v4  ;;  %v3894_v58 = vpop.eup %3893  ;;  %v966_v15 = vmul.f32 -0.5, %v3892_v4  ;;  %v969_v28 = vand.u32 2147483647, %v3892_v4 }
0x10f3   : > { %v3896_v60 = vpop.eup %3895  ;;  %v1567_v61 = vadd.f32 1.0, %v3894_v58  ;;  %v1570_v33 = vmul.f32 -0.5, %v3894_v58 }
0x10f4   : > { %2465 = vrot.lane.b32.xlu0 %v5174_v42, %s4330_s16  ;;  %3897 = vlog2.f32 %v963_v6  ;;  %v2756_v0 = vadd.f32 1.0, %v3896_v60  ;;  %v967_v63 = vadd.f32 1.0, %v966_v15  ;;  %vm5200_vm4 = vcmp.lt.f32.partialorder %v969_v28, 0.0004427343 }
0x10f5   : > { %3899 = vpow2.f32 %v1297_v43  ;;  %v1571_v48 = vadd.f32 1.0, %v1570_v33  ;;  %v2759_v56 = vmul.f32 -0.5, %v3896_v60  ;;  %v2762_v10 = vand.u32 2147483647, %v3896_v60 }
0x10f6   : > { %3901 = vpow2.f32 %v1896_v53  ;;  %v968_v46 = vmul.f32 %v3892_v4, %v967_v63  ;;  %v1573_v4 = vand.u32 2147483647, %v3894_v58  ;;  %v2442_v53 = vmul.f32 1.442695, %v2441_v2 }
0x10f7   : > { %3903 = vpow2.f32 %v2489_v12  ;;  %v2760_v7 = vadd.f32 1.0, %v2759_v56  ;;  %v1572_v43 = vmul.f32 %v3894_v58, %v1571_v48  ;;  %vm2763_vm12 = vcmp.lt.f32.partialorder %v2762_v10, 0.0004427343 }
0x10f8   : > { %3905 = vlog2.f32 %v1567_v61  ;;  %vm1574_vm10 = vcmp.lt.f32.partialorder %v1573_v4, 0.0004427343 }
0x10f9   : > { %3907 = vlog2.f32 %v2756_v0  ;;  %v2761_v0 = vmul.f32 %v3896_v60, %v2760_v7 }
0x1101   : > { %v3898_v41 = vpop.eup %3897 }
0x1102   : > { %v5193_v37 = vpop.eup %3899  ;;  %v965_v9 = vmul.f32 0.6931472, %v3898_v41 }
0x1103   : > { %v5198_v26 = vpop.eup %3901  ;;  %v1299_v11 = vadd.f32 1.0, %v5193_v37  ;;  %v1302_v63 = vmul.f32 -0.5, %v5193_v37  ;;  %v1305_v33 = vand.u32 2147483647, %v5193_v37 }
0x1104   : > { %v971_v13 = vsel %vm5200_vm4, %v968_v46, %v965_v9  ;;  %v1898_v45 = vadd.f32 1.0, %v5198_v26  ;;  %v1901_v17 = vmul.f32 -0.5, %v5198_v26  ;;  %vm2487_vm4 = vcmp.gt.f32.partialorder %v5151_v8, 20.0 }
0x1105   : > { %v972_v47 = vsel %vm959_vm8, %v5179_v1, %v971_v13  ;;  %3909 = vlog2.f32 %v1299_v11  ;;  %vm1306_vm14 = vcmp.lt.f32.partialorder %v1305_v33, 0.0004427343 }
0x1106   : > { %v1902_v13 = vadd.f32 1.0, %v1901_v17 }
0x1108   : > { %v1903_v48 = vmul.f32 %v5198_v26, %v1902_v13 }
0x1168   : > { %v3021_v20 = vpop.f32.mrf.mxu0 }
0x1169   : > { %v5196_v21 = vadd.f32 %v5121_v49, %v3021_v20  ;;  %v5210_v49 = vpop.eup %3903  ;;  %v1303_v20 = vadd.f32 1.0, %v1302_v63 }
0x116a   : > { %v3708_v31 = vpop.f32.mrf.mxu0  ;;  %v3906_v29 = vpop.eup %3905  ;;  %v2491_v3 = vadd.f32 1.0, %v5210_v49  ;;  %v2494_v60 = vmul.f32 -0.5, %v5210_v49 }
0x116b   : > { %v3081_v34 = vmin.f32 %v5196_v21, 20.0  ;;  %v3031_v27 = vsel %vm1244_vm0, %v5196_v21, -inf  ;;  %v3908_v36 = vpop.eup %3907  ;;  %v1569_v6 = vmul.f32 0.6931472, %v3906_v29  ;;  %v1304_v35 = vmul.f32 %v5193_v37, %v1303_v20 }
0x116c   : > { %3032 = vmax.xlane.f32.xlu1 %v3031_v27  ;;  %v2758_v12 = vmul.f32 0.6931472, %v3908_v36  ;;  %v3910_v28 = vpop.eup %3909  ;;  %v1904_v27 = vand.u32 2147483647, %v5198_v26  ;;  %v2497_v29 = vand.u32 2147483647, %v5210_v49 }
0x116d   : > { %v3082_v23 = vmul.f32 1.442695, %v3081_v34  ;;  %v1575_v61 = vsel %vm1574_vm10, %v1572_v43, %v1569_v6  ;;  %v1301_v11 = vmul.f32 0.6931472, %v3910_v28  ;;  %vm1295_vm0 = vcmp.gt.f32.partialorder %v5125_v50, 20.0 }
0x116e   : > { %v1576_v15 = vsel %vm1563_vm11, %v5183_v5, %v1575_v61  ;;  %v2764_v41 = vsel %vm2763_vm12, %v2761_v0, %v2758_v12  ;;  %vm1905_vm15 = vcmp.lt.f32.partialorder %v1904_v27, 0.0004427343  ;;  %vm2498_vm2 = vcmp.lt.f32.partialorder %v2497_v29, 0.0004427343  ;;  %v3963_v36 = vld [vmem:[%s4631_s15] sm:$0xf] }
0x116f   : > { %3911 = vpow2.f32 %v3082_v23  ;;  %v2765_v58 = vsel %vm2752_vm13, %v5186_v51, %v2764_v41  ;;  %v1309_v26 = vmul.f32 %v3963_v36, %v5125_v50  ;;  %v731_v61 = vld [vmem:[#allocation6] sm:$0xf]  ;;  %v2501_v28 = vmul.f32 %v4967_v25, %v5151_v8 }
0x1170   : > { %1257 = vadd.xlane.f32.xlu1 %v1256_v57  ;;  %3913 = vlog2.f32 %v1898_v45  ;;  %v2495_v45 = vadd.f32 1.0, %v2494_v60  ;;  %vm3080_vm10 = vcmp.gt.f32.partialorder %v5196_v21, 20.0  ;;  %vm1323_vm11 = vcmask 388096  }
0x1171   : > { %3915 = vrcp.f32 %v972_v47  ;;  %v1307_v47 = vsel %vm1306_vm14, %v1304_v35, %v1301_v11  ;;  %v3094_v11 = vmul.f32 %v5065_v14, %v5196_v21  ;;  %vm3121_vm12 = vcmask 519168  }
0x1172   : > { %3917 = vlog2.f32 %v2491_v3  ;;  %v2496_v57 = vmul.f32 %v5210_v49, %v2495_v45  ;;  %v1308_v4 = vsel %vm1295_vm0, %v5125_v50, %v1307_v47  ;;  %vm3123_vm13 = vcmask 60416  }
0x1173   : > { %3919 = vpow2.f32 %v2442_v53  ;;  %v1310_v10 = vsub.f32 %v1308_v4, %v1309_v26  ;;  %v3964_v53 = vld [vmem:[%s4631_s15 + $0x4] sm:$0xf]  ;;  %s4333_s15 = smov 8   ;;  %v1853_v4 = vpop.permute.xlu0 %1852 }
0x1174   : > { %3921 = vrcp.f32 %v1576_v15  ;;  %v1908_v49 = vmul.f32 %v3964_v53, %v5147_v44  ;;  %v1855_v36 = vsel %vm1255_vm7, %v1853_v4, 0.0 }
0x1175   : > { %3923 = vrcp.f32 %v2765_v58  ;;  %v1311_v17 = vadd.f32 %v1310_v10, %v731_v61 }
0x117c   : > { %v3912_v9 = vpop.eup %3911 }
0x117d   : > { %v3084_v46 = vadd.f32 1.0, %v3912_v9  ;;  %v3914_v30 = vpop.eup %3913  ;;  %v3087_v3 = vmul.f32 -0.5, %v3912_v9  ;;  %v3090_v15 = vand.u32 2147483647, %v3912_v9 }
0x117e   : > { %v5226_v31 = vpop.eup %3915  ;;  %v1900_v23 = vmul.f32 0.6931472, %v3914_v30 }
0x117f   : > { %3925 = vlog2.f32 %v3084_v46  ;;  %v3918_v34 = vpop.eup %3917  ;;  %v3088_v12 = vadd.f32 1.0, %v3087_v3  ;;  %vm3091_vm8 = vcmp.lt.f32.partialorder %v3090_v15, 0.0004427343 }
0x1180   : > { %v2493_v56 = vmul.f32 0.6931472, %v3918_v34  ;;  %v5234_v2 = vpop.eup %3919  ;;  %v1906_v37 = vsel %vm1905_vm15, %v1903_v48, %v1900_v23  ;;  %v1271_v48 = vsub.f32 %v4796_v40, %v5179_v1  ;;  %v1270_v1 = vmul.f32 %v5226_v31, %v4805_v54 }
0x1181   : > { %1273 = vrot.lane.b32.xlu1 %v5226_v31, %s4330_s16  ;;  %v5244_v7 = vpop.eup %3921  ;;  %v1907_v43 = vsel %vm1894_vm3, %v5147_v44, %v1906_v37  ;;  %v3089_v46 = vmul.f32 %v3912_v9, %v3088_v12  ;;  %v3402_v9 = vmul.f32 -1.442695, %v5125_v50 }
0x1182   : > { %v2499_v6 = vsel %vm2498_vm2, %v2496_v57, %v2493_v56  ;;  %v5253_v41 = vpop.eup %3923  ;;  %v1909_v63 = vsub.f32 %v1907_v43, %v1908_v49  ;;  %v3412_v43 = vmul.f32 -1.442695, %v5147_v44  ;;  %v1277_v10 = vmul.f32 %v1270_v1, %v1270_v1 }
0x1183   : > { %v2500_v0 = vsel %vm2487_vm4, %v5151_v8, %v2499_v6  ;;  %3927 = vpow2.f32 %v3402_v9  ;;  %v5282_v6 = vpop.permute.xlu0 %2465 }
0x1184   : > { %v2502_v20 = vsub.f32 %v2500_v0, %v2501_v28  ;;  %v1910_v30 = vadd.f32 %v1909_v63, %v1311_v17 }
0x1185   : > { %2445 = vrot.lane.b32.xlu1 %v5234_v2, %s4332_s26 }
0x1186   : > { %v2503_v34 = vadd.f32 %v2502_v20, %v1910_v30 }
0x1189   : > { %1872 = vrot.lane.b32.xlu1 %v5244_v7, %s4330_s16 }
0x118c   : > { %v3926_v58 = vpop.eup %3925 }
0x118d   : > { %v3086_v60 = vmul.f32 0.6931472, %v3926_v58  ;;  %3058 = vrot.lane.b32.xlu1 %v5253_v41, %s4330_s16 }
0x118f   : > { %v3092_v33 = vsel %vm3091_vm8, %v3089_v46, %v3086_v60  ;;  %v1870_v60 = vsub.f32 %v4917_v62, %v5183_v5  ;;  %v3056_v5 = vsub.f32 %v5108_v55, %v5186_v51 }
0x1190   : > { %v3093_v13 = vsel %vm3080_vm10, %v5196_v21, %v3092_v33  ;;  %v3928_v35 = vpop.eup %3927 }
0x1191   : > { %v3095_v25 = vsub.f32 %v3093_v13, %v3094_v11  ;;  %v1241_v23 = vadd.f32 1.0, %v3928_v35 }
0x1193   : > { %v5263_v27 = vadd.f32 %v3095_v25, %v2503_v34  ;;  %3929 = vrcp.f32 %v1241_v23 }
0x1195   : > { %3125 = vst.msk [vmem:[#allocation6] sm:$0xf] %vm1255_vm7, %v5263_v27 }
0x11a0   : > { %v3930_v50 = vpop.eup %3929 }
0x11f5   : > { %v3033_v45 = vpop.xlane.xlu1 %3032 }
0x11f6   : > { %v3034_v29 = vsub.f32 %v5196_v21, %v3033_v45 }
0x11f8   : > { %v3035_v47 = vmul.f32 1.442695, %v3034_v29 }
0x11f9   : > { %v1258_v14 = vpop.xlane.xlu1 %1257 }
0x11fa   : > { %3931 = vpow2.f32 %v3035_v47 }
0x11fb   : > { %3933 = vlog2.f32 %v1270_v1 }
0x11fc   : > { %3935 = vrcp.f32 %v1258_v14 }
0x11fd   : > { %v1274_v56 = vpop.permute.xlu1 %1273  ;;  %3937 = vpow2.f32 %v3412_v43 }
0x11fe   : > { %v1276_v37 = vmul.f32 %v1274_v56, %v1271_v48 }
0x1200   : > { %v1278_v57 = vmul.f32 %v1276_v37, %v1276_v37 }
0x1201   : > { %v2446_v61 = vpop.permute.xlu1 %2445 }
0x1202   : > { %1280 = vrot.lane.b32.xlu0 %v1278_v57, %s4333_s15  ;;  %v2448_v1 = vsel %vm1255_vm7, %v2446_v61, 0.0 }
0x1205   : > { %v1873_v20 = vpop.permute.xlu1 %1872 }
0x1206   : > { %1313 = vrot.lane.b32.xlu0 %v3930_v50, %s4334_s20  ;;  %v1875_v30 = vmul.f32 %v1873_v20, %v1870_v60  ;;  %v730_v60 = vld [vmem:[#allocation5] sm:$0xf] }
0x1207   : > { %v5273_v3 = vpop.eup %3931 }
0x1208   : > { %v3934_v26 = vpop.eup %3933 }
0x1209   : > { %v1286_v53 = vmul.f32 0.6931472, %v3934_v26  ;;  %v3936_v17 = vpop.eup %3935  ;;  %v3059_v13 = vpop.permute.xlu1 %3058 }
0x120a   : > { %3038 = vrot.lane.b32.xlu0 %v5273_v3, %s4332_s26  ;;  %v1260_v33 = vmul.f32 %v3936_v17, %v5158_v18  ;;  %v3061_v34 = vmul.f32 %v3059_v13, %v3056_v5  ;;  %v1869_v18 = vmul.f32 %v5244_v7, %v4922_v32  ;;  %v3423_v7 = vmul.f32 -1.442695, %v5151_v8 }
0x120b   : > { %v1287_v0 = vmul.f32 2.0, %v1286_v53 }
0x120c   : > { %v3063_v25 = vmul.f32 %v3061_v34, %v3061_v34  ;;  %v1876_v51 = vmul.f32 %v1869_v18, %v1869_v18 }
0x1229   : > { %1856 = vadd.xlane.f32.xlu0 %v1855_v36  ;;  %v3055_v36 = vmul.f32 %v5253_v41, %v5113_v38 }
0x123f   : > { %3048 = vrot.lane.b32.xlu0 %v5129_v52, %s4329_s0  ;;  %v1320_v52 = vsel %vm1073_vm9, %v4796_v40, %v4805_v54  ;;  %v3938_v40 = vpop.eup %3937  ;;  %v1877_v54 = vmul.f32 %v1875_v30, %v1875_v30 }
0x1240   : > { %v1842_v11 = vadd.f32 1.0, %v3938_v40  ;;  %v3434_v40 = vmul.f32 -1.442695, %v5196_v21 }
0x1242   : > { %3939 = vrcp.f32 %v1842_v11 }
0x1243   : > { %3941 = vlog2.f32 %v1869_v18 }
0x1244   : > { %3943 = vpow2.f32 %v3423_v7 }
0x1245   : > { %3945 = vlog2.f32 %v3055_v36 }
0x124f   : > { %v3940_v9 = vpop.eup %3939 }
0x1250   : > { %v3942_v23 = vpop.eup %3941 }
0x1251   : > { %v1885_v47 = vmul.f32 0.6931472, %v3942_v23  ;;  %v3944_v43 = vpop.eup %3943 }
0x1252   : > { %v2435_v53 = vadd.f32 1.0, %v3944_v43 }
0x1253   : > { %v1886_v56 = vmul.f32 2.0, %v1885_v47 }
0x1274   : > { %v1281_v49 = vpop.permute.xlu0 %1280 }
0x1275   : > { %v1283_v12 = vadd.f32 %v1281_v49, %v1277_v10  ;;  %v2463_v49 = vsub.f32 %v5019_v59, %v5164_v19 }
0x1277   : > { %v3403_v15 = vadd.f32 -1.0, %v1283_v12  ;;  %v2468_v8 = vmul.f32 %v5282_v6, %v2463_v49 }
0x1278   : > { %v1314_v31 = vpop.permute.xlu0 %1313 }
0x1279   : > { %v1288_v63 = vsub.f32 %v3403_v15, %v1287_v0  ;;  %v1321_v28 = vsel %vm809_vm5, %v1320_v52, %v1314_v31  ;;  %v3062_v0 = vmul.f32 %v3055_v36, %v3055_v36  ;;  %v3946_v15 = vpop.eup %3945  ;;  %v2470_v52 = vmul.f32 %v2468_v8, %v2468_v8 }
0x127a   : > { %v3071_v31 = vmul.f32 0.6931472, %v3946_v15 }
0x127b   : > { %v1289_v58 = vmul.f32 0.5, %v1288_v63 }
0x127c   : > { %v3039_v44 = vpop.permute.xlu0 %3038 }
0x127d   : > { %1291 = vrot.lane.b32.xlu1 %v1289_v58, %s4330_s16  ;;  %v3041_v46 = vsel %vm1255_vm7, %v3039_v44, 0.0  ;;  %v3072_v58 = vmul.f32 2.0, %v3071_v31 }
0x127e   : > { %3042 = vadd.xlane.f32.xlu0 %v3041_v46 }
0x1281   : > { %1317 = vrot.lane.b32.xlu1 %v1260_v33, %s4334_s20  ;;  %v2462_v33 = vmul.f32 %v5174_v42, %v5024_v22  ;;  %v1919_v42 = vsel %vm1073_vm9, %v4917_v62, %v4922_v32 }
0x1283   : > { %v2469_v5 = vmul.f32 %v2462_v33, %v2462_v33 }
0x1285   : > { %1879 = vrot.lane.b32.xlu1 %v1877_v54, %s4333_s15 }
0x1294   : > { %3065 = vrot.lane.b32.xlu0 %v3063_v25, %s4333_s15 }
0x1298   : > { %1912 = vrot.lane.b32.xlu0 %v3940_v9, %s4334_s20  ;;  %v3046_v9 = vadd.f32 %v5137_v24, %v5086_v16 }
0x12b2   : > { %v1857_v4 = vpop.xlane.xlu0 %1856 }
0x12b3   : > { %3947 = vrcp.f32 %v1857_v4 }
0x12b4   : > { %3949 = vrcp.f32 %v2435_v53 }
0x12b6   : > { %v3049_v26 = vpop.permute.xlu0 %3048 }
0x12b7   : > { %v3051_v21 = vadd.f32 %v3049_v26, %v3046_v9 }
0x12c0   : > { %v3948_v61 = vpop.eup %3947 }
0x12c1   : > { %v3950_v17 = vpop.eup %3949 }
0x12ef   : > { %v1292_v35 = vpop.permute.xlu1 %1291 }
0x12f3   : > { %v1318_v45 = vpop.permute.xlu1 %1317 }
0x12f4   : > { %v1322_v29 = vsel %vm734_vm6, %v1321_v28, %v1318_v45  ;;  %v1859_v28 = vmul.f32 %v3948_v61, %v5170_v39  ;;  %v1294_v39 = vadd.f32 %v1292_v35, %v730_v60 }
0x12f5   : > { %1324 = vst.msk [vmem:[%s4633_s30] sm:$0xf] %vm1323_vm11, %v1322_v29 }
0x12f7   : > { %v1880_v14 = vpop.permute.xlu1 %1879 }
0x12f8   : > { %v1882_v48 = vadd.f32 %v1880_v14, %v1876_v51 }
0x12fa   : > { %v3413_v37 = vadd.f32 -1.0, %v1882_v48 }
0x12fc   : > { %v1887_v57 = vsub.f32 %v3413_v37, %v1886_v56 }
0x12fe   : > { %v1888_v50 = vmul.f32 0.5, %v1887_v57 }
0x1300   : > { %1890 = vrot.lane.b32.xlu1 %v1888_v50, %s4330_s16 }
0x1307   : > { %v3043_v10 = vpop.xlane.xlu0 %3042 }
0x1308   : > { %3951 = vrcp.f32 %v3043_v10  ;;  %v3105_v10 = vsel %vm1073_vm9, %v5108_v55, %v5113_v38 }
0x1309   : > { %3953 = vlog2.f32 %v2462_v33 }
0x130a   : > { %3955 = vpow2.f32 %v3434_v40 }
0x130b   : > { %v3066_v12 = vpop.permute.xlu0 %3065 }
0x130c   : > { %v3068_v41 = vadd.f32 %v3066_v12, %v3062_v0 }
0x130e   : > { %v3435_v63 = vadd.f32 -1.0, %v3068_v41 }
0x130f   : > { %v1913_v18 = vpop.permute.xlu0 %1912 }
0x1310   : > { %v3073_v19 = vsub.f32 %v3435_v63, %v3072_v58  ;;  %v1920_v29 = vsel %vm809_vm5, %v1919_v42, %v1913_v18 }
0x1312   : > { %v3074_v6 = vmul.f32 0.5, %v3073_v19 }
0x1315   : > { %v3952_v20 = vpop.eup %3951 }
0x1316   : > { %v3045_v44 = vmul.f32 %v3952_v20, %v5273_v3  ;;  %v3954_v54 = vpop.eup %3953 }
0x1317   : > { %v3956_v11 = vpop.eup %3955  ;;  %v2478_v34 = vmul.f32 0.6931472, %v3954_v54 }
0x1318   : > { %v3028_v3 = vadd.f32 1.0, %v3956_v11 }
0x1319   : > { %v2479_v23 = vmul.f32 2.0, %v2478_v34 }
0x1324   : > { %2449 = vadd.xlane.f32.xlu1 %v2448_v1 }
0x1335   : > { %2472 = vrot.lane.b32.xlu1 %v2470_v52, %s4333_s15 }
0x1339   : > { %1916 = vrot.lane.b32.xlu1 %v1859_v28, %s4334_s20 }
0x133d   : > { %2505 = vrot.lane.b32.xlu1 %v3950_v17, %s4334_s20 }
0x1341   : > { %3076 = vrot.lane.b32.xlu1 %v3074_v6, %s4330_s16 }
0x1345   : > { %3102 = vrot.lane.b32.xlu1 %v3045_v44, %s4334_s20 }
0x1349   : > { %3118 = vrot.lane.b32.xlu1 %v5086_v16, %s4331_s25 }
0x1372   : > { %v1891_v46 = vpop.permute.xlu1 %1890 }
0x1373   : > { %v1893_v30 = vadd.f32 %v1891_v46, %v1294_v39 }
0x13ad   : > { %v2450_v13 = vpop.xlane.xlu1 %2449 }
0x13ae   : > { %3957 = vrcp.f32 %v2450_v13 }
0x13af   : > { %3959 = vrcp.f32 %v3028_v3 }
0x13b0   : > { %3961 = vtanh.f32 %v3051_v21 }
0x13b1   : > { %v2473_v25 = vpop.permute.xlu1 %2472 }
0x13b2   : > { %v2475_v35 = vadd.f32 %v2473_v25, %v2469_v5 }
0x13b4   : > { %v3424_v45 = vadd.f32 -1.0, %v2475_v35 }
0x13b5   : > { %v1917_v51 = vpop.permute.xlu1 %1916 }
0x13b6   : > { %v2480_v47 = vsub.f32 %v3424_v45, %v2479_v23  ;;  %v1921_v14 = vsel %vm734_vm6, %v1920_v29, %v1917_v51 }
0x13b7   : > { %3414 = vst.msk [vmem:[%s4633_s30 + $0x4] sm:$0xf] %vm1323_vm11, %v1921_v14 }
0x13b8   : > { %v2481_v16 = vmul.f32 0.5, %v2480_v47 }
0x13b9   : > { %v2506_v24 = vpop.permute.xlu1 %2505 }
0x13ba   : > { %2483 = vrot.lane.b32.xlu0 %v2481_v16, %s4330_s16 }
0x13bb   : > { %v3958_v48 = vpop.eup %3957 }
0x13bc   : > { %v2452_v62 = vmul.f32 %v3958_v48, %v5234_v2  ;;  %v3960_v56 = vpop.eup %3959  ;;  %v2512_v2 = vsel %vm1073_vm9, %v5019_v59, %v5024_v22 }
0x13bd   : > { %v3077_v32 = vpop.permute.xlu1 %3076  ;;  %v3962_v57 = vpop.eup %3961  ;;  %v2513_v1 = vsel %vm809_vm5, %v2512_v2, %v2506_v24 }
0x13be   : > { %2509 = vrot.lane.b32.xlu0 %v2452_v62, %s4334_s20 }
0x13c1   : > { %v3103_v37 = vpop.permute.xlu1 %3102 }
0x13c2   : > { %3098 = vrot.lane.b32.xlu0 %v3960_v56, %s4334_s20 }
0x13c5   : > { %v3119_v50 = vpop.permute.xlu1 %3118 }
0x13c6   : > { %3122 = vst.msk [vmem:[#allocation4] sm:$0xf] %vm3121_vm12, %v3119_v50  ;;  %3111 = vrot.lane.b32.xlu0 %v3962_v57, %s4328_s28 }
0x142c   : > { %v2484_v7 = vpop.permute.xlu0 %2483 }
0x142d   : > { %v2486_v4 = vadd.f32 %v2484_v7, %v1893_v30 }
0x142f   : > { %v3079_v36 = vadd.f32 %v3077_v32, %v2486_v4 }
0x1430   : > { %v2510_v26 = vpop.permute.xlu0 %2509 }
0x1431   : > { %3124 = vst.msk [vmem:[#allocation5] sm:$0xf] %vm3123_vm13, %v3079_v36  ;;  %v2514_v43 = vsel %vm734_vm6, %v2513_v1, %v2510_v26 }
0x1432   : > { %3425 = vst.msk [vmem:[%s4633_s30 + $0x8] sm:$0xf] %vm1323_vm11, %v2514_v43 }
0x1434   : > { %v3099_v53 = vpop.permute.xlu0 %3098 }
0x1435   : > { %v3106_v49 = vsel %vm809_vm5, %v3105_v10, %v3099_v53  ;;  %3129 = sbr.rel (%p3437_p6) target bundleno = 5385 (0x1509), region = 116 }
0x1436   : > { %v3107_v8 = vsel %vm734_vm6, %v3106_v49, %v3103_v37 }
0x1437   : > { %3436 = vst.msk [vmem:[%s4633_s30 + $0xc] sm:$0xf] %vm1323_vm11, %v3107_v8 }
0x1438   : > { %v3112_v59 = vpop.permute.xlu0 %3111 }
0x1439   : > { %3115 = vst.msk [vmem:[#allocation2] sm:$0xf] %vm3114_vm1, %v3112_v59 }
0x143a   : > { %v3130_v22 = vsel %vm3123_vm13, %v3079_v36, 0.0  ;;  %v3143_v12 = vsel %vm1255_vm7, %v5263_v27, 0.0  ;;  %vm3141_vm5 = vcmask 0  }
0x143b   : > { %3131 = vadd.xlane.f32.xlu0 %v3130_v22 }
0x143f   : > { %3144 = vadd.xlane.f32.xlu0 %v3143_v12 }
0x14c4   : > { %v3132_v55 = vpop.xlane.xlu0 %3131 }
0x14c5   : > { %v3133_v38 = vrot.slane %v3132_v55, 4 }
0x14c7   : > { %v3134_v0 = vadd.f32 %v3133_v38, %v3132_v55 }
0x14c8   : > { %v3145_v15 = vpop.xlane.xlu0 %3144 }
0x14c9   : > { %v3135_v52 = vrot.slane %v3134_v0, 2  ;;  %v3146_v41 = vrot.slane %v3145_v15, 4 }
0x14cb   : > { %v3147_v61 = vadd.f32 %v3146_v41, %v3145_v15  ;;  %v3136_v31 = vadd.f32 %v3135_v52, %v3134_v0 }
0x14cd   : > { %v3148_v63 = vrot.slane %v3147_v61, 2  ;;  %v3137_v28 = vrot.slane %v3136_v31, 1 }
0x14cf   : > { %v3149_v58 = vadd.f32 %v3148_v63, %v3147_v61  ;;  %v3138_v19 = vadd.f32 %v3137_v28, %v3136_v31 }
0x14d1   : > { %3709 = vpush %v3138_v19  ;;  %v3150_v17 = vrot.slane %v3149_v58, 1 }
0x14d3   : > { %v3151_v6 = vadd.f32 %v3150_v17, %v3149_v58 }
0x14d5   : > { %3711 = vpush %v3151_v6 }
0x1502   : > { %s3710_s6 = spop %3709 }
0x1503   : > { %v3140_v27 = vstv %s3710_s6 }
0x1504   : > { %3142 = vst.msk [vmem:[#allocation21] sm:$0x1] %vm3141_vm5, %v3140_v27 }
0x1506   : > { %s3712_s3 = spop %3711 }
0x1507   : > { %v3153_v20 = vstv %s3712_s3 }
0x1508   : > { %3154 = vst.msk [vmem:[#allocation22] sm:$0x1] %vm3141_vm5, %v3153_v20 }
0x1509 PF: > { %s4335_s28 = smov [#allocation21]   ;;  %s4336_s13 = smov [#allocation22]  }
0x150a   : > { %s3167_s0 = sshll.u32 %s4335_s28, 4  ;;  %s3178_s17 = sshll.u32 %s4336_s13, 4  ;;  %s3168_s0 = int_to_ptr.vmem [resolvable:$true] %s3167_s0  ;;  %s3179_s17 = int_to_ptr.vmem [resolvable:$true] %s3178_s17 }
0x150b   : > { %s4175_s16 = scalar_lea.vmem %s3168_s0, 16  ;;  %p5497_p4 = scmp.eq.s32.totalorder %s4445_s27, 1 }
0x150c   : > { %p4176_p8 = scmp.ne.s32.totalorder %s3168_s0, %s4175_s16  ;;  %s4181_s4 = scalar_lea.vmem %s3168_s0, 32 }
0x150d   : > { %p4182_p7 = scmp.lt.s32.totalorder %s3168_s0, %s3168_s0  ;;  %p4183_p9 = scmp.lt.s32.totalorder %s4181_s4, %s4175_s16 }
0x150e   : > { %p4177_p3 = pnand %p4176_p8, %p5497_p4 }
0x150f   : > { %p4184_p5 = por %p4183_p9, %p4182_p7 }
0x1510   : > { %p4178_p13 = pneg %p4177_p3 }
0x1512   : > { %p4185_p10 = pnand %p4184_p5, %p4178_p13 }
0x1514   : > { %4188 = shalt.err (!%p4185_p10)
}
0x1515   : > { %p5498_p1 = pmov %p5497_p4  ;;  %s5499_s26 = sld [smem:[#allocation39_spill]] }
0x1516   : > { %s4199_s15 = scalar_lea.vmem %s3179_s17, 16  ;;  %s4205_s20 = scalar_lea.vmem %s3179_s17, 32 }
0x1517   : > { %p4200_p11 = scmp.ne.s32.totalorder %s3179_s17, %s4199_s15  ;;  %p5500_p12 = pmov %p5498_p1 }
0x1518   : > { %p4206_p6 = scmp.lt.s32.totalorder %s3179_s17, %s3179_s17  ;;  %p4207_p8 = scmp.lt.s32.totalorder %s4205_s20, %s4199_s15 }
0x1519   : > { %p4201_p0 = pnand %p4200_p11, %p5500_p12 }
0x151a   : > { %p4208_p4 = por %p4207_p8, %p4206_p6 }
0x151b   : > { %3744 = dma.vmem_to_hbm [thread:$0]  (%p5498_p1), %s3168_s0, 16, %s5499_s26, [#allocation9]  }
0x151c   : > { %p4202_p2 = pneg %p4201_p0 }
0x151e   : > { %p4209_p3 = pnand %p4208_p4, %p4202_p2 }
0x1520   : > { %4212 = shalt.err (!%p4209_p3)
}
0x1521   : > { %p5501_p13 = pmov %p5498_p1  ;;  %s5502_s28 = sld [smem:[#allocation40_spill]] }
0x1522   : > { %s3155_s0 = sand.u32 1, %s4445_s27   ;;  %s3448_s13 = sshll.u32 %s4445_s27, 8 }
0x1523   : > { %s5503_s14 = sld [smem:[#allocation41_spill]]  ;;  %s3191_s26 = sshll.u32 %s4633_s30, 4  ;;  %s5381_s26 = int_to_ptr.vmem [resolvable:$true] %s3191_s26 }
0x1524   : > { %s5383_s15 = scalar_lea.sflag [#allocation9], %s3155_s0  ;;  %s4223_s20 = scalar_lea.vmem %s5381_s26, 256 }
0x1525   : > { %p4224_p7 = scmp.ne.s32.totalorder %s5381_s26, %s4223_s20  ;;  %p5504_p9 = scmp.ne.s32.totalorder %s5479_s29, 0 }
0x1527   : > { %3746 = dma.vmem_to_hbm [thread:$0]  (%p5501_p13), %s3179_s17, 16, %s5502_s28, [#allocation23]  }
0x1528   : > { %p4225_p5 = pnand %p4224_p7, %p5504_p9  ;;  %s4337_s17 = smov [#allocation24]  }
0x1529   : > { %s5378_s5 = scalar_lea.hbm %s5503_s14, %s3448_s13  ;;  %s4227_s6 = sshll.u32 %s4337_s17, 4  ;;  %s4228_s6 = int_to_ptr.vmem [resolvable:$false] %s4227_s6 }
0x152a   : > { %p4226_p10 = pneg %p4225_p5  ;;  %s4229_s3 = scalar_lea.vmem %s4228_s6, 512 }
0x152b   : > { %p4230_p1 = scmp.lt.s32.totalorder %s5381_s26, %s4228_s6  ;;  %p4231_p11 = scmp.lt.s32.totalorder %s4229_s3, %s4223_s20 }
0x152d   : > { %p4232_p12 = por %p4231_p11, %p4230_p1 }
0x152f   : > { %p4233_p0 = pnand %p4232_p12, %p4226_p10 }
0x1531   : > { %4236 = shalt.err (!%p4233_p0)
}
0x1532   : > { %s4237_s30 = scalar_lea.hbm %s5378_s5, 256  ;;  %s4241_s13 = scalar_lea.hbm %s5503_s14, 512 }
0x1533   : > { %p4238_p2 = scmp.ne.s32.totalorder %s5378_s5, %s4237_s30  ;;  %p4242_p4 = scmp.lt.s32.totalorder %s5378_s5, %s5503_s14 }
0x1534   : > { %p4243_p3 = scmp.lt.s32.totalorder %s4241_s13, %s4237_s30 }
0x1535   : > { %p4239_p6 = pnand %p4238_p2, %p5504_p9 }
0x1536   : > { %p4244_p13 = por %p4243_p3, %p4242_p4 }
0x1537   : > { %p4240_p8 = pneg %p4239_p6 }
0x1539   : > { %p4245_p7 = pnand %p4244_p13, %p4240_p8 }
0x153b   : > { %4248 = shalt.err (!%p4245_p7)
}
0x153c   : > { %s4338_s20 = smov 4   ;;  %p5505_p5 = scmp.eq.s32.totalorder %s4445_s27, 1 }
0x153d   : > { %3747 = dma.vmem_to_hbm [thread:$0]  (%p5504_p9), %s5381_s26, 256, %s5378_s5, %s5383_s15, %s4331_s25, %s4331_s25, %s4338_s20  }
0x153e   : > { %4286 = dma.done.wait (%p5505_p5), [#allocation9], 16   ;;  %p5506_p10 = pmov %p5505_p5 }
0x153f   : > { %p5507_p1 = pmov %p5505_p5 }
0x1540   : > { %4288 = vsyncadd (%p5506_p10), [#allocation9], 4294967280 }
0x1541   : > { %4290 = dma.done.wait (%p5507_p1), [#allocation23], 16   ;;  %p5508_p11 = pmov %p5507_p1 }
0x1543   : > { %4292 = vsyncadd (%p5508_p11), [#allocation23], 4294967280 }
0x1544 PF: > { %s5509_s29 = sadd.s32 4294967294, %s4311_s24   ;;  %p5510_p12 = scmp.ne.s32.totalorder %s5480_s21, 0 }
0x1545   : > { %s3214_s17 = sand.u32 1, %s5509_s29   ;;  %p5511_p0 = scmp.ge.s32.totalorder %s4311_s24, 2 }
0x1546   : > { %s3215_s25 = scalar_lea.sflag [#allocation9], %s3214_s17 }
0x1547   : > { %p3780_p9 = pnand %p5511_p0, %p5510_p12 }
0x1549   : > { %p3781_p2 = pneg %p3780_p9 }
0x154b   : > { %4294 = dma.done.wait (%p3781_p2), %s3215_s25, 256  }
0x154c   : > { %4296 = vsyncadd (%p3781_p2), %s3215_s25, 4294967040  ;;  %p33_p6 = scmp.ge.s32.totalorder %s4535_s19, 4   ;;  %s5512_s21 = smov %s4303_s22 }
0x154d   : > { %s5513_s22 = smov %s4307_s23  ;;  %s5514_s23 = smov %s4547_s18 }
0x154e   : > { %s5515_s24 = smov %s4535_s19  ;;  %35 = sbr.rel (!%p33_p6) target bundleno = 19 (0x13), region = 184 }
0x1553   :  { %3220 = vsyncpa [#allocation8], 1 }
0x1554   :  { %3222 = vsyncpa [#allocation8 + $0x1], 1 }
0x1555   :  { %3223 = vsyncpa [#allocation11], 1 }
0x1556   :  { %3224 = vsyncpa [#allocation14], 1 }
0x1557   :  { %3225 = vsyncpa [#allocation17], 1 }
0x1558   :  { %3226 = vsyncpa [#allocation20], 1 }
0x1559   :  { %3227 = vsyncpa [#allocation9], 1 }
0x155a   :  { %3229 = vsyncpa [#allocation9 + $0x1], 1 }
0x155b   :  { %3230 = vsyncpa [#allocation23], 1 }

</bundles_post_ra>
